<compile_context>
chip_gen: v6e
topology: v6e:2x2x1
jax: 0.10.0
libtpu: 0.0.40
codegen_flags: <defaults>
</compile_context>

<pallas_src>
import jax
import jax.numpy as jnp
import numpy as np
from jax.experimental import pallas as pl
from jax.experimental.pallas import tpu as pltpu

NEG_SLOPE = 0.01  # nn.LeakyReLU default negative_slope


def _leaky(x):
    return jnp.where(x > 0, x, NEG_SLOPE * x)


def resnet_pointnet_kernel(p_ref, wH_ref, w2H_ref, bH_ref, bpos_ref,
                           wc_ref, bc_ref, out_ref):
    # Packed-weight layouts (all row offsets are multiples of 8):
    #   wH_ref  (17H, H)  bf16: [ w0_blk0 (2H) | fused_blk0=[ws0;w1_0] (3H) |
    #                             for i=1..4: w0a_i (H), fused_i=[wsa_i;w1_i] (2H) ]
    #   w2H_ref (Dp+8H, 2H) bf16: [ wpos_pad (Dp) | blockdiag_1..4 (2H each) ]
    #   bH_ref  (10, H) f32: [ b0_blk0, b1_blk0, b0_1, b1_1, ..., b0_4, b1_4 ]
    Bt, T, Dp = p_ref.shape
    M = Bt * T
    H = wH_ref.shape[1]
    H2 = 2 * H

    def mm(a, w):
        # bf16 MXU matmul with f32 accumulation (elementwise math stays f32).
        return jnp.dot(a.astype(jnp.bfloat16), w,
                       preferred_element_type=jnp.float32)

    def mm2(a, b, w):
        # Fused K-concat matmul: [a | b] @ w, single MXU pass (K <= 3H <= 128
        # for the default H=32 sizing, well within every generation's tile).
        lhs = jnp.concatenate(
            [a.astype(jnp.bfloat16), b.astype(jnp.bfloat16)], axis=-1)
        return jnp.dot(lhs, w, preferred_element_type=jnp.float32)

    def pool(net2d):
        # Per-batch-element max over the T points (rows grouped by batch).
        return jnp.max(net2d.reshape(Bt, T, H), axis=1)            # (Bt, H)

    def bcast_add(big2d, small):
        # big2d: (M, H); small: (Bt, H) broadcast over each group of T rows.
        return (big2d.reshape(Bt, T, H) + small[:, None, :]).reshape(M, H)

    bH = bH_ref[...]                                               # (10, H) f32
    x = p_ref[...].reshape(M, Dp)                                  # (M, Dp) f32

    # fc_pos (wpos rows zero-padded to Dp; x lanes zero-padded to match)
    net = mm(x, w2H_ref[0:Dp, :]) + bpos_ref[...]                  # (M, 2H)

    # block_0: plain ResnetBlockFC(2H -> H); fc_1 + shortcut fused (K = 3H)
    h = mm(_leaky(net), wH_ref[0:H2, :]) + bH[0:1, :]              # (M, H)
    net = mm2(net, _leaky(h), wH_ref[H2:5 * H, :]) + bH[1:2, :]    # (M, H)

    # blocks 1..4: concat([net, pooled]) folded into pre-split / fused weights
    for i in range(4):
        wbase = 5 * H + 3 * H * i
        w0a = wH_ref[wbase:wbase + H, :]                           # (H, H)
        wfuse = wH_ref[wbase + H:wbase + 3 * H, :]                 # (2H, H) = [wsa; w1]
        wdiag = w2H_ref[Dp + H2 * i:Dp + H2 * (i + 1), :]          # (2H, 2H) blockdiag
        b0 = bH[2 + 2 * i:3 + 2 * i, :]
        b1 = bH[3 + 2 * i:4 + 2 * i, :]

        pooled = pool(net)                                         # (Bt, H)
        pres = mm2(_leaky(pooled), pooled, wdiag)                  # (Bt, 2H)
        p0 = pres[:, :H] + b0                                      # fc_0 pooled half
        xs_b = pres[:, H:]                                         # shortcut pooled half

        a0 = mm(_leaky(net), w0a)                                  # (M, H)
        h = bcast_add(a0, p0)                                      # fc_0 output
        dxs = mm2(net, _leaky(h), wfuse) + b1                      # net@wsa + leaky(h)@w1 + b1
        net = bcast_add(dxs, xs_b)                                 # (M, H)

    # final pool over points + fc_c
    pooled = pool(net)                                             # (Bt, H)
    c = mm(_leaky(pooled), wc_ref[...]) + bc_ref[...]              # (Bt, c_dim)
    out_ref[...] = c.astype(out_ref.dtype)


def _pick_bt(B, T):
    # Target ~2048 flattened rows (Bt*T) per grid step, Bt a multiple of 8,
    # capped at 256; but keep at least 2 grid steps when the batch allows so
    # the "parallel" batch axis shards across both TensorCores on v7x.
    b_ceil8 = ((B + 7) // 8) * 8
    bt = max(8, min(256, (2048 // max(T, 1)) // 8 * 8))
    if b_ceil8 >= 16:
        bt = min(bt, max(8, (b_ceil8 // 2) // 8 * 8))
    return min(bt, b_ceil8)


def resnet_pointnet(p, params):
    """p: (B, T, D) float32. Returns (B, c_dim) float32."""
    B, T, D = p.shape
    assert T % 8 == 0, "T must be a multiple of 8"
    # TODO(synk): for non-multiple-of-8 T, pad the point axis and mask padded
    # rows with -inf before every max-pool (needs a row mask in the kernel).

    (wpos, bpos), blocks, (wc, bc) = params
    H = wc.shape[0]
    c_dim = wc.shape[1]

    Bt = _pick_bt(B, T)
    B_pad = ((B + Bt - 1) // Bt) * Bt
    Dp = ((D + 7) // 8) * 8
    p = jnp.pad(p, ((0, B_pad - B), (0, 0), (0, Dp - D)))

    bf = lambda a: a.astype(jnp.bfloat16)
    zH = jnp.zeros((H, H), jnp.float32)

    # Pack weights / biases into a few buffers (see kernel-side layout docs).
    w0_0, b0_0, w1_0, b1_0, ws_0 = blocks[0]
    wH_parts = [w0_0, ws_0, w1_0]                      # fc_0, then fused [ws; w1]
    w2H_parts = [jnp.pad(wpos, ((0, Dp - D), (0, 0)))]  # fc_pos rows padded to Dp
    bH_parts = [b0_0, b1_0]
    for i in range(1, 5):
        w0, b0, w1, b1, ws = blocks[i]
        wH_parts += [w0[:H], ws[:H], w1]               # w0a, then fused [wsa; w1]
        wdiag = jnp.concatenate(
            [jnp.concatenate([w0[H:], zH], axis=1),
             jnp.concatenate([zH, ws[H:]], axis=1)], axis=0)   # [[w0b,0],[0,wsb]]
        w2H_parts += [wdiag]
        bH_parts += [b0, b1]

    W_H = bf(jnp.concatenate(wH_parts, axis=0))        # (17H, H)      bf16
    W_2H = bf(jnp.concatenate(w2H_parts, axis=0))      # (Dp + 8H, 2H) bf16
    B_H = jnp.concatenate(bH_parts, axis=0)            # (10, H)       f32
    wc_bf = bf(wc)

    const2 = lambda b: (0, 0)
    in_specs = [
        pl.BlockSpec((Bt, T, Dp), lambda b: (b, 0, 0)),
        pl.BlockSpec(W_H.shape, const2),
        pl.BlockSpec(W_2H.shape, const2),
        pl.BlockSpec(B_H.shape, const2),
        pl.BlockSpec(bpos.shape, const2),
        pl.BlockSpec(wc_bf.shape, const2),
        pl.BlockSpec(bc.shape, const2),
    ]
    out_spec = pl.BlockSpec((Bt, c_dim), lambda b: (b, 0))

    out = pl.pallas_call(
        resnet_pointnet_kernel,
        out_shape=jax.ShapeDtypeStruct((B_pad, c_dim), jnp.float32),
        grid_spec=pltpu.PrefetchScalarGridSpec(
            num_scalar_prefetch=0,
            grid=(B_pad // Bt,),
            in_specs=in_specs,
            out_specs=out_spec,
        ),
        compiler_params=pltpu.CompilerParams(
            dimension_semantics=("parallel",)),
    )(p, W_H, W_2H, B_H, bpos, wc_bf, bc)
    return out[:B]


# ---------------------------------------------------------------------------
# Deterministic parameter init (matches the PyTorch module's shapes).
# Weights are rounded to bf16-representable values so the bf16 kernel and the
# f32 reference consume identical weights.
# ---------------------------------------------------------------------------
def _init_linear(key, size_in, size_out, bias=True, zero_w=False):
    k1, k2 = jax.random.split(key)
    bound = 1.0 / np.sqrt(size_in)
    if zero_w:
        W = jnp.zeros((size_in, size_out), jnp.float32)
    else:
        W = jax.random.uniform(k1, (size_in, size_out), jnp.float32, -bound, bound)
        W = W.astype(jnp.bfloat16).astype(jnp.float32)
    b = (jax.random.uniform(k2, (1, size_out), jnp.float32, -bound, bound)
         if bias else None)
    return W, b


def init_params(key, c_dim=32, dim=3, hidden_dim=32):
    keys = jax.random.split(key, 32)
    ki = iter(range(32))
    wpos, bpos = _init_linear(keys[next(ki)], dim, 2 * hidden_dim)
    blocks = []
    for _ in range(5):
        # ResnetBlockFC(2H, H): size_h = min(2H, H) = H
        w0, b0 = _init_linear(keys[next(ki)], 2 * hidden_dim, hidden_dim)
        # fc_1 weight is zero-initialized (nn.init.zeros_), bias is not
        w1, b1 = _init_linear(keys[next(ki)], hidden_dim, hidden_dim, zero_w=True)
        ws, _ = _init_linear(keys[next(ki)], 2 * hidden_dim, hidden_dim, bias=False)
        blocks.append((w0, b0, w1, b1, ws))
    wc, bc = _init_linear(keys[next(ki)], hidden_dim, c_dim)
    return (wpos, bpos), tuple(blocks), (wc, bc)


# ---------------------------------------------------------------------------
# Pure-JAX (f32) reference of the PyTorch forward, for correctness checking.
# ---------------------------------------------------------------------------
def ref_forward(p, params):
    (wpos, bpos), blocks, (wc, bc) = params

    def block(x, w0, b0, w1, b1, ws):
        net = _leaky(x) @ w0 + b0
        dx = _leaky(net) @ w1 + b1
        return x @ ws + dx

    net = p @ wpos + bpos
    net = block(net, *blocks[0])
    for i in range(1, 5):
        pooled = jnp.max(net, axis=1, keepdims=True)
        net = jnp.concatenate([net, jnp.broadcast_to(pooled, net.shape)], axis=2)
        net = block(net, *blocks[i])
    net = jnp.max(net, axis=1)
    return _leaky(net) @ wc + bc


if __name__ == "__main__":
    B, T, D = 2, 8, 3          # batch, num points, point dim
    hidden_dim, c_dim = 32, 32

    key = jax.random.PRNGKey(0)
    kp, kw = jax.random.split(key)
    p = jax.random.normal(kp, (B, T, D), jnp.float32)
    params = init_params(kw, c_dim=c_dim, dim=D, hidden_dim=hidden_dim)

    c = jax.block_until_ready(resnet_pointnet(p, params))
    c_ref = jax.block_until_ready(ref_forward(p, params))

    # bf16 matmuls with f32 accumulation: activation rounding only (weights are
    # bf16-representable in both), so a modest tolerance suffices.
    np.testing.assert_allclose(np.asarray(c), np.asarray(c_ref),
                               rtol=2e-2, atol=2e-2)
    print("KERNEL_OK")
</pallas_src>

<mosaic_0001>
module attributes {stable_mosaic.version = 11 : i64} {
  func.func @resnet_pointnet_kernel(%arg0: i32, %arg1: memref<8x8x8xf32, #tpu.memory_space<vmem>>, %arg2: memref<544x32xbf16, #tpu.memory_space<vmem>>, %arg3: memref<264x64xbf16, #tpu.memory_space<vmem>>, %arg4: memref<10x32xf32, #tpu.memory_space<vmem>>, %arg5: memref<1x64xf32, #tpu.memory_space<vmem>>, %arg6: memref<32x32xbf16, #tpu.memory_space<vmem>>, %arg7: memref<1x32xf32, #tpu.memory_space<vmem>>, %arg8: memref<8x32xf32, #tpu.memory_space<vmem>>) attributes {dimension_semantics = [#tpu.dimension_semantics<parallel>], iteration_bounds = array<i64: 1>, scalar_prefetch = 0 : i64, scratch_operands = 0 : i64, tpu.core_type = #tpu.core_type<tc>, window_params = [{transform_indices = @transform_0, window_bounds = array<i64: 8, 8, 8>}, {pipeline_mode = #tpu.pipeline_mode<synchronous>, transform_indices = @transform_1, window_bounds = array<i64: 544, 32>}, {pipeline_mode = #tpu.pipeline_mode<synchronous>, transform_indices = @transform_2, window_bounds = array<i64: 264, 64>}, {pipeline_mode = #tpu.pipeline_mode<synchronous>, transform_indices = @transform_3, window_bounds = array<i64: 10, 32>}, {pipeline_mode = #tpu.pipeline_mode<synchronous>, transform_indices = @transform_4, window_bounds = array<i64: 1, 64>}, {pipeline_mode = #tpu.pipeline_mode<synchronous>, transform_indices = @transform_5, window_bounds = array<i64: 32, 32>}, {pipeline_mode = #tpu.pipeline_mode<synchronous>, transform_indices = @transform_6, window_bounds = array<i64: 1, 32>}, {transform_indices = @transform_7, window_bounds = array<i64: 8, 32>}]} {
    %c0 = arith.constant 0 : index
    %c0_0 = arith.constant 0 : index
    %0 = vector.load %arg4[%c0, %c0_0] : memref<10x32xf32, #tpu.memory_space<vmem>>, vector<10x32xf32>
    %c0_1 = arith.constant 0 : index
    %c0_2 = arith.constant 0 : index
    %c0_3 = arith.constant 0 : index
    %1 = vector.load %arg1[%c0_1, %c0_2, %c0_3] : memref<8x8x8xf32, #tpu.memory_space<vmem>>, vector<8x8x8xf32>
    %2 = vector.shape_cast %1 : vector<8x8x8xf32> to vector<64x8xf32>
    %c0_4 = arith.constant 0 : index
    %c0_5 = arith.constant 0 : index
    %3 = vector.load %arg3[%c0_4, %c0_5] : memref<264x64xbf16, #tpu.memory_space<vmem>>, vector<8x64xbf16>
    %4 = arith.truncf %2 : vector<64x8xf32> to vector<64x8xbf16>
    %cst = arith.constant dense<0.000000e+00> : vector<64x64xf32>
    %5 = tpu.matmul %4, %3, %cst {dimension_numbers = #tpu.dot_dimension_numbers<[1], [0], [0], [1], [0, 0, 1, 1], [], []>} : vector<64x8xbf16>, vector<8x64xbf16>, vector<64x64xf32> -> vector<64x64xf32>
    %c0_6 = arith.constant 0 : index
    %c0_7 = arith.constant 0 : index
    %6 = vector.load %arg5[%c0_6, %c0_7] : memref<1x64xf32, #tpu.memory_space<vmem>>, vector<1x64xf32>
    %7 = vector.broadcast %6 : vector<1x64xf32> to vector<64x64xf32>
    %8 = arith.addf %5, %7 : vector<64x64xf32>
    %cst_8 = arith.constant 0.000000e+00 : f32
    %9 = vector.broadcast %cst_8 : f32 to vector<64x64xf32>
    %10 = arith.cmpf ogt, %8, %9 : vector<64x64xf32>
    %cst_9 = arith.constant 0.00999999977 : f32
    %11 = vector.broadcast %cst_9 : f32 to vector<64x64xf32>
    %12 = arith.mulf %11, %8 : vector<64x64xf32>
    %13 = arith.select %10, %8, %12 : vector<64x64xi1>, vector<64x64xf32>
    %c0_10 = arith.constant 0 : index
    %c0_11 = arith.constant 0 : index
    %14 = vector.load %arg2[%c0_10, %c0_11] : memref<544x32xbf16, #tpu.memory_space<vmem>>, vector<64x32xbf16>
    %15 = arith.truncf %13 : vector<64x64xf32> to vector<64x64xbf16>
    %cst_12 = arith.constant dense<0.000000e+00> : vector<64x32xf32>
    %16 = tpu.matmul %15, %14, %cst_12 {dimension_numbers = #tpu.dot_dimension_numbers<[1], [0], [0], [1], [0, 0, 1, 1], [], []>} : vector<64x64xbf16>, vector<64x32xbf16>, vector<64x32xf32> -> vector<64x32xf32>
    %17 = vector.extract_strided_slice %0 {offsets = [0, 0], sizes = [1, 32], strides = [1, 1]} : vector<10x32xf32> to vector<1x32xf32>
    %18 = vector.broadcast %17 : vector<1x32xf32> to vector<64x32xf32>
    %19 = arith.addf %16, %18 : vector<64x32xf32>
    %cst_13 = arith.constant 0.000000e+00 : f32
    %20 = vector.broadcast %cst_13 : f32 to vector<64x32xf32>
    %21 = arith.cmpf ogt, %19, %20 : vector<64x32xf32>
    %cst_14 = arith.constant 0.00999999977 : f32
    %22 = vector.broadcast %cst_14 : f32 to vector<64x32xf32>
    %23 = arith.mulf %22, %19 : vector<64x32xf32>
    %24 = arith.select %21, %19, %23 : vector<64x32xi1>, vector<64x32xf32>
    %c64 = arith.constant 64 : index
    %c0_15 = arith.constant 0 : index
    %25 = vector.load %arg2[%c64, %c0_15] : memref<544x32xbf16, #tpu.memory_space<vmem>>, vector<96x32xbf16>
    %26 = arith.truncf %8 : vector<64x64xf32> to vector<64x64xbf16>
    %27 = arith.truncf %24 : vector<64x32xf32> to vector<64x32xbf16>
    %28 = tpu.concatenate %26, %27 in 1 : vector<64x64xbf16>, vector<64x32xbf16> -> vector<64x96xbf16>
    %cst_16 = arith.constant dense<0.000000e+00> : vector<64x32xf32>
    %29 = tpu.matmul %28, %25, %cst_16 {dimension_numbers = #tpu.dot_dimension_numbers<[1], [0], [0], [1], [0, 0, 1, 1], [], []>} : vector<64x96xbf16>, vector<96x32xbf16>, vector<64x32xf32> -> vector<64x32xf32>
    %30 = vector.extract_strided_slice %0 {offsets = [1, 0], sizes = [1, 32], strides = [1, 1]} : vector<10x32xf32> to vector<1x32xf32>
    %31 = vector.broadcast %30 : vector<1x32xf32> to vector<64x32xf32>
    %32 = arith.addf %29, %31 : vector<64x32xf32>
    %c160 = arith.constant 160 : index
    %c0_17 = arith.constant 0 : index
    %33 = vector.load %arg2[%c160, %c0_17] : memref<544x32xbf16, #tpu.memory_space<vmem>>, vector<32x32xbf16>
    %c192 = arith.constant 192 : index
    %c0_18 = arith.constant 0 : index
    %34 = vector.load %arg2[%c192, %c0_18] : memref<544x32xbf16, #tpu.memory_space<vmem>>, vector<64x32xbf16>
    %c8 = arith.constant 8 : index
    %c0_19 = arith.constant 0 : index
    %35 = vector.load %arg3[%c8, %c0_19] : memref<264x64xbf16, #tpu.memory_space<vmem>>, vector<64x64xbf16>
    %36 = vector.extract_strided_slice %0 {offsets = [2, 0], sizes = [1, 32], strides = [1, 1]} : vector<10x32xf32> to vector<1x32xf32>
    %37 = vector.extract_strided_slice %0 {offsets = [3, 0], sizes = [1, 32], strides = [1, 1]} : vector<10x32xf32> to vector<1x32xf32>
    %38 = vector.shape_cast %32 : vector<64x32xf32> to vector<8x8x32xf32>
    %cst_20 = arith.constant dense<0xFF800000> : vector<8x32xf32>
    %39 = vector.multi_reduction <maximumf>, %38, %cst_20 [1] : vector<8x8x32xf32> to vector<8x32xf32>
    %cst_21 = arith.constant 0.000000e+00 : f32
    %40 = vector.broadcast %cst_21 : f32 to vector<8x32xf32>
    %41 = arith.cmpf ogt, %39, %40 : vector<8x32xf32>
    %cst_22 = arith.constant 0.00999999977 : f32
    %42 = vector.broadcast %cst_22 : f32 to vector<8x32xf32>
    %43 = arith.mulf %42, %39 : vector<8x32xf32>
    %44 = arith.select %41, %39, %43 : vector<8x32xi1>, vector<8x32xf32>
    %45 = arith.truncf %44 : vector<8x32xf32> to vector<8x32xbf16>
    %46 = arith.truncf %39 : vector<8x32xf32> to vector<8x32xbf16>
    %47 = tpu.concatenate %45, %46 in 1 : vector<8x32xbf16>, vector<8x32xbf16> -> vector<8x64xbf16>
    %cst_23 = arith.constant dense<0.000000e+00> : vector<8x64xf32>
    %48 = tpu.matmul %47, %35, %cst_23 {dimension_numbers = #tpu.dot_dimension_numbers<[1], [0], [0], [1], [0, 0, 1, 1], [], []>} : vector<8x64xbf16>, vector<64x64xbf16>, vector<8x64xf32> -> vector<8x64xf32>
    %49 = vector.extract_strided_slice %48 {offsets = [0, 0], sizes = [8, 32], strides = [1, 1]} : vector<8x64xf32> to vector<8x32xf32>
    %50 = vector.broadcast %36 : vector<1x32xf32> to vector<8x32xf32>
    %51 = arith.addf %49, %50 : vector<8x32xf32>
    %52 = vector.extract_strided_slice %48 {offsets = [0, 32], sizes = [8, 32], strides = [1, 1]} : vector<8x64xf32> to vector<8x32xf32>
    %cst_24 = arith.constant 0.000000e+00 : f32
    %53 = vector.broadcast %cst_24 : f32 to vector<64x32xf32>
    %54 = arith.cmpf ogt, %32, %53 : vector<64x32xf32>
    %cst_25 = arith.constant 0.00999999977 : f32
    %55 = vector.broadcast %cst_25 : f32 to vector<64x32xf32>
    %56 = arith.mulf %55, %32 : vector<64x32xf32>
    %57 = arith.select %54, %32, %56 : vector<64x32xi1>, vector<64x32xf32>
    %58 = arith.truncf %57 : vector<64x32xf32> to vector<64x32xbf16>
    %cst_26 = arith.constant dense<0.000000e+00> : vector<64x32xf32>
    %59 = tpu.matmul %58, %33, %cst_26 {dimension_numbers = #tpu.dot_dimension_numbers<[1], [0], [0], [1], [0, 0, 1, 1], [], []>} : vector<64x32xbf16>, vector<32x32xbf16>, vector<64x32xf32> -> vector<64x32xf32>
    %60 = vector.shape_cast %59 : vector<64x32xf32> to vector<8x8x32xf32>
    %61 = vector.shape_cast %51 : vector<8x32xf32> to vector<8x1x32xf32>
    %62 = vector.broadcast %61 : vector<8x1x32xf32> to vector<8x8x32xf32>
    %63 = arith.addf %60, %62 : vector<8x8x32xf32>
    %64 = vector.shape_cast %63 : vector<8x8x32xf32> to vector<64x32xf32>
    %cst_27 = arith.constant 0.000000e+00 : f32
    %65 = vector.broadcast %cst_27 : f32 to vector<64x32xf32>
    %66 = arith.cmpf ogt, %64, %65 : vector<64x32xf32>
    %cst_28 = arith.constant 0.00999999977 : f32
    %67 = vector.broadcast %cst_28 : f32 to vector<64x32xf32>
    %68 = arith.mulf %67, %64 : vector<64x32xf32>
    %69 = arith.select %66, %64, %68 : vector<64x32xi1>, vector<64x32xf32>
    %70 = arith.truncf %32 : vector<64x32xf32> to vector<64x32xbf16>
    %71 = arith.truncf %69 : vector<64x32xf32> to vector<64x32xbf16>
    %72 = tpu.concatenate %70, %71 in 1 : vector<64x32xbf16>, vector<64x32xbf16> -> vector<64x64xbf16>
    %cst_29 = arith.constant dense<0.000000e+00> : vector<64x32xf32>
    %73 = tpu.matmul %72, %34, %cst_29 {dimension_numbers = #tpu.dot_dimension_numbers<[1], [0], [0], [1], [0, 0, 1, 1], [], []>} : vector<64x64xbf16>, vector<64x32xbf16>, vector<64x32xf32> -> vector<64x32xf32>
    %74 = vector.broadcast %37 : vector<1x32xf32> to vector<64x32xf32>
    %75 = arith.addf %73, %74 : vector<64x32xf32>
    %76 = vector.shape_cast %75 : vector<64x32xf32> to vector<8x8x32xf32>
    %77 = vector.shape_cast %52 : vector<8x32xf32> to vector<8x1x32xf32>
    %78 = vector.broadcast %77 : vector<8x1x32xf32> to vector<8x8x32xf32>
    %79 = arith.addf %76, %78 : vector<8x8x32xf32>
    %80 = vector.shape_cast %79 : vector<8x8x32xf32> to vector<64x32xf32>
    %c256 = arith.constant 256 : index
    %c0_30 = arith.constant 0 : index
    %81 = vector.load %arg2[%c256, %c0_30] : memref<544x32xbf16, #tpu.memory_space<vmem>>, vector<32x32xbf16>
    %c288 = arith.constant 288 : index
    %c0_31 = arith.constant 0 : index
    %82 = vector.load %arg2[%c288, %c0_31] : memref<544x32xbf16, #tpu.memory_space<vmem>>, vector<64x32xbf16>
    %c72 = arith.constant 72 : index
    %c0_32 = arith.constant 0 : index
    %83 = vector.load %arg3[%c72, %c0_32] : memref<264x64xbf16, #tpu.memory_space<vmem>>, vector<64x64xbf16>
    %84 = vector.extract_strided_slice %0 {offsets = [4, 0], sizes = [1, 32], strides = [1, 1]} : vector<10x32xf32> to vector<1x32xf32>
    %85 = vector.extract_strided_slice %0 {offsets = [5, 0], sizes = [1, 32], strides = [1, 1]} : vector<10x32xf32> to vector<1x32xf32>
    %86 = vector.shape_cast %80 : vector<64x32xf32> to vector<8x8x32xf32>
    %cst_33 = arith.constant dense<0xFF800000> : vector<8x32xf32>
    %87 = vector.multi_reduction <maximumf>, %86, %cst_33 [1] : vector<8x8x32xf32> to vector<8x32xf32>
    %cst_34 = arith.constant 0.000000e+00 : f32
    %88 = vector.broadcast %cst_34 : f32 to vector<8x32xf32>
    %89 = arith.cmpf ogt, %87, %88 : vector<8x32xf32>
    %cst_35 = arith.constant 0.00999999977 : f32
    %90 = vector.broadcast %cst_35 : f32 to vector<8x32xf32>
    %91 = arith.mulf %90, %87 : vector<8x32xf32>
    %92 = arith.select %89, %87, %91 : vector<8x32xi1>, vector<8x32xf32>
    %93 = arith.truncf %92 : vector<8x32xf32> to vector<8x32xbf16>
    %94 = arith.truncf %87 : vector<8x32xf32> to vector<8x32xbf16>
    %95 = tpu.concatenate %93, %94 in 1 : vector<8x32xbf16>, vector<8x32xbf16> -> vector<8x64xbf16>
    %cst_36 = arith.constant dense<0.000000e+00> : vector<8x64xf32>
    %96 = tpu.matmul %95, %83, %cst_36 {dimension_numbers = #tpu.dot_dimension_numbers<[1], [0], [0], [1], [0, 0, 1, 1], [], []>} : vector<8x64xbf16>, vector<64x64xbf16>, vector<8x64xf32> -> vector<8x64xf32>
    %97 = vector.extract_strided_slice %96 {offsets = [0, 0], sizes = [8, 32], strides = [1, 1]} : vector<8x64xf32> to vector<8x32xf32>
    %98 = vector.broadcast %84 : vector<1x32xf32> to vector<8x32xf32>
    %99 = arith.addf %97, %98 : vector<8x32xf32>
    %100 = vector.extract_strided_slice %96 {offsets = [0, 32], sizes = [8, 32], strides = [1, 1]} : vector<8x64xf32> to vector<8x32xf32>
    %cst_37 = arith.constant 0.000000e+00 : f32
    %101 = vector.broadcast %cst_37 : f32 to vector<64x32xf32>
    %102 = arith.cmpf ogt, %80, %101 : vector<64x32xf32>
    %cst_38 = arith.constant 0.00999999977 : f32
    %103 = vector.broadcast %cst_38 : f32 to vector<64x32xf32>
    %104 = arith.mulf %103, %80 : vector<64x32xf32>
    %105 = arith.select %102, %80, %104 : vector<64x32xi1>, vector<64x32xf32>
    %106 = arith.truncf %105 : vector<64x32xf32> to vector<64x32xbf16>
    %cst_39 = arith.constant dense<0.000000e+00> : vector<64x32xf32>
    %107 = tpu.matmul %106, %81, %cst_39 {dimension_numbers = #tpu.dot_dimension_numbers<[1], [0], [0], [1], [0, 0, 1, 1], [], []>} : vector<64x32xbf16>, vector<32x32xbf16>, vector<64x32xf32> -> vector<64x32xf32>
    %108 = vector.shape_cast %107 : vector<64x32xf32> to vector<8x8x32xf32>
    %109 = vector.shape_cast %99 : vector<8x32xf32> to vector<8x1x32xf32>
    %110 = vector.broadcast %109 : vector<8x1x32xf32> to vector<8x8x32xf32>
    %111 = arith.addf %108, %110 : vector<8x8x32xf32>
    %112 = vector.shape_cast %111 : vector<8x8x32xf32> to vector<64x32xf32>
    %cst_40 = arith.constant 0.000000e+00 : f32
    %113 = vector.broadcast %cst_40 : f32 to vector<64x32xf32>
    %114 = arith.cmpf ogt, %112, %113 : vector<64x32xf32>
    %cst_41 = arith.constant 0.00999999977 : f32
    %115 = vector.broadcast %cst_41 : f32 to vector<64x32xf32>
    %116 = arith.mulf %115, %112 : vector<64x32xf32>
    %117 = arith.select %114, %112, %116 : vector<64x32xi1>, vector<64x32xf32>
    %118 = arith.truncf %80 : vector<64x32xf32> to vector<64x32xbf16>
    %119 = arith.truncf %117 : vector<64x32xf32> to vector<64x32xbf16>
    %120 = tpu.concatenate %118, %119 in 1 : vector<64x32xbf16>, vector<64x32xbf16> -> vector<64x64xbf16>
    %cst_42 = arith.constant dense<0.000000e+00> : vector<64x32xf32>
    %121 = tpu.matmul %120, %82, %cst_42 {dimension_numbers = #tpu.dot_dimension_numbers<[1], [0], [0], [1], [0, 0, 1, 1], [], []>} : vector<64x64xbf16>, vector<64x32xbf16>, vector<64x32xf32> -> vector<64x32xf32>
    %122 = vector.broadcast %85 : vector<1x32xf32> to vector<64x32xf32>
    %123 = arith.addf %121, %122 : vector<64x32xf32>
    %124 = vector.shape_cast %123 : vector<64x32xf32> to vector<8x8x32xf32>
    %125 = vector.shape_cast %100 : vector<8x32xf32> to vector<8x1x32xf32>
    %126 = vector.broadcast %125 : vector<8x1x32xf32> to vector<8x8x32xf32>
    %127 = arith.addf %124, %126 : vector<8x8x32xf32>
    %128 = vector.shape_cast %127 : vector<8x8x32xf32> to vector<64x32xf32>
    %c352 = arith.constant 352 : index
    %c0_43 = arith.constant 0 : index
    %129 = vector.load %arg2[%c352, %c0_43] : memref<544x32xbf16, #tpu.memory_space<vmem>>, vector<32x32xbf16>
    %c384 = arith.constant 384 : index
    %c0_44 = arith.constant 0 : index
    %130 = vector.load %arg2[%c384, %c0_44] : memref<544x32xbf16, #tpu.memory_space<vmem>>, vector<64x32xbf16>
    %c136 = arith.constant 136 : index
    %c0_45 = arith.constant 0 : index
    %131 = vector.load %arg3[%c136, %c0_45] : memref<264x64xbf16, #tpu.memory_space<vmem>>, vector<64x64xbf16>
    %132 = vector.extract_strided_slice %0 {offsets = [6, 0], sizes = [1, 32], strides = [1, 1]} : vector<10x32xf32> to vector<1x32xf32>
    %133 = vector.extract_strided_slice %0 {offsets = [7, 0], sizes = [1, 32], strides = [1, 1]} : vector<10x32xf32> to vector<1x32xf32>
    %134 = vector.shape_cast %128 : vector<64x32xf32> to vector<8x8x32xf32>
    %cst_46 = arith.constant dense<0xFF800000> : vector<8x32xf32>
    %135 = vector.multi_reduction <maximumf>, %134, %cst_46 [1] : vector<8x8x32xf32> to vector<8x32xf32>
    %cst_47 = arith.constant 0.000000e+00 : f32
    %136 = vector.broadcast %cst_47 : f32 to vector<8x32xf32>
    %137 = arith.cmpf ogt, %135, %136 : vector<8x32xf32>
    %cst_48 = arith.constant 0.00999999977 : f32
    %138 = vector.broadcast %cst_48 : f32 to vector<8x32xf32>
    %139 = arith.mulf %138, %135 : vector<8x32xf32>
    %140 = arith.select %137, %135, %139 : vector<8x32xi1>, vector<8x32xf32>
    %141 = arith.truncf %140 : vector<8x32xf32> to vector<8x32xbf16>
    %142 = arith.truncf %135 : vector<8x32xf32> to vector<8x32xbf16>
    %143 = tpu.concatenate %141, %142 in 1 : vector<8x32xbf16>, vector<8x32xbf16> -> vector<8x64xbf16>
    %cst_49 = arith.constant dense<0.000000e+00> : vector<8x64xf32>
    %144 = tpu.matmul %143, %131, %cst_49 {dimension_numbers = #tpu.dot_dimension_numbers<[1], [0], [0], [1], [0, 0, 1, 1], [], []>} : vector<8x64xbf16>, vector<64x64xbf16>, vector<8x64xf32> -> vector<8x64xf32>
    %145 = vector.extract_strided_slice %144 {offsets = [0, 0], sizes = [8, 32], strides = [1, 1]} : vector<8x64xf32> to vector<8x32xf32>
    %146 = vector.broadcast %132 : vector<1x32xf32> to vector<8x32xf32>
    %147 = arith.addf %145, %146 : vector<8x32xf32>
    %148 = vector.extract_strided_slice %144 {offsets = [0, 32], sizes = [8, 32], strides = [1, 1]} : vector<8x64xf32> to vector<8x32xf32>
    %cst_50 = arith.constant 0.000000e+00 : f32
    %149 = vector.broadcast %cst_50 : f32 to vector<64x32xf32>
    %150 = arith.cmpf ogt, %128, %149 : vector<64x32xf32>
    %cst_51 = arith.constant 0.00999999977 : f32
    %151 = vector.broadcast %cst_51 : f32 to vector<64x32xf32>
    %152 = arith.mulf %151, %128 : vector<64x32xf32>
    %153 = arith.select %150, %128, %152 : vector<64x32xi1>, vector<64x32xf32>
    %154 = arith.truncf %153 : vector<64x32xf32> to vector<64x32xbf16>
    %cst_52 = arith.constant dense<0.000000e+00> : vector<64x32xf32>
    %155 = tpu.matmul %154, %129, %cst_52 {dimension_numbers = #tpu.dot_dimension_numbers<[1], [0], [0], [1], [0, 0, 1, 1], [], []>} : vector<64x32xbf16>, vector<32x32xbf16>, vector<64x32xf32> -> vector<64x32xf32>
    %156 = vector.shape_cast %155 : vector<64x32xf32> to vector<8x8x32xf32>
    %157 = vector.shape_cast %147 : vector<8x32xf32> to vector<8x1x32xf32>
    %158 = vector.broadcast %157 : vector<8x1x32xf32> to vector<8x8x32xf32>
    %159 = arith.addf %156, %158 : vector<8x8x32xf32>
    %160 = vector.shape_cast %159 : vector<8x8x32xf32> to vector<64x32xf32>
    %cst_53 = arith.constant 0.000000e+00 : f32
    %161 = vector.broadcast %cst_53 : f32 to vector<64x32xf32>
    %162 = arith.cmpf ogt, %160, %161 : vector<64x32xf32>
    %cst_54 = arith.constant 0.00999999977 : f32
    %163 = vector.broadcast %cst_54 : f32 to vector<64x32xf32>
    %164 = arith.mulf %163, %160 : vector<64x32xf32>
    %165 = arith.select %162, %160, %164 : vector<64x32xi1>, vector<64x32xf32>
    %166 = arith.truncf %128 : vector<64x32xf32> to vector<64x32xbf16>
    %167 = arith.truncf %165 : vector<64x32xf32> to vector<64x32xbf16>
    %168 = tpu.concatenate %166, %167 in 1 : vector<64x32xbf16>, vector<64x32xbf16> -> vector<64x64xbf16>
    %cst_55 = arith.constant dense<0.000000e+00> : vector<64x32xf32>
    %169 = tpu.matmul %168, %130, %cst_55 {dimension_numbers = #tpu.dot_dimension_numbers<[1], [0], [0], [1], [0, 0, 1, 1], [], []>} : vector<64x64xbf16>, vector<64x32xbf16>, vector<64x32xf32> -> vector<64x32xf32>
    %170 = vector.broadcast %133 : vector<1x32xf32> to vector<64x32xf32>
    %171 = arith.addf %169, %170 : vector<64x32xf32>
    %172 = vector.shape_cast %171 : vector<64x32xf32> to vector<8x8x32xf32>
    %173 = vector.shape_cast %148 : vector<8x32xf32> to vector<8x1x32xf32>
    %174 = vector.broadcast %173 : vector<8x1x32xf32> to vector<8x8x32xf32>
    %175 = arith.addf %172, %174 : vector<8x8x32xf32>
    %176 = vector.shape_cast %175 : vector<8x8x32xf32> to vector<64x32xf32>
    %c448 = arith.constant 448 : index
    %c0_56 = arith.constant 0 : index
    %177 = vector.load %arg2[%c448, %c0_56] : memref<544x32xbf16, #tpu.memory_space<vmem>>, vector<32x32xbf16>
    %c480 = arith.constant 480 : index
    %c0_57 = arith.constant 0 : index
    %178 = vector.load %arg2[%c480, %c0_57] : memref<544x32xbf16, #tpu.memory_space<vmem>>, vector<64x32xbf16>
    %c200 = arith.constant 200 : index
    %c0_58 = arith.constant 0 : index
    %179 = vector.load %arg3[%c200, %c0_58] : memref<264x64xbf16, #tpu.memory_space<vmem>>, vector<64x64xbf16>
    %180 = vector.extract_strided_slice %0 {offsets = [8, 0], sizes = [1, 32], strides = [1, 1]} : vector<10x32xf32> to vector<1x32xf32>
    %181 = vector.extract_strided_slice %0 {offsets = [9, 0], sizes = [1, 32], strides = [1, 1]} : vector<10x32xf32> to vector<1x32xf32>
    %182 = vector.shape_cast %176 : vector<64x32xf32> to vector<8x8x32xf32>
    %cst_59 = arith.constant dense<0xFF800000> : vector<8x32xf32>
    %183 = vector.multi_reduction <maximumf>, %182, %cst_59 [1] : vector<8x8x32xf32> to vector<8x32xf32>
    %cst_60 = arith.constant 0.000000e+00 : f32
    %184 = vector.broadcast %cst_60 : f32 to vector<8x32xf32>
    %185 = arith.cmpf ogt, %183, %184 : vector<8x32xf32>
    %cst_61 = arith.constant 0.00999999977 : f32
    %186 = vector.broadcast %cst_61 : f32 to vector<8x32xf32>
    %187 = arith.mulf %186, %183 : vector<8x32xf32>
    %188 = arith.select %185, %183, %187 : vector<8x32xi1>, vector<8x32xf32>
    %189 = arith.truncf %188 : vector<8x32xf32> to vector<8x32xbf16>
    %190 = arith.truncf %183 : vector<8x32xf32> to vector<8x32xbf16>
    %191 = tpu.concatenate %189, %190 in 1 : vector<8x32xbf16>, vector<8x32xbf16> -> vector<8x64xbf16>
    %cst_62 = arith.constant dense<0.000000e+00> : vector<8x64xf32>
    %192 = tpu.matmul %191, %179, %cst_62 {dimension_numbers = #tpu.dot_dimension_numbers<[1], [0], [0], [1], [0, 0, 1, 1], [], []>} : vector<8x64xbf16>, vector<64x64xbf16>, vector<8x64xf32> -> vector<8x64xf32>
    %193 = vector.extract_strided_slice %192 {offsets = [0, 0], sizes = [8, 32], strides = [1, 1]} : vector<8x64xf32> to vector<8x32xf32>
    %194 = vector.broadcast %180 : vector<1x32xf32> to vector<8x32xf32>
    %195 = arith.addf %193, %194 : vector<8x32xf32>
    %196 = vector.extract_strided_slice %192 {offsets = [0, 32], sizes = [8, 32], strides = [1, 1]} : vector<8x64xf32> to vector<8x32xf32>
    %cst_63 = arith.constant 0.000000e+00 : f32
    %197 = vector.broadcast %cst_63 : f32 to vector<64x32xf32>
    %198 = arith.cmpf ogt, %176, %197 : vector<64x32xf32>
    %cst_64 = arith.constant 0.00999999977 : f32
    %199 = vector.broadcast %cst_64 : f32 to vector<64x32xf32>
    %200 = arith.mulf %199, %176 : vector<64x32xf32>
    %201 = arith.select %198, %176, %200 : vector<64x32xi1>, vector<64x32xf32>
    %202 = arith.truncf %201 : vector<64x32xf32> to vector<64x32xbf16>
    %cst_65 = arith.constant dense<0.000000e+00> : vector<64x32xf32>
    %203 = tpu.matmul %202, %177, %cst_65 {dimension_numbers = #tpu.dot_dimension_numbers<[1], [0], [0], [1], [0, 0, 1, 1], [], []>} : vector<64x32xbf16>, vector<32x32xbf16>, vector<64x32xf32> -> vector<64x32xf32>
    %204 = vector.shape_cast %203 : vector<64x32xf32> to vector<8x8x32xf32>
    %205 = vector.shape_cast %195 : vector<8x32xf32> to vector<8x1x32xf32>
    %206 = vector.broadcast %205 : vector<8x1x32xf32> to vector<8x8x32xf32>
    %207 = arith.addf %204, %206 : vector<8x8x32xf32>
    %208 = vector.shape_cast %207 : vector<8x8x32xf32> to vector<64x32xf32>
    %cst_66 = arith.constant 0.000000e+00 : f32
    %209 = vector.broadcast %cst_66 : f32 to vector<64x32xf32>
    %210 = arith.cmpf ogt, %208, %209 : vector<64x32xf32>
    %cst_67 = arith.constant 0.00999999977 : f32
    %211 = vector.broadcast %cst_67 : f32 to vector<64x32xf32>
    %212 = arith.mulf %211, %208 : vector<64x32xf32>
    %213 = arith.select %210, %208, %212 : vector<64x32xi1>, vector<64x32xf32>
    %214 = arith.truncf %176 : vector<64x32xf32> to vector<64x32xbf16>
    %215 = arith.truncf %213 : vector<64x32xf32> to vector<64x32xbf16>
    %216 = tpu.concatenate %214, %215 in 1 : vector<64x32xbf16>, vector<64x32xbf16> -> vector<64x64xbf16>
    %cst_68 = arith.constant dense<0.000000e+00> : vector<64x32xf32>
    %217 = tpu.matmul %216, %178, %cst_68 {dimension_numbers = #tpu.dot_dimension_numbers<[1], [0], [0], [1], [0, 0, 1, 1], [], []>} : vector<64x64xbf16>, vector<64x32xbf16>, vector<64x32xf32> -> vector<64x32xf32>
    %218 = vector.broadcast %181 : vector<1x32xf32> to vector<64x32xf32>
    %219 = arith.addf %217, %218 : vector<64x32xf32>
    %220 = vector.shape_cast %219 : vector<64x32xf32> to vector<8x8x32xf32>
    %221 = vector.shape_cast %196 : vector<8x32xf32> to vector<8x1x32xf32>
    %222 = vector.broadcast %221 : vector<8x1x32xf32> to vector<8x8x32xf32>
    %223 = arith.addf %220, %222 : vector<8x8x32xf32>
    %224 = vector.shape_cast %223 : vector<8x8x32xf32> to vector<64x32xf32>
    %225 = vector.shape_cast %224 : vector<64x32xf32> to vector<8x8x32xf32>
    %cst_69 = arith.constant dense<0xFF800000> : vector<8x32xf32>
    %226 = vector.multi_reduction <maximumf>, %225, %cst_69 [1] : vector<8x8x32xf32> to vector<8x32xf32>
    %cst_70 = arith.constant 0.000000e+00 : f32
    %227 = vector.broadcast %cst_70 : f32 to vector<8x32xf32>
    %228 = arith.cmpf ogt, %226, %227 : vector<8x32xf32>
    %cst_71 = arith.constant 0.00999999977 : f32
    %229 = vector.broadcast %cst_71 : f32 to vector<8x32xf32>
    %230 = arith.mulf %229, %226 : vector<8x32xf32>
    %231 = arith.select %228, %226, %230 : vector<8x32xi1>, vector<8x32xf32>
    %c0_72 = arith.constant 0 : index
    %c0_73 = arith.constant 0 : index
    %232 = vector.load %arg6[%c0_72, %c0_73] : memref<32x32xbf16, #tpu.memory_space<vmem>>, vector<32x32xbf16>
    %233 = arith.truncf %231 : vector<8x32xf32> to vector<8x32xbf16>
    %cst_74 = arith.constant dense<0.000000e+00> : vector<8x32xf32>
    %234 = tpu.matmul %233, %232, %cst_74 {dimension_numbers = #tpu.dot_dimension_numbers<[1], [0], [0], [1], [0, 0, 1, 1], [], []>} : vector<8x32xbf16>, vector<32x32xbf16>, vector<8x32xf32> -> vector<8x32xf32>
    %c0_75 = arith.constant 0 : index
    %c0_76 = arith.constant 0 : index
    %235 = vector.load %arg7[%c0_75, %c0_76] : memref<1x32xf32, #tpu.memory_space<vmem>>, vector<1x32xf32>
    %236 = vector.broadcast %235 : vector<1x32xf32> to vector<8x32xf32>
    %237 = arith.addf %234, %236 : vector<8x32xf32>
    %c0_77 = arith.constant 0 : index
    %c0_78 = arith.constant 0 : index
    %238 = vector.load %arg8[%c0_77, %c0_78] : memref<8x32xf32, #tpu.memory_space<vmem>>, vector<8x32xf32>
    tpu.vector_store %arg8[%c0_77, %c0_78], %237 {strides = array<i32>} : memref<8x32xf32, #tpu.memory_space<vmem>>, vector<8x32xf32>,
    return
  }
  func.func @transform_0(%arg0: i32) -> (i32, i32, i32) {
    %c0_i32 = arith.constant 0 : i32
    %c0_i32_0 = arith.constant 0 : i32
    %c0_i32_1 = arith.constant 0 : i32
    return %arg0, %c0_i32, %c0_i32_0 : i32, i32, i32
  }
  func.func @transform_1(%arg0: i32) -> (i32, i32) {
    %c0_i32 = arith.constant 0 : i32
    %c0_i32_0 = arith.constant 0 : i32
    %c0_i32_1 = arith.constant 0 : i32
    return %c0_i32, %c0_i32_0 : i32, i32
  }
  func.func @transform_2(%arg0: i32) -> (i32, i32) {
    %c0_i32 = arith.constant 0 : i32
    %c0_i32_0 = arith.constant 0 : i32
    %c0_i32_1 = arith.constant 0 : i32
    return %c0_i32, %c0_i32_0 : i32, i32
  }
  func.func @transform_3(%arg0: i32) -> (i32, i32) {
    %c0_i32 = arith.constant 0 : i32
    %c0_i32_0 = arith.constant 0 : i32
    %c0_i32_1 = arith.constant 0 : i32
    return %c0_i32, %c0_i32_0 : i32, i32
  }
  func.func @transform_4(%arg0: i32) -> (i32, i32) {
    %c0_i32 = arith.constant 0 : i32
    %c0_i32_0 = arith.constant 0 : i32
    %c0_i32_1 = arith.constant 0 : i32
    return %c0_i32, %c0_i32_0 : i32, i32
  }
  func.func @transform_5(%arg0: i32) -> (i32, i32) {
    %c0_i32 = arith.constant 0 : i32
    %c0_i32_0 = arith.constant 0 : i32
    %c0_i32_1 = arith.constant 0 : i32
    return %c0_i32, %c0_i32_0 : i32, i32
  }
  func.func @transform_6(%arg0: i32) -> (i32, i32) {
    %c0_i32 = arith.constant 0 : i32
    %c0_i32_0 = arith.constant 0 : i32
    %c0_i32_1 = arith.constant 0 : i32
    return %c0_i32, %c0_i32_0 : i32, i32
  }
  func.func @transform_7(%arg0: i32) -> (i32, i32) {
    %c0_i32 = arith.constant 0 : i32
    %c0_i32_0 = arith.constant 0 : i32
    return %arg0, %c0_i32 : i32, i32
  }
}

</mosaic_0001>

<bundles_post_ra>
// kernel: tpu_custom_call.1
= control target key start
LH: loop header
LB: loop body
LE: loop exit
PB: predicated region body
PF: predicated region fallthrough
CT: control target
= control target key end

     0   :  { %vm63_vm0 = vcmask 1043456   ;;  %vm50_vm1 = vcmask 64512   ;;  %s5286_s0 = inlined_call_operand.vmem [shape: f32[8,8,8], index: 0, kind: input, shape index: {}]   ;;  %s5287_s1 = inlined_call_operand.vmem [shape: bf16[544,32], index: 1, kind: input, shape index: {}]   ;;  %s5288_s2 = inlined_call_operand.vmem [shape: bf16[264,64], index: 2, kind: input, shape index: {}]   ;;  %s5289_s3 = inlined_call_operand.vmem [shape: f32[10,32], index: 3, kind: input, shape index: {}]   ;;  %s5290_s4 = inlined_call_operand.vmem [shape: f32[1,64], index: 4, kind: input, shape index: {}]   ;;  %s5291_s5 = inlined_call_operand.vmem [shape: bf16[32,32], index: 5, kind: input, shape index: {}]   ;;  %s5292_s6 = inlined_call_operand.vmem [shape: f32[1,32], index: 6, kind: input, shape index: {}]   ;;  %s5293_s7 = inlined_call_operand.hbm [shape: f32[8,32], index: 7, kind: output, shape index: {}]  }
   0x1   :  { %v38_v0 = vld [vmem:[%s5288_s2] sm:$0xf]  ;;  %v31_v2 = vld [vmem:[%s5286_s0 + $0x8] sm:$0xff]  ;;  %v32_v5 = vld [vmem:[%s5286_s0 + $0x10] sm:$0xff] }
   0x2   :  { %v30_v1 = vld [vmem:[%s5286_s0] sm:$0xff]  ;;  %3980 = vmatprep.subr.msk.bf16.mxu0 %vm63_vm0, %v38_v0  ;;  %v65_v3 = vsel %vm63_vm0, %v38_v0, 0  ;;  %v33_v6 = vld [vmem:[%s5286_s0 + $0x18] sm:$0xff]  ;;  %v35_v9 = vld [vmem:[%s5286_s0 + $0x28] sm:$0xff] }
   0x3   :  { %v39_v4 = vpack.c.bf16 %v31_v2, %v30_v1  ;;  %v34_v7 = vld [vmem:[%s5286_s0 + $0x20] sm:$0xff]  ;;  %3767 = vmatpush3.bf16.msra.mxu0 %v65_v3  ;;  %v40_v8 = vpack.c.bf16 %v33_v6, %v32_v5  ;;  %v3988_v11 = vld [vmem:[%s5287_s1 + $0x18] sm:$0xff]   ;;  %v36_v12 = vld [vmem:[%s5286_s0 + $0x30] sm:$0xff] }
   0x4   :  { %v41_v10 = vpack.c.bf16 %v35_v9, %v34_v7  ;;  %v37_v13 = vld [vmem:[%s5286_s0 + $0x38] sm:$0xff]  ;;  %3776 = vmatprep.subr.bf16.mxu1 %v3988_v11 }
   0x5   :  { %3768 = vmatprep.mubr.msk.bf16.mxu0 %vm50_vm1, %v39_v4  ;;  %3777 = vmatpush3.bf16.msra.mxu1 %v3988_v11  ;;  %v42_v14 = vpack.c.bf16 %v37_v13, %v36_v12 }
   0x6   :  { %3769 = vmatmul.mubr.msk.bf16.vlgmr.msra.gmra.mxu0 %vm50_vm1, %v40_v8 }
   0x7   :  { %3772 = vmatprep.mubr.msk.bf16.mxu0 %vm50_vm1, %v41_v10 }
   0xe   :  { %3773 = vmatmul.mubr.msk.bf16.gmra.mxu0 %vm50_vm1, %v42_v14 }
   0xf   :  { %12 = vsyncpa [#allocation3], 0  ;;  %v3989_v15 = vld [vmem:[%s5287_s1 + $0x10] sm:$0xff]   ;;  %v3990_v16 = vld [vmem:[%s5287_s1 + $0x8] sm:$0xff]   ;;  %vm5294_vm6 = vcmask 523264   ;;  %v168_v0 = vlaneseq  ;;  %s4063_s18 = smov 64  }
  0x10   :  { %3778 = vmatprep.subr.bf16.mxu1 %v3989_v15  ;;  %v3991_v17 = vld [vmem:[%s5287_s1] sm:$0xff]   ;;  %v3992_v59 = vld [vmem:[%s5287_s1 + $0x48] sm:$0xff]   ;;  %v3994_v61 = vld [vmem:[%s5287_s1 + $0x38] sm:$0xff]   ;;  %s4068_s15 = smov 96   ;;  %s4069_s10 = smov [#allocation2]  }
  0x11   :  { %3779 = vmatpush3.bf16.msra.mxu1 %v3989_v15  ;;  %v3561_v19 = vld [vmem:[%s5290_s4] ss:$0 sm:$0xff]  ;;  %3792 = vmatprep.subr.bf16.mxu0 %v3992_v59  ;;  %v3995_v62 = vld [vmem:[%s5287_s1 + $0x30] sm:$0xff]   ;;  %v3996_v63 = vld [vmem:[%s5287_s1 + $0x28] sm:$0xff]   ;;  %v4223_v1 = vshrl.u32 %v168_v0, 7  ;;  %s4066_s4 = smov 32  }
  0x12   :  { %3780 = vmatprep.subr.bf16.mxu1 %v3990_v16  ;;  %v3993_v60 = vld [vmem:[%s5287_s1 + $0x40] sm:$0xff]   ;;  %3793 = vmatpush3.bf16.msra.mxu0 %v3992_v59  ;;  %s3553_s11 = sshll.u32 %s4069_s10, 4  ;;  %s3554_s11 = int_to_ptr.vmem [resolvable:$true] %s3553_s11 }
  0x13   :  { %3794 = vmatprep.subr.bf16.mxu0 %v3993_v60  ;;  %v4226_v2 = vsub.s32 0, %v4223_v1  ;;  %v4231_v3 = vld [vmem:[%s5289_s3] sm:$0xff]  ;;  %s4041_s12 = scalar_lea.vmem %s3554_s11, 128  ;;  %p4046_p1 = scmp.lt.s32.totalorder %s3554_s11, %s3554_s11 }
  0x14   :  { %v3997_v6 = vld [vmem:[%s5287_s1 + $0x20] sm:$0xff]   ;;  %p4042_p0 = scmp.ne.s32.totalorder %s3554_s11, %s4041_s12  ;;  %p4047_p2 = scmp.lt.s32.totalorder %s4041_s12, %s4041_s12 }
  0x15   :  { %3781 = vmatpush3.bf16.msra.mxu1 %v3990_v16  ;;  %v171_v5 = vrot.slane %v4231_v3, %v4226_v2 }
  0x16   :  { %3782 = vmatprep.subr.bf16.mxu1 %v3991_v17  ;;  %3795 = vmatpush3.bf16.msra.mxu0 %v3993_v60  ;;  %p4048_p3 = por %p4047_p2, %p4046_p1 }
  0x17   :  { %3796 = vmatprep.subr.bf16.mxu0 %v3994_v61 }
  0x18   :  { %p4049_p4 = pnand %p4048_p3, %p4042_p0 }
  0x19   :  { %3783 = vmatpush3.bf16.msra.mxu1 %v3991_v17 }
  0x1a   :  { %3797 = vmatpush3.bf16.msra.mxu0 %v3994_v61 }
  0x1b   :  { %3798 = vmatprep.subr.bf16.mxu0 %v3995_v62 }
  0x1e   :  { %3799 = vmatpush3.bf16.msra.mxu0 %v3995_v62 }
  0x1f   :  { %3800 = vmatprep.subr.bf16.mxu0 %v3996_v63 }
  0x22   :  { %3801 = vmatpush3.bf16.msra.mxu0 %v3996_v63 }
  0x23   :  { %3802 = vmatprep.subr.bf16.mxu0 %v3997_v6 }
  0x26   :  { %3803 = vmatpush3.bf16.msra.mxu0 %v3997_v6 }
  0xc6   :  { %v3770_v18 = vpop.f32.mrf.mxu0 }
  0xc7   :  { %v4158_v22 = vadd.f32 %v3770_v18, %v3561_v19 }
  0xc8   :  { %v101_v20 = vpop.f32.mrf.mxu0 }
  0xc9   :  { %v4156_v21 = vadd.f32 %v3561_v19, %v101_v20  ;;  %v142_v29 = vmul.f32 0.01, %v4158_v22  ;;  %vm134_vm4 = vcmp.gt.f32.partialorder %v4158_v22, 0.0 }
  0xca   :  { %v3771_v23 = vpop.f32.mrf.mxu0 }
  0xcb   :  { %v4160_v24 = vadd.f32 %v3771_v23, %v3561_v19  ;;  %v140_v28 = vmul.f32 0.01, %v4156_v21  ;;  %vm132_vm3 = vcmp.gt.f32.partialorder %v4156_v21, 0.0  ;;  %v150_v42 = vsel %vm134_vm4, %v4158_v22, %v142_v29 }
  0xcc   :  { %v104_v25 = vpop.f32.mrf.mxu0  ;;  %vm5297_vm4 = vcmask 261120  }
  0xcd   :  { %vm135_vm2 = vcmp.gt.f32.partialorder %v4160_v24, 0.0  ;;  %v143_v26 = vmul.f32 0.01, %v4160_v24  ;;  %v4164_v27 = vadd.f32 %v3561_v19, %v104_v25  ;;  %v311_v31 = vpack.c.bf16 %v4160_v24, %v4158_v22  ;;  %v3998_v22 = vld [vmem:[%s5288_s2 + $0x1c] sm:$0xff]  }
  0xce   :  { %v3774_v30 = vpop.f32.mrf.mxu0  ;;  %v148_v37 = vsel %vm132_vm3, %v4156_v21, %v140_v28  ;;  %vm382_vm3 = vcmask 785408  }
  0xcf   :  { %vm133_vm5 = vcmp.gt.f32.partialorder %v4164_v27, 0.0  ;;  %v141_v32 = vmul.f32 0.01, %v4164_v27  ;;  %v151_v34 = vsel %vm135_vm2, %v4160_v24, %v143_v26  ;;  %v310_v35 = vpack.c.bf16 %v4164_v27, %v4156_v21 }
  0xd0   :  { %v117_v33 = vpop.f32.mrf.mxu0  ;;  %v4181_v39 = vadd.f32 %v3774_v30, %v3561_v19  ;;  %v165_v44 = vpack.c.bf16 %v151_v34, %v150_v42  ;;  %v4064_v24 = vmov 0.0  }
  0xd1   :  { %v4177_v36 = vadd.f32 %v3561_v19, %v117_v33  ;;  %v149_v38 = vsel %vm133_vm5, %v4164_v27, %v141_v32  ;;  %3812 = vmatprep.subr.bf16.mxu1 %v4064_v24  ;;  %v3999_v27 = vld [vmem:[%s5288_s2 + $0x14] sm:$0xff]  }
  0xd2   :  { %v3775_v40 = vpop.f32.mrf.mxu0  ;;  %v164_v41 = vpack.c.bf16 %v149_v38, %v148_v37  ;;  %v146_v49 = vmul.f32 0.01, %v4181_v39  ;;  %vm138_vm9 = vcmp.gt.f32.partialorder %v4181_v39, 0.0 }
  0xd3   :  { %v4184_v43 = vadd.f32 %v3775_v40, %v3561_v19  ;;  %v144_v46 = vmul.f32 0.01, %v4177_v36  ;;  %vm136_vm8 = vcmp.gt.f32.partialorder %v4177_v36, 0.0 }
  0xd4   :  { %v120_v45 = vpop.f32.mrf.mxu0  ;;  %3784 = vmatprep.mubr.msk.bf16.mxu1 %vm5294_vm6, %v164_v41  ;;  %v154_v57 = vsel %vm138_vm9, %v4181_v39, %v146_v49 }
  0xd5   :  { %vm139_vm7 = vcmp.gt.f32.partialorder %v4184_v43, 0.0  ;;  %v147_v47 = vmul.f32 0.01, %v4184_v43  ;;  %v4190_v48 = vadd.f32 %v3561_v19, %v120_v45  ;;  %3785 = vmatmul.mubr.msk.bf16.vlgmr.msra.gmra.mxu1 %vm5294_vm6, %v165_v44  ;;  %v313_v50 = vpack.c.bf16 %v4184_v43, %v4181_v39 }
  0xd6   :  { %v152_v54 = vsel %vm136_vm8, %v4177_v36, %v144_v46  ;;  %3813 = vmatpush3.bf16.msra.mxu1 %v3998_v22 }
  0xd7   :  { %vm137_vm10 = vcmp.gt.f32.partialorder %v4190_v48, 0.0  ;;  %v145_v51 = vmul.f32 0.01, %v4190_v48  ;;  %v312_v52 = vpack.c.bf16 %v4190_v48, %v4177_v36  ;;  %v155_v53 = vsel %vm139_vm7, %v4184_v43, %v147_v47  ;;  %3814 = vmatprep.subr.bf16.mxu1 %v4064_v24 }
  0xd8   :  { %v167_v58 = vpack.c.bf16 %v155_v53, %v154_v57  ;;  %v344_v36 = vsub.s32 1, %v4223_v1 }
  0xd9   :  { %v153_v55 = vsel %vm137_vm10, %v4190_v48, %v145_v51  ;;  %vm589_vm10 = vcmask 1041409  }
  0xda   :  { %v166_v56 = vpack.c.bf16 %v153_v55, %v152_v54  ;;  %3815 = vmatpush3.bf16.msra.mxu1 %v3999_v27  ;;  %v345_v39 = vrot.slane %v4231_v3, %v344_v36 }
  0xdb   :  { %3816 = vmatprep.subr.bf16.mxu1 %v4064_v24 }
  0xdc   :  { %3788 = vmatprep.mubr.msk.bf16.mxu1 %vm5294_vm6, %v166_v56 }
  0xdd   :  { %3789 = vmatmul.mubr.msk.bf16.gmra.mxu1 %vm5294_vm6, %v167_v58 }
 0x195   :  { %v3786_v4 = vpop.f32.mrf.mxu1 }
 0x196   :  { %v252_v12 = vadd.f32 %v3786_v4, %v171_v5 }
 0x197   :  { %v243_v7 = vpop.f32.mrf.mxu1 }
 0x198   :  { %v244_v8 = vadd.f32 %v243_v7, %v171_v5  ;;  %v284_v19 = vmul.f32 0.01, %v252_v12  ;;  %vm276_vm14 = vcmp.gt.f32.partialorder %v252_v12, 0.0 }
 0x199   :  { %v3787_v9 = vpop.f32.mrf.mxu1 }
 0x19a   :  { %v255_v10 = vadd.f32 %v3787_v9, %v171_v5  ;;  %v282_v13 = vmul.f32 0.01, %v244_v8  ;;  %vm274_vm11 = vcmp.gt.f32.partialorder %v244_v8, 0.0  ;;  %v292_v38 = vsel %vm276_vm14, %v252_v12, %v284_v19 }
 0x19b   :  { %v246_v11 = vpop.f32.mrf.mxu1  ;;  %vm595_vm14 = vcmask 1044484  }
 0x19c   :  { %v247_v14 = vadd.f32 %v246_v11, %v171_v5  ;;  %v285_v16 = vmul.f32 0.01, %v255_v10  ;;  %vm277_vm13 = vcmp.gt.f32.partialorder %v255_v10, 0.0  ;;  %v290_v23 = vsel %vm274_vm11, %v244_v8, %v282_v13 }
 0x19d   :  { %v3790_v15 = vpop.f32.mrf.mxu1  ;;  %vm591_vm11 = vcmask 1042434  }
 0x19e   :  { %v283_v17 = vmul.f32 0.01, %v247_v14  ;;  %vm275_vm12 = vcmp.gt.f32.partialorder %v247_v14, 0.0  ;;  %v293_v30 = vsel %vm277_vm13, %v255_v10, %v285_v16  ;;  %v268_v33 = vadd.f32 %v3790_v15, %v171_v5 }
 0x19f   :  { %v259_v18 = vpop.f32.mrf.mxu1  ;;  %v315_v40 = vpack.c.bf16 %v293_v30, %v292_v38 }
 0x1a0   :  { %v260_v20 = vadd.f32 %v259_v18, %v171_v5  ;;  %v291_v25 = vsel %vm275_vm12, %v247_v14, %v283_v17  ;;  %v288_v44 = vmul.f32 0.01, %v268_v33  ;;  %vm280_vm2 = vcmp.gt.f32.partialorder %v268_v33, 0.0 }
 0x1a1   :  { %v3791_v26 = vpop.f32.mrf.mxu1  ;;  %v314_v28 = vpack.c.bf16 %v291_v25, %v290_v23  ;;  %vm593_vm12 = vcmask 1043459  }
 0x1a2   :  { %v271_v29 = vadd.f32 %v3791_v26, %v171_v5  ;;  %v286_v34 = vmul.f32 0.01, %v260_v20  ;;  %vm278_vm15 = vcmp.gt.f32.partialorder %v260_v20, 0.0  ;;  %v296_v51 = vsel %vm280_vm2, %v268_v33, %v288_v44 }
 0x1a3   :  { %v262_v32 = vpop.f32.mrf.mxu1  ;;  %322 = vrot.lane.b32.xlu0 %v314_v28, %s4063_s18 }
 0x1a4   :  { %v263_v37 = vadd.f32 %v262_v32, %v171_v5  ;;  %v289_v41 = vmul.f32 0.01, %v271_v29  ;;  %vm281_vm1 = vcmp.gt.f32.partialorder %v271_v29, 0.0  ;;  %v294_v45 = vsel %vm278_vm15, %v260_v20, %v286_v34 }
 0x1a5   :  { %vm597_vm15 = vcmask 1045509  }
 0x1a6   :  { %v287_v42 = vmul.f32 0.01, %v263_v37  ;;  %vm279_vm0 = vcmp.gt.f32.partialorder %v263_v37, 0.0  ;;  %v297_v49 = vsel %vm281_vm1, %v271_v29, %v289_v41  ;;  %vm601_vm1 = vcmask 1047559  }
 0x1a7   :  { %324 = vrot.lane.b32.xlu0 %v315_v40, %s4063_s18  ;;  %v317_v53 = vpack.c.bf16 %v297_v49, %v296_v51 }
 0x1a8   :  { %v295_v46 = vsel %vm279_vm0, %v263_v37, %v287_v42  ;;  %vm599_vm0 = vcmask 1046534  }
 0x1a9   :  { %v316_v47 = vpack.c.bf16 %v295_v46, %v294_v45 }
 0x1ab   :  { %326 = vrot.lane.b32.xlu1 %v316_v47, %s4063_s18 }
 0x1af   :  { %328 = vrot.lane.b32.xlu1 %v317_v53, %s4063_s18 }
 0x215   :  { %v323_v54 = vpop.permute.xlu0 %322 }
 0x216   :  { %v332_v55 = vsel %vm5294_vm6, %v310_v35, %v323_v54  ;;  %v4001_v35 = vld [vmem:[%s5288_s2 + $0x4] sm:$0xff]  }
 0x217   :  { %3804 = vmatprep.mubr.msk.bf16.mxu0 %vm382_vm3, %v332_v55 }
 0x219   :  { %v325_v56 = vpop.permute.xlu0 %324 }
 0x21a   :  { %v335_v57 = vsel %vm5294_vm6, %v311_v31, %v325_v56  ;;  %v4000_v31 = vld [vmem:[%s5288_s2 + $0xc] sm:$0xff]  }
 0x21b   :  { %3805 = vmatmul.mubr.msk.bf16.vlgmr.msra.gmra.mxu0 %vm382_vm3, %v335_v57  ;;  %3817 = vmatpush3.bf16.msra.mxu1 %v4000_v31 }
 0x21c   :  { %3818 = vmatprep.subr.bf16.mxu1 %v4064_v24 }
 0x21d   :  { %v327_v58 = vpop.permute.xlu1 %326 }
 0x21e   :  { %v338_v59 = vsel %vm5294_vm6, %v312_v52, %v327_v58 }
 0x21f   :  { %3808 = vmatprep.mubr.msk.bf16.mxu0 %vm382_vm3, %v338_v59  ;;  %3819 = vmatpush3.bf16.msra.mxu1 %v4001_v35 }
 0x221   :  { %v329_v60 = vpop.permute.xlu1 %328 }
 0x222   :  { %v341_v21 = vsel %vm5294_vm6, %v313_v50, %v329_v60 }
 0x223   :  { %3809 = vmatmul.mubr.msk.bf16.gmra.mxu0 %vm382_vm3, %v341_v21 }
 0x2db   :  { %v3806_v43 = vpop.f32.mrf.mxu0 }
 0x2dc   :  { %v4274_v48 = vadd.f32 %v3806_v43, %v345_v39 }
 0x2dd   :  { %v425_v50 = vpop.f32.mrf.mxu0 }
 0x2de   :  { %v491_v52 = vsel %vm5297_vm4, %v4274_v48, -inf  ;;  %v4278_v61 = vadd.f32 %v425_v50, %v345_v39  ;;  %v714_v6 = vmul.f32 0.01, %v4274_v48  ;;  %vm706_vm5 = vcmp.gt.f32.partialorder %v4274_v48, 0.0 }
 0x2df   :  { %v492_v62 = vrot.slane %v491_v52, 4  ;;  %v3807_v63 = vpop.f32.mrf.mxu0 }
 0x2e0   :  { %v477_v0 = vsel %vm5297_vm4, %v4278_v61, -inf  ;;  %v4282_v4 = vadd.f32 %v3807_v63, %v345_v39  ;;  %vm704_vm7 = vcmp.gt.f32.partialorder %v4278_v61, 0.0  ;;  %v712_v11 = vmul.f32 0.01, %v4278_v61 }
 0x2e1   :  { %v493_v5 = vmax.f32 %v491_v52, %v492_v62  ;;  %v478_v7 = vrot.slane %v477_v0, 4  ;;  %v428_v8 = vpop.f32.mrf.mxu0 }
 0x2e2   :  { %v498_v9 = vsel %vm5297_vm4, %v4282_v4, -inf  ;;  %v4288_v10 = vadd.f32 %v428_v8, %v345_v39  ;;  %vm707_vm8 = vcmp.gt.f32.partialorder %v4282_v4, 0.0  ;;  %v4306_v30 = vsel %vm704_vm7, %v4278_v61, %v712_v11 }
 0x2e3   :  { %v494_v12 = vrot.slane %v493_v5, 2  ;;  %v479_v13 = vmax.f32 %v477_v0, %v478_v7  ;;  %v499_v14 = vrot.slane %v498_v9, 4  ;;  %v3810_v15 = vpop.f32.mrf.mxu0  ;;  %v715_v49 = vmul.f32 0.01, %v4282_v4 }
 0x2e4   :  { %v484_v16 = vsel %vm5297_vm4, %v4288_v10, -inf  ;;  %v4295_v17 = vadd.f32 %v3810_v15, %v345_v39  ;;  %vm705_vm9 = vcmp.gt.f32.partialorder %v4288_v10, 0.0  ;;  %v713_v18 = vmul.f32 0.01, %v4288_v10 }
 0x2e5   :  { %v495_v19 = vmax.f32 %v493_v5, %v494_v12  ;;  %v480_v20 = vrot.slane %v479_v13, 2  ;;  %v500_v23 = vmax.f32 %v498_v9, %v499_v14  ;;  %v485_v25 = vrot.slane %v484_v16, 4  ;;  %v441_v26 = vpop.f32.mrf.mxu0 }
 0x2e6   :  { %v519_v28 = vsel %vm5297_vm4, %v4295_v17, -inf  ;;  %v4301_v29 = vadd.f32 %v441_v26, %v345_v39  ;;  %v4309_v32 = vsel %vm705_vm9, %v4288_v10, %v713_v18  ;;  %v4338_v52 = vsel %vm707_vm8, %v4282_v4, %v715_v49 }
 0x2e7   :  { %v496_v33 = vrot.slane %v495_v19, 1  ;;  %v481_v34 = vmax.f32 %v479_v13, %v480_v20  ;;  %v501_v37 = vrot.slane %v500_v23, 2  ;;  %v486_v38 = vmax.f32 %v484_v16, %v485_v25  ;;  %v3811_v40 = vpop.f32.mrf.mxu0 }
 0x2e8   :  { %v520_v41 = vrot.slane %v519_v28, 4  ;;  %v505_v42 = vsel %vm5297_vm4, %v4301_v29, -inf  ;;  %v4313_v44 = vadd.f32 %v3811_v40, %v345_v39  ;;  %v728_v45 = vpack.c.bf16 %v4309_v32, %v4306_v30  ;;  %v4005_v30 = vld [vmem:[%s5287_s1 + $0x70] sm:$0xff]   ;;  %v4006_v32 = vld [vmem:[%s5287_s1 + $0x68] sm:$0xff]  }
 0x2e9   :  { %v482_v46 = vrot.slane %v481_v34, 1  ;;  %v502_v47 = vmax.f32 %v500_v23, %v501_v37  ;;  %v487_v51 = vrot.slane %v486_v38, 2  ;;  %v444_v53 = vpop.f32.mrf.mxu0  ;;  %v506_v55 = vrot.slane %v505_v42, 4 }
 0x2ea   :  { %v521_v54 = vmax.f32 %v519_v28, %v520_v41  ;;  %v526_v56 = vsel %vm5297_vm4, %v4313_v44, -inf  ;;  %v4320_v57 = vadd.f32 %v444_v53, %v345_v39  ;;  %v4322_v58 = vmax.f32 %v495_v19, %v496_v33  ;;  %v4357_v53 = vld [vmem:[%s5287_s1 + $0x58] sm:$0xff]  }
 0x2eb   :  { %v4324_v59 = vmax.f32 %v481_v34, %v482_v46  ;;  %v503_v60 = vrot.slane %v502_v47, 1  ;;  %v488_v21 = vmax.f32 %v486_v38, %v487_v51  ;;  %v507_v27 = vmax.f32 %v505_v42, %v506_v55  ;;  %3824 = vmatprep.subr.bf16.mxu1 %v4357_v53 }
 0x2ec   :  { %v522_v22 = vrot.slane %v521_v54, 2  ;;  %v527_v31 = vrot.slane %v526_v56, 4  ;;  %v512_v35 = vsel %vm5297_vm4, %v4320_v57, -inf  ;;  %v4333_v39 = vsel %vm706_vm5, %v4274_v48, %v714_v6 }
 0x2ed   :  { %v4328_v43 = vmax.f32 %v502_v47, %v503_v60  ;;  %v489_v50 = vrot.slane %v488_v21, 1  ;;  %v508_v63 = vrot.slane %v507_v27, 2  ;;  %v513_v5 = vrot.slane %v512_v35, 4 }
 0x2ee   :  { %v523_v62 = vmax.f32 %v521_v54, %v522_v22  ;;  %v528_v0 = vmax.f32 %v526_v56, %v527_v31  ;;  %v543_v7 = vmul.f32 0.01, %v4322_v58  ;;  %v565_v9 = vpack.c.bf16 %v4324_v59, %v4324_v59 }
 0x2ef   :  { %v490_v8 = vmax.f32 %v488_v21, %v489_v50  ;;  %v567_v11 = vpack.c.bf16 %v4322_v58, %v4322_v58  ;;  %v509_v12 = vmax.f32 %v507_v27, %v508_v63  ;;  %v514_v14 = vmax.f32 %v512_v35, %v513_v5 }
 0x2f0   :  { %v524_v6 = vrot.slane %v523_v62, 1  ;;  %v529_v13 = vrot.slane %v528_v0, 2  ;;  %v4346_v15 = vmul.f32 0.01, %v4324_v59  ;;  %v568_v18 = vpack.c.bf16 %v4328_v43, %v4328_v43 }
 0x2f1   :  { %vm534_vm13 = vcmp.gt.f32.partialorder %v490_v8, 0.0  ;;  %v566_v16 = vpack.c.bf16 %v490_v8, %v490_v8  ;;  %v510_v20 = vrot.slane %v509_v12, 1  ;;  %v515_v25 = vrot.slane %v514_v14, 2 }
 0x2f2   :  { %v525_v19 = vmax.f32 %v523_v62, %v524_v6  ;;  %v530_v23 = vmax.f32 %v528_v0, %v529_v13  ;;  %v542_v26 = vmul.f32 0.01, %v490_v8  ;;  %v612_v28 = vunpack.c.l.b16 %v565_v9 }
 0x2f3   :  { %v613_v33 = vunpack.c.l.b16 %v566_v16  ;;  %v614_v34 = vunpack.c.l.b16 %v567_v11  ;;  %v511_v37 = vmax.f32 %v509_v12, %v510_v20  ;;  %v516_v40 = vmax.f32 %v514_v14, %v515_v25 }
 0x2f4   :  { %v531_v38 = vrot.slane %v530_v23, 1  ;;  %v571_v41 = vpack.c.bf16 %v525_v19, %v525_v19  ;;  %v615_v42 = vunpack.c.l.b16 %v568_v18  ;;  %vm535_vm2 = vcmp.gt.f32.partialorder %v4322_v58, 0.0 }
 0x2f5   :  { %v620_v46 = vsel %vm589_vm10, %v613_v33, %v612_v28  ;;  %vm536_vm3 = vcmp.gt.f32.partialorder %v4328_v43, 0.0  ;;  %vm533_vm5 = vcmp.gt.f32.partialorder %v4324_v59, 0.0  ;;  %v517_v47 = vrot.slane %v516_v40, 1 }
 0x2f6   :  { %v532_v49 = vmax.f32 %v530_v23, %v531_v38  ;;  %v569_v51 = vpack.c.bf16 %v511_v37, %v511_v37  ;;  %vm539_vm7 = vcmp.gt.f32.partialorder %v525_v19, 0.0  ;;  %v621_v54 = vsel %vm591_vm11, %v614_v34, %v620_v46 }
 0x2f7   :  { %v544_v55 = vmul.f32 0.01, %v4328_v43  ;;  %v545_v56 = vmul.f32 0.01, %v511_v37  ;;  %v547_v60 = vmul.f32 0.01, %v525_v19  ;;  %v518_v21 = vmax.f32 %v516_v40, %v517_v47 }
 0x2f8   :  { %v616_v22 = vunpack.c.l.b16 %v569_v51  ;;  %v618_v27 = vunpack.c.l.b16 %v571_v41  ;;  %vm537_vm8 = vcmp.gt.f32.partialorder %v511_v37, 0.0  ;;  %vm540_vm9 = vcmp.gt.f32.partialorder %v532_v49, 0.0 }
 0x2f9   :  { %v548_v31 = vmul.f32 0.01, %v532_v49  ;;  %v550_v35 = vsel %vm534_vm13, %v490_v8, %v542_v26  ;;  %v551_v50 = vsel %vm535_vm2, %v4322_v58, %v543_v7  ;;  %v570_v62 = vpack.c.bf16 %v518_v21, %v518_v21 }
 0x2fa   :  { %v572_v63 = vpack.c.bf16 %v532_v49, %v532_v49  ;;  %v622_v0 = vsel %vm593_vm12, %v615_v42, %v621_v54  ;;  %vm538_vm6 = vcmp.gt.f32.partialorder %v518_v21, 0.0  ;;  %v546_v5 = vmul.f32 0.01, %v518_v21 }
 0x2fb   :  { %v552_v9 = vsel %vm536_vm3, %v4328_v43, %v544_v55  ;;  %v553_v11 = vsel %vm537_vm8, %v511_v37, %v545_v56  ;;  %v555_v6 = vsel %vm539_vm7, %v525_v19, %v547_v60  ;;  %v617_v12 = vunpack.c.l.b16 %v570_v62 }
 0x2fc   :  { %v556_v13 = vsel %vm540_vm9, %v532_v49, %v548_v31  ;;  %v558_v8 = vpack.c.bf16 %v550_v35, %v550_v35  ;;  %v559_v14 = vpack.c.bf16 %v551_v50, %v551_v50  ;;  %v623_v16 = vsel %vm595_vm14, %v616_v22, %v622_v0 }
 0x2fd   :  { %v554_v58 = vsel %vm538_vm6, %v518_v21, %v546_v5  ;;  %v560_v7 = vpack.c.bf16 %v552_v9, %v552_v9  ;;  %v561_v18 = vpack.c.bf16 %v553_v11, %v553_v11  ;;  %v619_v20 = vunpack.c.l.b16 %v572_v63 }
 0x2fe   :  { %v624_v23 = vsel %vm597_vm15, %v617_v12, %v623_v16  ;;  %v562_v25 = vpack.c.bf16 %v554_v58, %v554_v58  ;;  %v563_v26 = vpack.c.bf16 %v555_v6, %v555_v6  ;;  %v564_v43 = vpack.c.bf16 %v556_v13, %v556_v13 }
 0x2ff   :  { %v625_v28 = vsel %vm599_vm0, %v618_v27, %v624_v23  ;;  %v582_v33 = vunpack.c.l.b16 %v558_v8  ;;  %v583_v34 = vunpack.c.l.b16 %v559_v14  ;;  %v584_v37 = vunpack.c.l.b16 %v560_v7  ;;  %v4003_v14 = vld [vmem:[%s5287_s1 + $0x50] sm:$0xff]  }
 0x300   :  { %v626_v19 = vsel %vm601_vm1, %v619_v20, %v625_v28  ;;  %v585_v38 = vunpack.c.l.b16 %v561_v18  ;;  %v586_v40 = vunpack.c.l.b16 %v562_v25  ;;  %v549_v42 = vsel %vm533_vm5, %v4324_v59, %v4346_v15 }
 0x301   :  { %v627_v41 = vpack.c.b16 %v626_v19, %v626_v19  ;;  %v729_v46 = vpack.c.bf16 %v4338_v52, %v4333_v39  ;;  %v557_v47 = vpack.c.bf16 %v549_v42, %v549_v42  ;;  %vm5295_vm6 = vmmov 0  }
 0x302   :  { %3820 = vmatprep.mubr.msk.bf16.mxu1 %vm5295_vm6, %v4064_v24  ;;  %vm708_vm13 = vcmp.gt.f32.partialorder %v4301_v29, 0.0  ;;  %vm709_vm2 = vcmp.gt.f32.partialorder %v4320_v57, 0.0  ;;  %v716_v49 = vmul.f32 0.01, %v4301_v29  ;;  %v717_v51 = vmul.f32 0.01, %v4320_v57 }
 0x303   :  { %628 = vrot.lane.b32.xlu0 %v627_v41, %s4066_s4  ;;  %vm710_vm3 = vcmp.gt.f32.partialorder %v4295_v17, 0.0  ;;  %vm711_vm5 = vcmp.gt.f32.partialorder %v4313_v44, 0.0  ;;  %v718_v59 = vmul.f32 0.01, %v4295_v17  ;;  %v581_v39 = vunpack.c.l.b16 %v557_v47 }
 0x304   :  { %v724_v52 = vsel %vm708_vm13, %v4301_v29, %v716_v49  ;;  %v719_v15 = vmul.f32 0.01, %v4313_v44  ;;  %v944_v54 = vpack.c.bf16 %v4282_v4, %v4274_v48  ;;  %v725_v55 = vsel %vm709_vm2, %v4320_v57, %v717_v51  ;;  %v4009_v4 = vld [vmem:[%s5287_s1 + $0x80] sm:$0xff]  }
 0x305   :  { %v726_v56 = vsel %vm710_vm3, %v4295_v17, %v718_v59  ;;  %v943_v60 = vpack.c.bf16 %v4288_v10, %v4278_v61  ;;  %v946_v21 = vpack.c.bf16 %v4313_v44, %v4295_v17  ;;  %v590_v22 = vsel %vm589_vm10, %v582_v33, %v581_v39  ;;  %v4008_v61 = vld [vmem:[%s5287_s1 + $0x88] sm:$0xff]   ;;  %v4010_v10 = vld [vmem:[%s5288_s2 + $0x3c] sm:$0xff]   ;;  %v4011_v17 = vld [vmem:[%s5288_s2 + $0x34] sm:$0xff]  }
 0x306   :  { %v730_v27 = vpack.c.bf16 %v725_v55, %v724_v52  ;;  %v727_v31 = vsel %vm711_vm5, %v4313_v44, %v719_v15  ;;  %v945_v35 = vpack.c.bf16 %v4320_v57, %v4301_v29  ;;  %v592_v50 = vsel %vm591_vm11, %v583_v34, %v590_v22  ;;  %v4012_v29 = vld [vmem:[%s5288_s2 + $0x2c] sm:$0xff]   ;;  %v4013_v44 = vld [vmem:[%s5288_s2 + $0x24] sm:$0xff]  }
 0x307   :  { %v731_v62 = vpack.c.bf16 %v727_v31, %v726_v56  ;;  %v594_v63 = vsel %vm593_vm12, %v584_v37, %v592_v50  ;;  %v587_v0 = vunpack.c.l.b16 %v563_v26  ;;  %v588_v9 = vunpack.c.l.b16 %v564_v43 }
 0x308   :  { %v596_v5 = vsel %vm595_vm14, %v585_v38, %v594_v63  ;;  %vm5298_vm7 = vcmask 523264   ;;  %v701_v58 = vsub.s32 2, %v4223_v1  ;;  %v4067_v7 = vmov 1966171168  }
 0x309   :  { %v598_v11 = vsel %vm597_vm15, %v586_v40, %v596_v5  ;;  %v824_v18 = vunpack.c.l.s4 %v4067_v7 }
 0x30a   :  { %v600_v6 = vsel %vm599_vm0, %v587_v0, %v598_v11  ;;  %v702_v20 = vrot.slane %v4231_v3, %v701_v58 }
 0x30b   :  { %v602_v12 = vsel %vm601_vm1, %v588_v9, %v600_v6  ;;  %v825_v23 = vunpack.c.0.s8 %v824_v18 }
 0x30c   :  { %v603_v13 = vpack.c.b16 %v602_v12, %v602_v12 }
 0x30d   :  { %v4445_v28 = vsub.s32 %v825_v23, %v4223_v1 }
 0x375   :  { %v629_v8 = vpop.permute.xlu0 %628 }
 0x376   :  { %v632_v16 = vsel %vm5297_vm4, %v603_v13, %v629_v8 }
 0x377   :  { %3821 = vmatmul.mubr.msk.bf16.vlgmr.msra.gmra.mxu1 %vm5298_vm7, %v632_v16 }
 0x378   :  { %3825 = vmatpush3.bf16.msra.mxu1 %v4357_v53  ;;  %3828 = vmatprep.mubr.msk.bf16.mxu1 %vm5297_vm4, %v728_v45  ;;  %v4004_v53 = vld [vmem:[%s5287_s1 + $0x78] sm:$0xff]   ;;  %v4007_v45 = vld [vmem:[%s5287_s1 + $0x60] sm:$0xff]  }
 0x379   :  { %3826 = vmatprep.subr.bf16.mxu1 %v4003_v14  ;;  %3836 = vmatprep.subr.bf16.mxu0 %v4004_v53 }
 0x37a   :  { %3837 = vmatpush3.bf16.msra.mxu0 %v4004_v53 }
 0x37b   :  { %3838 = vmatprep.subr.bf16.mxu0 %v4005_v30 }
 0x37c   :  { %3827 = vmatpush3.bf16.msra.mxu1 %v4003_v14 }
 0x37d   :  { %3852 = vmatprep.subr.bf16.mxu1 %v4064_v24 }
 0x37e   :  { %3839 = vmatpush3.bf16.msra.mxu0 %v4005_v30 }
 0x37f   :  { %3829 = vmatmul.mubr.msk.bf16.vlgmr.msra.gmra.mxu1 %vm5297_vm4, %v729_v46  ;;  %3840 = vmatprep.subr.bf16.mxu0 %v4006_v32 }
 0x380   :  { %3832 = vmatprep.mubr.msk.bf16.mxu1 %vm5297_vm4, %v730_v27  ;;  %3853 = vmatpush3.bf16.msra.mxu1 %v4010_v10 }
 0x381   :  { %3854 = vmatprep.subr.bf16.mxu1 %v4064_v24 }
 0x382   :  { %3841 = vmatpush3.bf16.msra.mxu0 %v4006_v32 }
 0x383   :  { %3842 = vmatprep.subr.bf16.mxu0 %v4007_v45 }
 0x384   :  { %3855 = vmatpush3.bf16.msra.mxu1 %v4011_v17 }
 0x385   :  { %3856 = vmatprep.subr.bf16.mxu1 %v4064_v24 }
 0x386   :  { %3843 = vmatpush3.bf16.msra.mxu0 %v4007_v45 }
 0x387   :  { %3833 = vmatmul.mubr.msk.bf16.gmra.mxu1 %vm5297_vm4, %v731_v62  ;;  %3864 = vmatprep.subr.bf16.mxu0 %v4008_v61 }
 0x388   :  { %3860 = vmatprep.mubr.msk.bf16.mxu1 %vm5295_vm6, %v4064_v24  ;;  %3857 = vmatpush3.bf16.msra.mxu1 %v4012_v29 }
 0x389   :  { %3858 = vmatprep.subr.bf16.mxu1 %v4064_v24 }
 0x38c   :  { %3859 = vmatpush3.bf16.msra.mxu1 %v4013_v44 }
 0x437   :  { %v4441_v25 = vpop.f32.mrf.mxu1 }
 0x438   :  { %v703_v26 = vadd.f32 %v702_v20, %v4441_v25  ;;  %v1084_v30 = vrot.slane %v4441_v25, %v4445_v28 }
 0x439   :  { %v3822_v43 = vpop.f32.mrf.mxu1 }
 0x43a   :  { %v822_v33 = vcombine.high %v703_v26, %v703_v26  ;;  %v829_v34 = vrot.slane %v703_v26, %v4445_v28 }
 0x43b   :  { %v696_v19 = vpop.f32.mrf.mxu1 }
 0x43c   :  { %v836_v37 = vrot.slane %v822_v33, %v4445_v28  ;;  %v837_v38 = vcombine.high %v829_v34, %v829_v34  ;;  %v845_v40 = vrot.slane %v829_v34, %v4445_v28 }
 0x43d   :  { %v3823_v41 = vpop.f32.mrf.mxu1 }
 0x43e   :  { %v867_v42 = vcombine.high %v845_v40, %v845_v40  ;;  %v859_v46 = vrot.slane %v837_v38, %v4445_v28  ;;  %v852_v47 = vrot.slane %v836_v37, %v4445_v28  ;;  %v838_v51 = vcombine.high %v836_v37, %v836_v37 }
 0x43f   :  { %v3830_v49 = vpop.f32.mrf.mxu1  ;;  %v874_v15 = vrot.slane %v845_v40, %v4226_v2  ;;  %v1077_v38 = vcombine.high %v4441_v25, %v4441_v25  ;;  %v1092_v40 = vcombine.high %v1084_v30, %v1084_v30 }
 0x440   :  { %v882_v59 = vrot.slane %v867_v42, %v4226_v2  ;;  %v869_v39 = vcombine.high %v859_v46, %v859_v46  ;;  %v868_v22 = vcombine.high %v852_v47, %v852_v47  ;;  %v866_v27 = vrot.slane %v838_v51, %v4445_v28 }
 0x441   :  { %v790_v52 = vpop.f32.mrf.mxu1  ;;  %v878_v62 = vrot.slane %v859_v46, %v4226_v2  ;;  %v890_v14 = vrot.slane %v852_v47, %v4226_v2 }
 0x442   :  { %v913_v55 = vadd.f32 %v3830_v49, %v882_v59  ;;  %v886_v56 = vrot.slane %v869_v39, %v4226_v2  ;;  %v911_v31 = vadd.f32 %v874_v15, %v790_v52  ;;  %v898_v11 = vrot.slane %v868_v22, %v4226_v2 }
 0x443   :  { %v3831_v50 = vpop.f32.mrf.mxu1  ;;  %v870_v6 = vcombine.high %v866_v27, %v866_v27  ;;  %v894_v37 = vrot.slane %v866_v27, %v4226_v2  ;;  %v1091_v39 = vrot.slane %v1077_v38, %v4445_v28  ;;  %v1114_v15 = vrot.slane %v1092_v40, %v4445_v28 }
 0x444   :  { %v929_v63 = vmul.f32 0.01, %v913_v55  ;;  %v914_v0 = vadd.f32 %v3831_v50, %v886_v56  ;;  %vm921_vm8 = vcmp.gt.f32.partialorder %v913_v55, 0.0  ;;  %v927_v12 = vmul.f32 0.01, %v911_v31 }
 0x445   :  { %v793_v5 = vpop.f32.mrf.mxu1  ;;  %vm919_vm13 = vcmp.gt.f32.partialorder %v911_v31, 0.0  ;;  %v902_v20 = vrot.slane %v870_v6, %v4226_v2  ;;  %v1100_v56 = vrot.slane %v1084_v30, %v4445_v28  ;;  %v1093_v27 = vcombine.high %v1091_v39, %v1091_v39 }
 0x446   :  { %v912_v9 = vadd.f32 %v878_v62, %v793_v5  ;;  %vm922_vm9 = vcmp.gt.f32.partialorder %v914_v0, 0.0  ;;  %v930_v13 = vmul.f32 0.01, %v914_v0  ;;  %v937_v45 = vsel %vm921_vm8, %v913_v55, %v929_v63 }
 0x447   :  { %v3834_v8 = vpop.f32.mrf.mxu1  ;;  %v935_v26 = vsel %vm919_vm13, %v911_v31, %v927_v12  ;;  %v1133_v31 = vrot.slane %v1114_v15, %v4226_v2  ;;  %v1124_v50 = vcombine.high %v1114_v15, %v1114_v15  ;;  %v1129_v62 = vrot.slane %v1100_v56, %v4226_v2 }
 0x448   :  { %vm920_vm2 = vcmp.gt.f32.partialorder %v912_v9, 0.0  ;;  %v928_v16 = vmul.f32 0.01, %v912_v9  ;;  %v917_v53 = vadd.f32 %v3834_v8, %v898_v11  ;;  %v938_v58 = vsel %vm922_vm9, %v914_v0, %v930_v13 }
 0x449   :  { %v806_v32 = vpop.f32.mrf.mxu1  ;;  %v948_v18 = vpack.c.bf16 %v938_v58, %v937_v45  ;;  %v1122_v63 = vcombine.high %v1100_v56, %v1100_v56  ;;  %v1141_v0 = vrot.slane %v1124_v50, %v4226_v2  ;;  %v1121_v5 = vrot.slane %v1093_v27, %v4445_v28 }
 0x44a   :  { %v915_v7 = vadd.f32 %v890_v14, %v806_v32  ;;  %v936_v43 = vsel %vm920_vm2, %v912_v9, %v928_v16  ;;  %v933_v33 = vmul.f32 0.01, %v917_v53  ;;  %vm925_vm3 = vcmp.gt.f32.partialorder %v917_v53, 0.0 }
 0x44b   :  { %v3835_v23 = vpop.f32.mrf.mxu1  ;;  %957 = vrot.lane.b32.xlu0 %v948_v18, %s4066_s4  ;;  %v947_v19 = vpack.c.bf16 %v936_v43, %v935_v26  ;;  %v1137_v9 = vrot.slane %v1122_v63, %v4226_v2  ;;  %v1107_v11 = vrot.slane %v1091_v39, %v4445_v28  ;;  %v1149_v6 = vrot.slane %v1121_v5, %v4226_v2 }
 0x44c   :  { %v918_v34 = vadd.f32 %v3835_v23, %v902_v20  ;;  %v931_v42 = vmul.f32 0.01, %v915_v7  ;;  %vm923_vm7 = vcmp.gt.f32.partialorder %v915_v7, 0.0  ;;  %v941_v51 = vsel %vm925_vm3, %v917_v53, %v933_v33 }
 0x44d   :  { %v809_v41 = vpop.f32.mrf.mxu1  ;;  %955 = vrot.lane.b32.xlu1 %v947_v19, %s4066_s4  ;;  %v1125_v12 = vcombine.high %v1121_v5, %v1121_v5  ;;  %v1145_v13 = vrot.slane %v1107_v11, %v4226_v2  ;;  %v1123_v8 = vcombine.high %v1107_v11, %v1107_v11  ;;  %vm5299_vm9 = vcmask 523264  }
 0x44e   :  { %vm926_vm5 = vcmp.gt.f32.partialorder %v918_v34, 0.0  ;;  %v934_v46 = vmul.f32 0.01, %v918_v34  ;;  %v916_v47 = vadd.f32 %v894_v37, %v809_v41  ;;  %v939_v25 = vsel %vm923_vm7, %v915_v7, %v931_v42  ;;  %vm5300_vm13 = vmmov %vm5299_vm9 }
 0x44f   :  { %v1157_v14 = vrot.slane %v1125_v12, %v4226_v2  ;;  %v1153_v16 = vrot.slane %v1123_v8, %v4226_v2  ;;  %vm5301_vm2 = vmmov %vm5299_vm9 }
 0x450   :  { %vm924_vm8 = vcmp.gt.f32.partialorder %v916_v47, 0.0  ;;  %v932_v49 = vmul.f32 0.01, %v916_v47  ;;  %v942_v59 = vsel %vm926_vm5, %v918_v34, %v934_v46  ;;  %vm5302_vm3 = vmmov %vm5301_vm2 }
 0x451   :  { %v950_v52 = vpack.c.bf16 %v942_v59, %v941_v51 }
 0x452   :  { %v940_v55 = vsel %vm924_vm8, %v916_v47, %v932_v49 }
 0x453   :  { %961 = vrot.lane.b32.xlu0 %v950_v52, %s4066_s4  ;;  %v949_v22 = vpack.c.bf16 %v940_v55, %v939_v25 }
 0x455   :  { %959 = vrot.lane.b32.xlu1 %v949_v22, %s4066_s4 }
 0x457   :  { %1160 = vrot.lane.b32.xlu0 %v1133_v31, %s4068_s15 }
 0x459   :  { %1158 = vrot.lane.b32.xlu1 %v1129_v62, %s4068_s15 }
 0x45b   :  { %1164 = vrot.lane.b32.xlu0 %v1141_v0, %s4068_s15 }
 0x45d   :  { %1162 = vrot.lane.b32.xlu1 %v1137_v9, %s4068_s15 }
 0x45f   :  { %1168 = vrot.lane.b32.xlu0 %v1149_v6, %s4068_s15 }
 0x461   :  { %1166 = vrot.lane.b32.xlu1 %v1145_v13, %s4068_s15 }
 0x463   :  { %1172 = vrot.lane.b32.xlu0 %v1157_v14, %s4068_s15 }
 0x465   :  { %1170 = vrot.lane.b32.xlu1 %v1153_v16, %s4068_s15 }
 0x4bd   :  { %v958_v53 = vpop.permute.xlu0 %957 }
 0x4be   :  { %v968_v45 = vsel %vm5297_vm4, %v944_v54, %v958_v53  ;;  %v977_v54 = vsub.s32 3, %v4223_v1 }
 0x4bf   :  { %v956_v30 = vpop.permute.xlu1 %955 }
 0x4c0   :  { %v965_v32 = vsel %vm5297_vm4, %v943_v60, %v956_v30 }
 0x4c1   :  { %3844 = vmatprep.mubr.msk.bf16.mxu0 %vm5299_vm9, %v965_v32 }
 0x4c2   :  { %3845 = vmatmul.mubr.msk.bf16.vlgmr.msra.gmra.mxu0 %vm5300_vm13, %v968_v45 }
 0x4c3   :  { %3865 = vmatpush3.bf16.msra.mxu0 %v4008_v61 }
 0x4c4   :  { %3866 = vmatprep.subr.bf16.mxu0 %v4009_v4 }
 0x4c5   :  { %v962_v58 = vpop.permute.xlu0 %961 }
 0x4c6   :  { %v974_v48 = vsel %vm5297_vm4, %v946_v21, %v962_v58  ;;  %v978_v21 = vrot.slane %v4231_v3, %v977_v54 }
 0x4c7   :  { %v960_v7 = vpop.permute.xlu1 %959  ;;  %3867 = vmatpush3.bf16.msra.mxu0 %v4009_v4 }
 0x4c8   :  { %v971_v18 = vsel %vm5297_vm4, %v945_v35, %v960_v7  ;;  %3892 = vmatprep.subr.bf16.mxu0 %v4064_v24 }
 0x4c9   :  { %3848 = vmatprep.mubr.msk.bf16.mxu0 %vm5301_vm2, %v971_v18  ;;  %v1161_v60 = vpop.permute.xlu0 %1160 }
 0x4ca   :  { %3849 = vmatmul.mubr.msk.bf16.gmra.mxu0 %vm5302_vm3, %v974_v48 }
 0x4cb   :  { %v1159_v57 = vpop.permute.xlu1 %1158 }
 0x4cd   :  { %v1165_v26 = vpop.permute.xlu0 %1164 }
 0x4cf   :  { %v1163_v35 = vpop.permute.xlu1 %1162 }
 0x4d1   :  { %v1169_v51 = vpop.permute.xlu0 %1168 }
 0x4d3   :  { %v1167_v19 = vpop.permute.xlu1 %1166 }
 0x4d5   :  { %v1173_v45 = vpop.permute.xlu0 %1172 }
 0x4d7   :  { %v1171_v27 = vpop.permute.xlu1 %1170 }
 0x582   :  { %v3846_v20 = vpop.f32.mrf.mxu0 }
 0x583   :  { %v1054_v23 = vadd.f32 %v3846_v20, %v978_v21 }
 0x584   :  { %v1045_v43 = vpop.f32.mrf.mxu0 }
 0x585   :  { %v4534_v33 = vadd.f32 %v1163_v35, %v1054_v23  ;;  %v1046_v34 = vadd.f32 %v1045_v43, %v978_v21 }
 0x586   :  { %v3847_v37 = vpop.f32.mrf.mxu0 }
 0x587   :  { %v1224_v38 = vsel %vm5297_vm4, %v4534_v33, -inf  ;;  %v1440_v40 = vmul.f32 0.01, %v4534_v33  ;;  %v4539_v41 = vadd.f32 %v1159_v57, %v1046_v34  ;;  %vm1432_vm5 = vcmp.gt.f32.partialorder %v4534_v33, 0.0 }
 0x588   :  { %v1225_v42 = vrot.slane %v1224_v38, 4  ;;  %v1057_v3 = vadd.f32 %v3847_v37, %v978_v21  ;;  %v1048_v46 = vpop.f32.mrf.mxu0 }
 0x589   :  { %v1210_v47 = vsel %vm5297_vm4, %v4539_v41, -inf  ;;  %v1049_v49 = vadd.f32 %v1048_v46, %v978_v21  ;;  %v4547_v25 = vsel %vm1432_vm5, %v4534_v33, %v1440_v40  ;;  %v1438_v22 = vmul.f32 0.01, %v4539_v41 }
 0x58a   :  { %v1226_v59 = vmax.f32 %v1224_v38, %v1225_v42  ;;  %v1211_v39 = vrot.slane %v1210_v47, 4  ;;  %v4544_v52 = vadd.f32 %v1165_v26, %v1057_v3  ;;  %v3850_v15 = vpop.f32.mrf.mxu0  ;;  %vm1430_vm8 = vcmp.gt.f32.partialorder %v4539_v41, 0.0 }
 0x58b   :  { %v4549_v55 = vadd.f32 %v1161_v60, %v1049_v49  ;;  %v1070_v56 = vadd.f32 %v3850_v15, %v978_v21 }
 0x58c   :  { %v1227_v31 = vrot.slane %v1226_v59, 2  ;;  %v1212_v50 = vmax.f32 %v1210_v47, %v1211_v39  ;;  %v1231_v62 = vsel %vm5297_vm4, %v4544_v52, -inf  ;;  %vm1433_vm7 = vcmp.gt.f32.partialorder %v4544_v52, 0.0  ;;  %v1061_v63 = vpop.f32.mrf.mxu0 }
 0x58d   :  { %v1232_v0 = vrot.slane %v1231_v62, 4  ;;  %v1441_v5 = vmul.f32 0.01, %v4544_v52  ;;  %v1217_v9 = vsel %vm5297_vm4, %v4549_v55, -inf  ;;  %v4558_v11 = vadd.f32 %v1171_v27, %v1070_v56 }
 0x58e   :  { %v1228_v6 = vmax.f32 %v1226_v59, %v1227_v31  ;;  %v1213_v12 = vrot.slane %v1212_v50, 2  ;;  %v1218_v13 = vrot.slane %v1217_v9, 4  ;;  %v1062_v8 = vadd.f32 %v1061_v63, %v978_v21  ;;  %v3851_v14 = vpop.f32.mrf.mxu0 }
 0x58f   :  { %v1233_v16 = vmax.f32 %v1231_v62, %v1232_v0  ;;  %v4562_v53 = vsel %vm1433_vm7, %v4544_v52, %v1441_v5  ;;  %v1252_v30 = vsel %vm5297_vm4, %v4558_v11, -inf  ;;  %v1073_v32 = vadd.f32 %v3851_v14, %v978_v21 }
 0x590   :  { %v1229_v58 = vrot.slane %v1228_v6, 1  ;;  %v1214_v7 = vmax.f32 %v1212_v50, %v1213_v12  ;;  %v1455_v18 = vpack.c.bf16 %v4562_v53, %v4547_v25  ;;  %v1219_v48 = vmax.f32 %v1217_v9, %v1218_v13  ;;  %v1064_v61 = vpop.f32.mrf.mxu0 }
 0x591   :  { %v1234_v4 = vrot.slane %v1233_v16, 2  ;;  %v1253_v10 = vrot.slane %v1252_v30, 4  ;;  %v4568_v17 = vadd.f32 %v1167_v19, %v1062_v8  ;;  %v4570_v29 = vadd.f32 %v1173_v45, %v1073_v32 }
 0x592   :  { %v4572_v44 = vmax.f32 %v1228_v6, %v1229_v58  ;;  %v1215_v57 = vrot.slane %v1214_v7, 1  ;;  %v1220_v54 = vrot.slane %v1219_v48, 2  ;;  %v1065_v60 = vadd.f32 %v1064_v61, %v978_v21 }
 0x593   :  { %v1235_v35 = vmax.f32 %v1233_v16, %v1234_v4  ;;  %v1254_v20 = vmax.f32 %v1252_v30, %v1253_v10  ;;  %v1238_v23 = vsel %vm5297_vm4, %v4568_v17, -inf  ;;  %v1259_v26 = vsel %vm5297_vm4, %v4570_v29, -inf }
 0x594   :  { %v4578_v43 = vmax.f32 %v1214_v7, %v1215_v57  ;;  %v1221_v34 = vmax.f32 %v1219_v48, %v1220_v54  ;;  %v1239_v19 = vrot.slane %v1238_v23, 4  ;;  %v1260_v37 = vrot.slane %v1259_v26, 4 }
 0x595   :  { %v1236_v38 = vrot.slane %v1235_v35, 1  ;;  %v1255_v40 = vrot.slane %v1254_v20, 2  ;;  %v4580_v42 = vadd.f32 %v1169_v51, %v1065_v60  ;;  %vm1431_vm9 = vcmp.gt.f32.partialorder %v4549_v55, 0.0 }
 0x596   :  { %v4584_v21 = vmul.f32 0.01, %v4578_v43  ;;  %v1222_v3 = vrot.slane %v1221_v34, 1  ;;  %v1240_v46 = vmax.f32 %v1238_v23, %v1239_v19  ;;  %v1261_v47 = vmax.f32 %v1259_v26, %v1260_v37 }
 0x597   :  { %v4586_v49 = vmax.f32 %v1235_v35, %v1236_v38  ;;  %v1256_v59 = vmax.f32 %v1254_v20, %v1255_v40  ;;  %v1245_v39 = vsel %vm5297_vm4, %v4580_v42, -inf  ;;  %v1439_v15 = vmul.f32 0.01, %v4549_v55 }
 0x598   :  { %v4591_v25 = vmax.f32 %v1221_v34, %v1222_v3  ;;  %v1241_v51 = vrot.slane %v1240_v46, 2  ;;  %v1262_v56 = vrot.slane %v1261_v47, 2  ;;  %v1246_v27 = vrot.slane %v1245_v39, 4 }
 0x599   :  { %v1257_v31 = vrot.slane %v1256_v59, 1  ;;  %v1446_v50 = vsel %vm1430_vm8, %v4539_v41, %v1438_v22  ;;  %v1447_v62 = vsel %vm1431_vm9, %v4549_v55, %v1439_v15  ;;  %vm1434_vm13 = vcmp.gt.f32.partialorder %v4568_v17, 0.0 }
 0x59a   :  { %v4599_v63 = vmul.f32 0.01, %v4591_v25  ;;  %v1242_v0 = vmax.f32 %v1240_v46, %v1241_v51  ;;  %v1263_v5 = vmax.f32 %v1261_v47, %v1262_v56  ;;  %v1247_v9 = vmax.f32 %v1245_v39, %v1246_v27 }
 0x59b   :  { %v1454_v6 = vpack.c.bf16 %v1447_v62, %v1446_v50  ;;  %vm1435_vm2 = vcmp.gt.f32.partialorder %v4580_v42, 0.0  ;;  %v1442_v12 = vmul.f32 0.01, %v4568_v17  ;;  %v1443_v13 = vmul.f32 0.01, %v4580_v42 }
 0x59c   :  { %v1243_v8 = vrot.slane %v1242_v0, 1  ;;  %v1248_v14 = vrot.slane %v1247_v9, 2  ;;  %vm1436_vm3 = vcmp.gt.f32.partialorder %v4558_v11, 0.0  ;;  %vm1437_vm5 = vcmp.gt.f32.partialorder %v4570_v29, 0.0 }
 0x59d   :  { %3868 = vmatprep.mubr.msk.bf16.mxu0 %vm5297_vm4, %v1454_v6  ;;  %v1450_v22 = vsel %vm1434_vm13, %v4568_v17, %v1442_v12  ;;  %v1451_v16 = vsel %vm1435_vm2, %v4580_v42, %v1443_v13  ;;  %v1444_v53 = vmul.f32 0.01, %v4558_v11  ;;  %v1445_v30 = vmul.f32 0.01, %v4570_v29 }
 0x59e   :  { %v1244_v32 = vmax.f32 %v1242_v0, %v1243_v8  ;;  %v1249_v45 = vmax.f32 %v1247_v9, %v1248_v14  ;;  %3869 = vmatmul.mubr.msk.bf16.vlgmr.msra.gmra.mxu0 %vm5297_vm4, %v1455_v18  ;;  %v1456_v58 = vpack.c.bf16 %v1451_v16, %v1450_v22  ;;  %v4612_v7 = vmax.f32 %v1256_v59, %v1257_v31 }
 0x59f   :  { %v1452_v48 = vsel %vm1436_vm3, %v4558_v11, %v1444_v53  ;;  %v1453_v61 = vsel %vm1437_vm5, %v4570_v29, %v1445_v30  ;;  %v1264_v4 = vrot.slane %v1263_v5, 1  ;;  %v1298_v10 = vpack.c.bf16 %v4578_v43, %v4578_v43 }
 0x5a0   :  { %v1250_v57 = vrot.slane %v1249_v45, 1  ;;  %3872 = vmatprep.mubr.msk.bf16.mxu0 %vm5297_vm4, %v1456_v58  ;;  %v1457_v54 = vpack.c.bf16 %v1453_v61, %v1452_v48  ;;  %v1299_v60 = vpack.c.bf16 %v4591_v25, %v4591_v25  ;;  %v1300_v18 = vpack.c.bf16 %v4572_v44, %v4572_v44 }
 0x5a1   :  { %v1265_v35 = vmax.f32 %v1263_v5, %v1264_v4  ;;  %v1301_v20 = vpack.c.bf16 %v4586_v49, %v4586_v49  ;;  %v1302_v23 = vpack.c.bf16 %v1244_v32, %v1244_v32  ;;  %v1304_v26 = vpack.c.bf16 %v4612_v7, %v4612_v7 }
 0x5a2   :  { %v1251_v34 = vmax.f32 %v1249_v45, %v1250_v57  ;;  %v1338_v19 = vunpack.c.l.b16 %v1298_v10  ;;  %v1339_v37 = vunpack.c.l.b16 %v1299_v60  ;;  %v1340_v38 = vunpack.c.l.b16 %v1300_v18 }
 0x5a3   :  { %v1305_v40 = vpack.c.bf16 %v1265_v35, %v1265_v35  ;;  %v1341_v3 = vunpack.c.l.b16 %v1301_v20  ;;  %v1342_v46 = vunpack.c.l.b16 %v1302_v23  ;;  %v1344_v47 = vunpack.c.l.b16 %v1304_v26 }
 0x5a4   :  { %v1303_v59 = vpack.c.bf16 %v1251_v34, %v1251_v34  ;;  %v1346_v39 = vsel %vm589_vm10, %v1339_v37, %v1338_v19  ;;  %vm1266_vm7 = vcmp.gt.f32.partialorder %v4578_v43, 0.0  ;;  %vm1267_vm8 = vcmp.gt.f32.partialorder %v4591_v25, 0.0 }
 0x5a5   :  { %v1345_v15 = vunpack.c.l.b16 %v1305_v40  ;;  %v1347_v51 = vsel %vm591_vm11, %v1340_v38, %v1346_v39  ;;  %vm1268_vm9 = vcmp.gt.f32.partialorder %v4572_v44, 0.0  ;;  %vm1269_vm13 = vcmp.gt.f32.partialorder %v4586_v49, 0.0 }
 0x5a6   :  { %3873 = vmatmul.mubr.msk.bf16.gmra.mxu0 %vm5297_vm4, %v1457_v54  ;;  %v1343_v56 = vunpack.c.l.b16 %v1303_v59  ;;  %v1348_v27 = vsel %vm593_vm12, %v1341_v3, %v1347_v51  ;;  %vm1270_vm2 = vcmp.gt.f32.partialorder %v1244_v32, 0.0  ;;  %vm1271_vm3 = vcmp.gt.f32.partialorder %v1251_v34, 0.0 }
 0x5a7   :  { %v1349_v31 = vsel %vm595_vm14, %v1342_v46, %v1348_v27  ;;  %vm1273_vm5 = vcmp.gt.f32.partialorder %v1265_v35, 0.0  ;;  %v1276_v50 = vmul.f32 0.01, %v4572_v44  ;;  %v1277_v62 = vmul.f32 0.01, %v4586_v49  ;;  %3900 = vmatprep.mubr.msk.bf16.mxu0 %vm5295_vm6, %v4064_v24  ;;  %v4015_v27 = vld [vmem:[%s5287_s1 + $0xa0] sm:$0xff]  }
 0x5a8   :  { %v1350_v0 = vsel %vm597_vm15, %v1343_v56, %v1349_v31  ;;  %v1278_v5 = vmul.f32 0.01, %v1244_v32  ;;  %v1279_v9 = vmul.f32 0.01, %v1251_v34  ;;  %v1281_v6 = vmul.f32 0.01, %v1265_v35 }
 0x5a9   :  { %v1351_v12 = vsel %vm599_vm0, %v1344_v47, %v1350_v0  ;;  %v1282_v13 = vsel %vm1266_vm7, %v4578_v43, %v4584_v21  ;;  %v1283_v8 = vsel %vm1267_vm8, %v4591_v25, %v4599_v63  ;;  %v1284_v14 = vsel %vm1268_vm9, %v4572_v44, %v1276_v50  ;;  %v4016_v31 = vld [vmem:[%s5287_s1 + $0x98] sm:$0xff]   ;;  %v4017_v50 = vld [vmem:[%s5287_s1 + $0x90] sm:$0xff]  }
 0x5aa   :  { %v1352_v22 = vsel %vm601_vm1, %v1345_v15, %v1351_v12  ;;  %v1285_v16 = vsel %vm1269_vm13, %v4586_v49, %v1277_v62  ;;  %v1286_v53 = vsel %vm1270_vm2, %v1244_v32, %v1278_v5  ;;  %v1287_v30 = vsel %vm1271_vm3, %v1251_v34, %v1279_v9  ;;  %v4697_v12 = vld [vmem:[%s5289_s3] sm:$0xff] }
 0x5ab   :  { %v1353_v43 = vpack.c.b16 %v1352_v22, %v1352_v22  ;;  %v1290_v21 = vpack.c.bf16 %v1282_v13, %v1282_v13  ;;  %v1291_v45 = vpack.c.bf16 %v1283_v8, %v1283_v8  ;;  %v1292_v58 = vpack.c.bf16 %v1284_v14, %v1284_v14 }
 0x5ac   :  { %v1293_v48 = vpack.c.bf16 %v1285_v16, %v1285_v16  ;;  %v1294_v25 = vpack.c.bf16 %v1286_v53, %v1286_v53  ;;  %v1295_v63 = vpack.c.bf16 %v1287_v30, %v1287_v30  ;;  %v1289_v44 = vsel %vm1273_vm5, %v1265_v35, %v1281_v6 }
 0x5ad   :  { %1354 = vrot.lane.b32.xlu1 %v1353_v43, %s4066_s4  ;;  %v1314_v61 = vunpack.c.l.b16 %v1290_v21  ;;  %v1315_v4 = vunpack.c.l.b16 %v1291_v45  ;;  %v1316_v10 = vunpack.c.l.b16 %v1292_v58  ;;  %vm1272_vm7 = vcmp.gt.f32.partialorder %v4612_v7, 0.0 }
 0x5ae   :  { %v1317_v57 = vunpack.c.l.b16 %v1293_v48  ;;  %v1318_v49 = vunpack.c.l.b16 %v1294_v25  ;;  %v1319_v32 = vunpack.c.l.b16 %v1295_v63  ;;  %v1280_v60 = vmul.f32 0.01, %v4612_v7 }
 0x5af   :  { %v1322_v54 = vsel %vm589_vm10, %v1315_v4, %v1314_v61  ;;  %v1669_v18 = vpack.c.bf16 %v4549_v55, %v4539_v41  ;;  %v1670_v35 = vpack.c.bf16 %v4544_v52, %v4534_v33  ;;  %v1671_v23 = vpack.c.bf16 %v4580_v42, %v4568_v17  ;;  %v4018_v33 = vld [vmem:[%s5288_s2 + $0x5c] sm:$0xff]   ;;  %v4019_v52 = vld [vmem:[%s5288_s2 + $0x54] sm:$0xff]   ;;  %v4021_v17 = vld [vmem:[%s5288_s2 + $0x44] sm:$0xff]  }
 0x5b0   :  { %v1323_v20 = vsel %vm591_vm11, %v1316_v10, %v1322_v54  ;;  %v1672_v26 = vpack.c.bf16 %v4570_v29, %v4558_v11  ;;  %v1297_v34 = vpack.c.bf16 %v1289_v44, %v1289_v44  ;;  %v1288_v37 = vsel %vm1272_vm7, %v4612_v7, %v1280_v60  ;;  %v4014_v7 = vld [vmem:[%s5287_s1 + $0xa8] sm:$0xff]   ;;  %3893 = vmatpush3.bf16.msra.mxu0 %v4018_v33 }
 0x5b1   :  { %v1324_v19 = vsel %vm593_vm12, %v1317_v57, %v1323_v20  ;;  %v1296_v40 = vpack.c.bf16 %v1288_v37, %v1288_v37  ;;  %vm5303_vm8 = vcmask 523264   ;;  %3876 = vmatprep.subr.bf16.mxu1 %v4014_v7  ;;  %v1427_v9 = vsub.s32 4, %v4223_v1  ;;  %3894 = vmatprep.subr.bf16.mxu0 %v4064_v24  ;;  %v4020_v11 = vld [vmem:[%s5288_s2 + $0x4c] sm:$0xff]  }
 0x5b2   :  { %v1325_v38 = vsel %vm595_vm14, %v1318_v49, %v1324_v19  ;;  %v1321_v47 = vunpack.c.l.b16 %v1297_v34  ;;  %v1703_v42 = vsub.s32 5, %v4223_v1 }
 0x5b3   :  { %v1326_v3 = vsel %vm597_vm15, %v1319_v32, %v1325_v38  ;;  %v1320_v46 = vunpack.c.l.b16 %v1296_v40  ;;  %v1428_v13 = vrot.slane %v4697_v12, %v1427_v9 }
 0x5b4   :  { %3895 = vmatpush3.bf16.msra.mxu0 %v4019_v52 }
 0x5b5   :  { %v1327_v59 = vsel %vm599_vm0, %v1320_v46, %v1326_v3  ;;  %3896 = vmatprep.subr.bf16.mxu0 %v4064_v24 }
 0x5b6   :  { %v1328_v39 = vsel %vm601_vm1, %v1321_v47, %v1327_v59 }
 0x5b7   :  { %v1329_v15 = vpack.c.b16 %v1328_v39, %v1328_v39 }
 0x5b8   :  { %3897 = vmatpush3.bf16.msra.mxu0 %v4020_v11 }
 0x5b9   :  { %3898 = vmatprep.subr.bf16.mxu0 %v4064_v24 }
 0x5bc   :  { %3899 = vmatpush3.bf16.msra.mxu0 %v4021_v17 }
 0x61f   :  { %v1355_v51 = vpop.permute.xlu1 %1354 }
 0x620   :  { %v1358_v56 = vsel %vm5297_vm4, %v1329_v15, %v1355_v51 }
 0x621   :  { %3861 = vmatmul.mubr.msk.bf16.vlgmr.msra.gmra.mxu1 %vm5303_vm8, %v1358_v56 }
 0x622   :  { %3877 = vmatpush3.bf16.msra.mxu1 %v4014_v7 }
 0x623   :  { %3878 = vmatprep.subr.bf16.mxu1 %v4015_v27 }
 0x626   :  { %3879 = vmatpush3.bf16.msra.mxu1 %v4015_v27 }
 0x627   :  { %3880 = vmatprep.subr.bf16.mxu1 %v4016_v31 }
 0x62a   :  { %3881 = vmatpush3.bf16.msra.mxu1 %v4016_v31 }
 0x62b   :  { %3882 = vmatprep.subr.bf16.mxu1 %v4017_v50 }
 0x62e   :  { %3883 = vmatpush3.bf16.msra.mxu1 %v4017_v50 }
 0x65e   :  { %v3870_v62 = vpop.f32.mrf.mxu0 }
 0x660   :  { %v1516_v0 = vpop.f32.mrf.mxu0 }
 0x662   :  { %v3871_v5 = vpop.f32.mrf.mxu0 }
 0x664   :  { %v1519_v6 = vpop.f32.mrf.mxu0 }
 0x666   :  { %v3874_v8 = vpop.f32.mrf.mxu0 }
 0x668   :  { %v1532_v43 = vpop.f32.mrf.mxu0 }
 0x66a   :  { %v3875_v10 = vpop.f32.mrf.mxu0 }
 0x66c   :  { %v1535_v46 = vpop.f32.mrf.mxu0 }
 0x6e1   :  { %v4700_v14 = vpop.f32.mrf.mxu1 }
 0x6e2   :  { %v1429_v22 = vadd.f32 %v1428_v13, %v4700_v14  ;;  %v1810_v7 = vrot.slane %v4700_v14, %v4445_v28 }
 0x6e3   :  { %v3862_v16 = vpop.f32.mrf.mxu1 }
 0x6e4   :  { %v1548_v53 = vcombine.high %v1429_v22, %v1429_v22  ;;  %v1555_v30 = vrot.slane %v1429_v22, %v4445_v28 }
 0x6e5   :  { %v1422_v21 = vpop.f32.mrf.mxu1 }
 0x6e6   :  { %v1562_v45 = vrot.slane %v1548_v53, %v4445_v28  ;;  %v1563_v58 = vcombine.high %v1555_v30, %v1555_v30  ;;  %v1571_v48 = vrot.slane %v1555_v30, %v4445_v28 }
 0x6e7   :  { %v3863_v25 = vpop.f32.mrf.mxu1 }
 0x6e8   :  { %v1564_v63 = vcombine.high %v1562_v45, %v1562_v45  ;;  %v1578_v44 = vrot.slane %v1562_v45, %v4445_v28  ;;  %v1585_v61 = vrot.slane %v1563_v58, %v4445_v28  ;;  %v1593_v4 = vcombine.high %v1571_v48, %v1571_v48 }
 0x6e9   :  { %v1600_v57 = vrot.slane %v1571_v48, %v4226_v2  ;;  %v1818_v48 = vcombine.high %v1810_v7, %v1810_v7  ;;  %v1826_v25 = vrot.slane %v1810_v7, %v4445_v28 }
 0x6ea   :  { %v1592_v49 = vrot.slane %v1564_v63, %v4445_v28  ;;  %v1595_v32 = vcombine.high %v1585_v61, %v1585_v61  ;;  %v1604_v54 = vrot.slane %v1585_v61, %v4226_v2  ;;  %v1594_v60 = vcombine.high %v1578_v44, %v1578_v44 }
 0x6eb   :  { %v1637_v20 = vadd.f32 %v1600_v57, %v1516_v0  ;;  %v1608_v34 = vrot.slane %v1593_v4, %v4226_v2  ;;  %v1616_v19 = vrot.slane %v1578_v44, %v4226_v2 }
 0x6ec   :  { %v1638_v37 = vadd.f32 %v1604_v54, %v1519_v6  ;;  %v1612_v38 = vrot.slane %v1595_v32, %v4226_v2  ;;  %v1620_v40 = vrot.slane %v1592_v49, %v4226_v2  ;;  %v1596_v3 = vcombine.high %v1592_v49, %v1592_v49 }
 0x6ed   :  { %vm1645_vm9 = vcmp.gt.f32.partialorder %v1637_v20, 0.0  ;;  %v1653_v47 = vmul.f32 0.01, %v1637_v20  ;;  %v1639_v59 = vadd.f32 %v3870_v62, %v1608_v34  ;;  %v1641_v39 = vadd.f32 %v1616_v19, %v1532_v43 }
 0x6ee   :  { %vm1646_vm13 = vcmp.gt.f32.partialorder %v1638_v37, 0.0  ;;  %v1654_v15 = vmul.f32 0.01, %v1638_v37  ;;  %v1640_v51 = vadd.f32 %v3871_v5, %v1612_v38  ;;  %v1642_v56 = vadd.f32 %v1620_v40, %v1535_v46 }
 0x6ef   :  { %v1661_v27 = vsel %vm1645_vm9, %v1637_v20, %v1653_v47  ;;  %vm1647_vm2 = vcmp.gt.f32.partialorder %v1639_v59, 0.0  ;;  %v1655_v31 = vmul.f32 0.01, %v1639_v59  ;;  %vm1649_vm7 = vcmp.gt.f32.partialorder %v1641_v39, 0.0 }
 0x6f0   :  { %v1662_v50 = vsel %vm1646_vm13, %v1638_v37, %v1654_v15  ;;  %vm1648_vm3 = vcmp.gt.f32.partialorder %v1640_v51, 0.0  ;;  %v1656_v0 = vmul.f32 0.01, %v1640_v51  ;;  %vm1650_vm5 = vcmp.gt.f32.partialorder %v1642_v56, 0.0 }
 0x6f1   :  { %v1673_v9 = vpack.c.bf16 %v1662_v50, %v1661_v27  ;;  %v1657_v6 = vmul.f32 0.01, %v1641_v39  ;;  %v1658_v13 = vmul.f32 0.01, %v1642_v56  ;;  %v1663_v62 = vsel %vm1647_vm2, %v1639_v59, %v1655_v31 }
 0x6f2   :  { %v1664_v22 = vsel %vm1648_vm3, %v1640_v51, %v1656_v0  ;;  %v1624_v16 = vrot.slane %v1594_v60, %v4226_v2  ;;  %v1628_v5 = vrot.slane %v1596_v3, %v4226_v2  ;;  %v1803_v43 = vcombine.high %v4700_v14, %v4700_v14 }
 0x6f3   :  { %1681 = vrot.lane.b32.xlu0 %v1673_v9, %s4066_s4  ;;  %v1674_v53 = vpack.c.bf16 %v1664_v22, %v1663_v62  ;;  %v1666_v30 = vsel %vm1650_vm5, %v1642_v56, %v1658_v13  ;;  %v1665_v21 = vsel %vm1649_vm7, %v1641_v39, %v1657_v6  ;;  %v1848_v32 = vcombine.high %v1826_v25, %v1826_v25 }
 0x6f4   :  { %v1643_v45 = vadd.f32 %v3874_v8, %v1624_v16  ;;  %v1644_v58 = vadd.f32 %v3875_v10, %v1628_v5  ;;  %v1675_v63 = vpack.c.bf16 %v1666_v30, %v1665_v21  ;;  %v1817_v4 = vrot.slane %v1803_v43, %v4445_v28 }
 0x6f5   :  { %1683 = vrot.lane.b32.xlu1 %v1674_v53, %s4066_s4  ;;  %v1855_v8 = vrot.slane %v1826_v25, %v4226_v2  ;;  %v1840_v10 = vrot.slane %v1818_v48, %v4445_v28  ;;  %v1863_v20 = vrot.slane %v1848_v32, %v4226_v2  ;;  %vm5304_vm13 = vcmask 523264  }
 0x6f6   :  { %vm1651_vm8 = vcmp.gt.f32.partialorder %v1643_v45, 0.0  ;;  %vm1652_vm9 = vcmp.gt.f32.partialorder %v1644_v58, 0.0  ;;  %v1659_v44 = vmul.f32 0.01, %v1643_v45  ;;  %v1660_v61 = vmul.f32 0.01, %v1644_v58  ;;  %vm5305_vm2 = vmmov %vm5304_vm13 }
 0x6f7   :  { %1685 = vrot.lane.b32.xlu0 %v1675_v63, %s4066_s4  ;;  %v1819_v54 = vcombine.high %v1817_v4, %v1817_v4  ;;  %v1859_v60 = vrot.slane %v1840_v10, %v4226_v2  ;;  %v1850_v34 = vcombine.high %v1840_v10, %v1840_v10  ;;  %v1833_v19 = vrot.slane %v1817_v4, %v4445_v28  ;;  %vm5306_vm3 = vmmov %vm5305_vm2 }
 0x6f8   :  { %v1667_v57 = vsel %vm1651_vm8, %v1643_v45, %v1659_v44  ;;  %v1668_v49 = vsel %vm1652_vm9, %v1644_v58, %v1660_v61  ;;  %vm5307_vm5 = vmmov %vm5305_vm2 }
 0x6f9   :  { %v1676_v14 = vpack.c.bf16 %v1668_v49, %v1667_v57  ;;  %v1867_v37 = vrot.slane %v1850_v34, %v4226_v2  ;;  %v1871_v38 = vrot.slane %v1833_v19, %v4226_v2  ;;  %v1847_v40 = vrot.slane %v1819_v54, %v4445_v28 }
 0x6fa   :  { %v1849_v3 = vcombine.high %v1833_v19, %v1833_v19 }
 0x6fb   :  { %1687 = vrot.lane.b32.xlu1 %v1676_v14, %s4066_s4  ;;  %1884 = vrot.lane.b32.xlu0 %v1855_v8, %s4068_s15  ;;  %v1875_v46 = vrot.slane %v1847_v40, %v4226_v2  ;;  %v1851_v59 = vcombine.high %v1847_v40, %v1847_v40 }
 0x6fc   :  { %v1879_v47 = vrot.slane %v1849_v3, %v4226_v2 }
 0x6fd   :  { %v1883_v39 = vrot.slane %v1851_v59, %v4226_v2 }
 0x6ff   :  { %1886 = vrot.lane.b32.xlu1 %v1859_v60, %s4068_s15  ;;  %1888 = vrot.lane.b32.xlu0 %v1863_v20, %s4068_s15 }
 0x703   :  { %1890 = vrot.lane.b32.xlu1 %v1867_v37, %s4068_s15  ;;  %1892 = vrot.lane.b32.xlu0 %v1871_v38, %s4068_s15 }
 0x707   :  { %1894 = vrot.lane.b32.xlu1 %v1875_v46, %s4068_s15  ;;  %1896 = vrot.lane.b32.xlu0 %v1879_v47, %s4068_s15 }
 0x70b   :  { %1898 = vrot.lane.b32.xlu1 %v1883_v39, %s4068_s15 }
 0x765   :  { %v1682_v15 = vpop.permute.xlu0 %1681 }
 0x766   :  { %v1691_v51 = vsel %vm5297_vm4, %v1669_v18, %v1682_v15 }
 0x767   :  { %3884 = vmatprep.mubr.msk.bf16.mxu1 %vm5304_vm13, %v1691_v51  ;;  %v1684_v56 = vpop.permute.xlu1 %1683 }
 0x768   :  { %v1694_v7 = vsel %vm5297_vm4, %v1670_v35, %v1684_v56  ;;  %v1704_v35 = vrot.slane %v4697_v12, %v1703_v42 }
 0x769   :  { %3885 = vmatmul.mubr.msk.bf16.vlgmr.msra.gmra.mxu1 %vm5305_vm2, %v1694_v7  ;;  %v1686_v27 = vpop.permute.xlu0 %1685 }
 0x76a   :  { %v1697_v31 = vsel %vm5297_vm4, %v1671_v23, %v1686_v27 }
 0x76b   :  { %3888 = vmatprep.mubr.msk.bf16.mxu1 %vm5306_vm3, %v1697_v31 }
 0x76d   :  { %v1688_v41 = vpop.permute.xlu1 %1687  ;;  %v1885_v29 = vpop.permute.xlu0 %1884 }
 0x76e   :  { %v1700_v55 = vsel %vm5297_vm4, %v1672_v26, %v1688_v41 }
 0x771   :  { %3889 = vmatmul.mubr.msk.bf16.gmra.mxu1 %vm5307_vm5, %v1700_v55  ;;  %v1887_v18 = vpop.permute.xlu1 %1886  ;;  %v1889_v23 = vpop.permute.xlu0 %1888 }
 0x775   :  { %v1891_v0 = vpop.permute.xlu1 %1890  ;;  %v1893_v62 = vpop.permute.xlu0 %1892 }
 0x779   :  { %v1895_v58 = vpop.permute.xlu1 %1894  ;;  %v1897_v49 = vpop.permute.xlu0 %1896 }
 0x77d   :  { %v1899_v15 = vpop.permute.xlu1 %1898 }
 0x829   :  { %v3886_v26 = vpop.f32.mrf.mxu1 }
 0x82a   :  { %v1780_v50 = vadd.f32 %v3886_v26, %v1704_v35 }
 0x82b   :  { %v1771_v9 = vpop.f32.mrf.mxu1 }
 0x82c   :  { %v4783_v6 = vadd.f32 %v1889_v23, %v1780_v50  ;;  %v1772_v13 = vadd.f32 %v1771_v9, %v1704_v35 }
 0x82d   :  { %v3887_v22 = vpop.f32.mrf.mxu1 }
 0x82e   :  { %v1950_v16 = vsel %vm5297_vm4, %v4783_v6, -inf  ;;  %v4787_v5 = vadd.f32 %v1885_v29, %v1772_v13  ;;  %v1783_v30 = vadd.f32 %v3887_v22, %v1704_v35  ;;  %vm2158_vm7 = vcmp.gt.f32.partialorder %v4783_v6, 0.0 }
 0x82f   :  { %v1951_v53 = vrot.slane %v1950_v16, 4  ;;  %v1774_v43 = vpop.f32.mrf.mxu1  ;;  %v2166_v61 = vmul.f32 0.01, %v4783_v6 }
 0x830   :  { %v1936_v21 = vsel %vm5297_vm4, %v4787_v5, -inf  ;;  %v1775_v45 = vadd.f32 %v1774_v43, %v1704_v35  ;;  %v4791_v63 = vadd.f32 %v1891_v0, %v1783_v30  ;;  %vm2156_vm8 = vcmp.gt.f32.partialorder %v4787_v5, 0.0 }
 0x831   :  { %v1952_v48 = vmax.f32 %v1950_v16, %v1951_v53  ;;  %v1937_v25 = vrot.slane %v1936_v21, 4  ;;  %v3890_v44 = vpop.f32.mrf.mxu1  ;;  %v2164_v34 = vmul.f32 0.01, %v4787_v5  ;;  %v4810_v39 = vsel %vm2158_vm7, %v4783_v6, %v2166_v61 }
 0x832   :  { %v4795_v4 = vadd.f32 %v1887_v18, %v1775_v45  ;;  %v1796_v57 = vadd.f32 %v3890_v44, %v1704_v35  ;;  %v1957_v10 = vsel %vm5297_vm4, %v4791_v63, -inf  ;;  %v4838_v61 = vmul.f32 0.01, %v4791_v63 }
 0x833   :  { %v1953_v14 = vrot.slane %v1952_v48, 2  ;;  %v1938_v8 = vmax.f32 %v1936_v21, %v1937_v25  ;;  %v1787_v32 = vpop.f32.mrf.mxu1  ;;  %v1958_v54 = vrot.slane %v1957_v10, 4  ;;  %v4833_v45 = vsel %vm2156_vm8, %v4787_v5, %v2164_v34 }
 0x834   :  { %v1943_v60 = vsel %vm5297_vm4, %v4795_v4, -inf  ;;  %v4802_v20 = vadd.f32 %v1897_v49, %v1796_v57  ;;  %v1788_v40 = vadd.f32 %v1787_v32, %v1704_v35  ;;  %vm2159_vm5 = vcmp.gt.f32.partialorder %v4791_v63, 0.0 }
 0x835   :  { %v1954_v19 = vmax.f32 %v1952_v48, %v1953_v14  ;;  %v1939_v37 = vrot.slane %v1938_v8, 2  ;;  %v1944_v38 = vrot.slane %v1943_v60, 4  ;;  %v3891_v3 = vpop.f32.mrf.mxu1  ;;  %v1959_v46 = vmax.f32 %v1957_v10, %v1958_v54 }
 0x836   :  { %v1978_v47 = vsel %vm5297_vm4, %v4802_v20, -inf  ;;  %v1799_v59 = vadd.f32 %v3891_v3, %v1704_v35  ;;  %v4812_v55 = vadd.f32 %v1893_v62, %v1788_v40  ;;  %vm2157_vm8 = vcmp.gt.f32.partialorder %v4795_v4, 0.0 }
 0x837   :  { %v1955_v51 = vrot.slane %v1954_v19, 1  ;;  %v1940_v56 = vmax.f32 %v1938_v8, %v1939_v37  ;;  %v1945_v7 = vmax.f32 %v1943_v60, %v1944_v38  ;;  %v1979_v27 = vrot.slane %v1978_v47, 4  ;;  %v1790_v31 = vpop.f32.mrf.mxu1 }
 0x838   :  { %v1960_v41 = vrot.slane %v1959_v46, 2  ;;  %v4814_v33 = vadd.f32 %v1899_v15, %v1799_v59  ;;  %v1791_v52 = vadd.f32 %v1790_v31, %v1704_v35  ;;  %v1964_v23 = vsel %vm5297_vm4, %v4812_v55, -inf }
 0x839   :  { %v4816_v11 = vmax.f32 %v1954_v19, %v1955_v51  ;;  %v1941_v17 = vrot.slane %v1940_v56, 1  ;;  %v1946_v29 = vrot.slane %v1945_v7, 2  ;;  %v1980_v42 = vmax.f32 %v1978_v47, %v1979_v27 }
 0x83a   :  { %v1961_v18 = vmax.f32 %v1959_v46, %v1960_v41  ;;  %v1985_v26 = vsel %vm5297_vm4, %v4814_v33, -inf  ;;  %v4822_v50 = vadd.f32 %v1895_v58, %v1791_v52  ;;  %v1965_v62 = vrot.slane %v1964_v23, 4 }
 0x83b   :  { %v4824_v0 = vmax.f32 %v1940_v56, %v1941_v17  ;;  %v1947_v9 = vmax.f32 %v1945_v7, %v1946_v29  ;;  %v1981_v13 = vrot.slane %v1980_v42, 2  ;;  %v1986_v22 = vrot.slane %v1985_v26, 4 }
 0x83c   :  { %v1962_v35 = vrot.slane %v1961_v18, 1  ;;  %v1971_v16 = vsel %vm5297_vm4, %v4822_v50, -inf  ;;  %v2026_v53 = vpack.c.bf16 %v4816_v11, %v4816_v11  ;;  %v1966_v21 = vmax.f32 %v1964_v23, %v1965_v62 }
 0x83d   :  { %v1948_v30 = vrot.slane %v1947_v9, 1  ;;  %v1982_v43 = vmax.f32 %v1980_v42, %v1981_v13  ;;  %v1987_v48 = vmax.f32 %v1985_v26, %v1986_v22  ;;  %v1972_v25 = vrot.slane %v1971_v16, 4  ;;  %v4848_v42 = vld [vmem:[%s5287_s1 + $0xb8] sm:$0xff]  }
 0x83e   :  { %v1963_v58 = vmax.f32 %v1961_v18, %v1962_v35  ;;  %v2024_v44 = vpack.c.bf16 %v4824_v0, %v4824_v0  ;;  %v1967_v14 = vrot.slane %v1966_v21, 2  ;;  %v2066_v54 = vunpack.c.l.b16 %v2026_v53  ;;  %3904 = vmatprep.subr.bf16.mxu0 %v4848_v42 }
 0x83f   :  { %v1949_v57 = vmax.f32 %v1947_v9, %v1948_v30  ;;  %v1983_v49 = vrot.slane %v1982_v43, 1  ;;  %v1988_v8 = vrot.slane %v1987_v48, 2  ;;  %v1973_v10 = vmax.f32 %v1971_v16, %v1972_v25 }
 0x840   :  { %v2027_v32 = vpack.c.bf16 %v1963_v58, %v1963_v58  ;;  %v1968_v60 = vmax.f32 %v1966_v21, %v1967_v14  ;;  %v2064_v37 = vunpack.c.l.b16 %v2024_v44  ;;  %vm1994_vm13 = vcmp.gt.f32.partialorder %v4816_v11, 0.0 }
 0x841   :  { %v1984_v19 = vmax.f32 %v1982_v43, %v1983_v49  ;;  %v2025_v34 = vpack.c.bf16 %v1949_v57, %v1949_v57  ;;  %v2001_v38 = vmul.f32 0.01, %v1949_v57  ;;  %v1989_v40 = vmax.f32 %v1987_v48, %v1988_v8 }
 0x842   :  { %v1974_v3 = vrot.slane %v1973_v10, 2  ;;  %v2067_v46 = vunpack.c.l.b16 %v2027_v32  ;;  %v1969_v47 = vrot.slane %v1968_v60, 1  ;;  %vm1993_vm9 = vcmp.gt.f32.partialorder %v1949_v57, 0.0 }
 0x843   :  { %v2030_v59 = vpack.c.bf16 %v1984_v19, %v1984_v19  ;;  %v2065_v15 = vunpack.c.l.b16 %v2025_v34  ;;  %v1990_v56 = vrot.slane %v1989_v40, 1  ;;  %vm1995_vm2 = vcmp.gt.f32.partialorder %v1963_v58, 0.0 }
 0x844   :  { %v1975_v51 = vmax.f32 %v1973_v10, %v1974_v3  ;;  %v1970_v7 = vmax.f32 %v1968_v60, %v1969_v47  ;;  %vm1998_vm3 = vcmp.gt.f32.partialorder %v1984_v19, 0.0  ;;  %v2002_v29 = vmul.f32 0.01, %v4816_v11 }
 0x845   :  { %v2070_v27 = vunpack.c.l.b16 %v2030_v59  ;;  %v2072_v31 = vsel %vm589_vm10, %v2065_v15, %v2064_v37  ;;  %v1991_v52 = vmax.f32 %v1989_v40, %v1990_v56  ;;  %v2003_v26 = vmul.f32 0.01, %v1963_v58 }
 0x846   :  { %v1976_v41 = vrot.slane %v1975_v51, 1  ;;  %v2073_v17 = vsel %vm591_vm11, %v2066_v54, %v2072_v31  ;;  %v2028_v18 = vpack.c.bf16 %v1970_v7, %v1970_v7  ;;  %v2004_v9 = vmul.f32 0.01, %v1970_v7 }
 0x847   :  { %v2074_v23 = vsel %vm593_vm12, %v2067_v46, %v2073_v17  ;;  %v2031_v62 = vpack.c.bf16 %v1991_v52, %v1991_v52  ;;  %vm1996_vm7 = vcmp.gt.f32.partialorder %v1970_v7, 0.0  ;;  %v2006_v35 = vmul.f32 0.01, %v1984_v19 }
 0x848   :  { %v1977_v13 = vmax.f32 %v1975_v51, %v1976_v41  ;;  %v2068_v22 = vunpack.c.l.b16 %v2028_v18  ;;  %vm1999_vm6 = vcmp.gt.f32.partialorder %v1991_v52, 0.0  ;;  %v2007_v16 = vmul.f32 0.01, %v1991_v52 }
 0x849   :  { %v2009_v53 = vsel %vm1993_vm9, %v1949_v57, %v2001_v38  ;;  %v2010_v21 = vsel %vm1994_vm13, %v4816_v11, %v2002_v29  ;;  %v2011_v25 = vsel %vm1995_vm2, %v1963_v58, %v2003_v26  ;;  %v2012_v44 = vsel %vm1996_vm7, %v1970_v7, %v2004_v9 }
 0x84a   :  { %v2029_v30 = vpack.c.bf16 %v1977_v13, %v1977_v13  ;;  %vm1997_vm4 = vcmp.gt.f32.partialorder %v1977_v13, 0.0  ;;  %v2005_v43 = vmul.f32 0.01, %v1977_v13  ;;  %v2075_v48 = vsel %vm595_vm14, %v2068_v22, %v2074_v23 }
 0x84b   :  { %v2014_v49 = vsel %vm1998_vm3, %v1984_v19, %v2006_v35  ;;  %v2015_v10 = vsel %vm1999_vm6, %v1991_v52, %v2007_v16  ;;  %v2017_v32 = vpack.c.bf16 %v2009_v53, %v2009_v53  ;;  %v2018_v54 = vpack.c.bf16 %v2010_v21, %v2010_v21 }
 0x84c   :  { %v2069_v14 = vunpack.c.l.b16 %v2029_v30  ;;  %v2013_v8 = vsel %vm1997_vm4, %v1977_v13, %v2005_v43  ;;  %v2019_v57 = vpack.c.bf16 %v2011_v25, %v2011_v25  ;;  %v2020_v60 = vpack.c.bf16 %v2012_v44, %v2012_v44 }
 0x84d   :  { %v2021_v34 = vpack.c.bf16 %v2013_v8, %v2013_v8  ;;  %v2000_v37 = vmul.f32 0.01, %v4824_v0  ;;  %v2071_v38 = vunpack.c.l.b16 %v2031_v62  ;;  %v2022_v40 = vpack.c.bf16 %v2014_v49, %v2014_v49 }
 0x84e   :  { %v2076_v11 = vsel %vm597_vm15, %v2069_v14, %v2075_v48  ;;  %v2023_v58 = vpack.c.bf16 %v2015_v10, %v2015_v10  ;;  %v2041_v46 = vunpack.c.l.b16 %v2017_v32  ;;  %v2042_v47 = vunpack.c.l.b16 %v2018_v54 }
 0x84f   :  { %v2077_v3 = vsel %vm599_vm0, %v2070_v27, %v2076_v11  ;;  %v2043_v59 = vunpack.c.l.b16 %v2019_v57  ;;  %v2044_v15 = vunpack.c.l.b16 %v2020_v60  ;;  %v2045_v51 = vunpack.c.l.b16 %v2021_v34  ;;  %v4023_v57 = vld [vmem:[%s5287_s1 + $0xb0] sm:$0xff]   ;;  %v4024_v34 = vld [vmem:[%s5287_s1 + $0xd8] sm:$0xff]  }
 0x850   :  { %v2078_v19 = vsel %vm601_vm1, %v2071_v38, %v2077_v3  ;;  %vm1992_vm4 = vcmp.gt.f32.partialorder %v4824_v0, 0.0  ;;  %v2165_v7 = vmul.f32 0.01, %v4795_v4  ;;  %v2175_v31 = vsel %vm2159_vm5, %v4791_v63, %v4838_v61  ;;  %3916 = vmatprep.subr.bf16.mxu1 %v4024_v34  ;;  %v4027_v38 = vld [vmem:[%s5287_s1 + $0xc0] sm:$0xff]  }
 0x851   :  { %v2079_v56 = vpack.c.b16 %v2078_v19, %v2078_v19  ;;  %v2008_v27 = vsel %vm1992_vm4, %v4824_v0, %v2000_v37  ;;  %v2181_v41 = vpack.c.bf16 %v2175_v31, %v4810_v39  ;;  %vm2160_vm6 = vcmp.gt.f32.partialorder %v4812_v55, 0.0  ;;  %3917 = vmatpush3.bf16.msra.mxu1 %v4024_v34  ;;  %v4026_v37 = vld [vmem:[%s5287_s1 + $0xc8] sm:$0xff]  }
 0x852   :  { %vm2161_vm9 = vcmp.gt.f32.partialorder %v4822_v50, 0.0  ;;  %v2016_v52 = vpack.c.bf16 %v2008_v27, %v2008_v27  ;;  %v2173_v17 = vsel %vm2157_vm8, %v4795_v4, %v2165_v7  ;;  %v2168_v29 = vmul.f32 0.01, %v4812_v55 }
 0x853   :  { %2080 = vrot.lane.b32.xlu0 %v2079_v56, %s4066_s4  ;;  %v2169_v18 = vmul.f32 0.01, %v4822_v50  ;;  %v2180_v61 = vpack.c.bf16 %v2173_v17, %v4833_v45  ;;  %vm2162_vm13 = vcmp.gt.f32.partialorder %v4802_v20, 0.0  ;;  %vm2163_vm2 = vcmp.gt.f32.partialorder %v4814_v33, 0.0 }
 0x854   :  { %v2170_v39 = vmul.f32 0.01, %v4802_v20  ;;  %v2040_v0 = vunpack.c.l.b16 %v2016_v52  ;;  %v2176_v23 = vsel %vm2160_vm6, %v4812_v55, %v2168_v29  ;;  %v2171_v9 = vmul.f32 0.01, %v4814_v33 }
 0x855   :  { %v2177_v26 = vsel %vm2161_vm9, %v4822_v50, %v2169_v18  ;;  %v2396_v35 = vpack.c.bf16 %v4791_v63, %v4783_v6  ;;  %v2395_v45 = vpack.c.bf16 %v4795_v4, %v4787_v5  ;;  %v2398_v53 = vpack.c.bf16 %v4814_v33, %v4802_v20  ;;  %v4028_v5 = vld [vmem:[%s5287_s1 + $0xe8] sm:$0xff]   ;;  %v4029_v63 = vld [vmem:[%s5287_s1 + $0xe0] sm:$0xff]  }
 0x856   :  { %v2182_v13 = vpack.c.bf16 %v2177_v26, %v2176_v23  ;;  %v2178_v62 = vsel %vm2162_vm13, %v4802_v20, %v2170_v39  ;;  %v2048_v22 = vsel %vm589_vm10, %v2041_v46, %v2040_v0  ;;  %v2179_v16 = vsel %vm2163_vm2, %v4814_v33, %v2171_v9  ;;  %v4030_v4 = vld [vmem:[%s5288_s2 + $0x7c] sm:$0xff]   ;;  %v4031_v20 = vld [vmem:[%s5288_s2 + $0x74] sm:$0xff]   ;;  %v4033_v33 = vld [vmem:[%s5288_s2 + $0x64] sm:$0xff]  }
 0x857   :  { %v2397_v30 = vpack.c.bf16 %v4822_v50, %v4812_v55  ;;  %v2049_v43 = vsel %vm591_vm11, %v2042_v47, %v2048_v22  ;;  %v2183_v21 = vpack.c.bf16 %v2179_v16, %v2178_v62  ;;  %v2046_v25 = vunpack.c.l.b16 %v2022_v40  ;;  %v4032_v55 = vld [vmem:[%s5288_s2 + $0x6c] sm:$0xff]  }
 0x858   :  { %v2050_v48 = vsel %vm593_vm12, %v2043_v59, %v2049_v43  ;;  %v2047_v49 = vunpack.c.l.b16 %v2023_v58  ;;  %vm5308_vm3 = vcmask 261120   ;;  %vm5309_vm5 = vcmask 523264  }
 0x859   :  { %v2051_v44 = vsel %vm595_vm14, %v2044_v15, %v2050_v48  ;;  %vm5310_vm7 = vmmov %vm5308_vm3  ;;  %vm5314_vm9 = vmmov 0   ;;  %v2153_v11 = vsub.s32 6, %v4223_v1 }
 0x85a   :  { %v2052_v14 = vsel %vm597_vm15, %v2045_v51, %v2051_v44  ;;  %vm5311_vm8 = vmmov %vm5308_vm3 }
 0x85b   :  { %v2053_v8 = vsel %vm599_vm0, %v2046_v25, %v2052_v14  ;;  %vm5312_vm4 = vmmov %vm5308_vm3  ;;  %v2154_v40 = vrot.slane %v4697_v12, %v2153_v11 }
 0x85c   :  { %v2054_v10 = vsel %vm601_vm1, %v2047_v49, %v2053_v8  ;;  %vm5313_vm6 = vmmov %vm5308_vm3 }
 0x85d   :  { %v2055_v32 = vpack.c.b16 %v2054_v10, %v2054_v10 }
 0x8c5   :  { %v2081_v54 = vpop.permute.xlu0 %2080 }
 0x8c6   :  { %v2084_v60 = vsel %vm5308_vm3, %v2055_v32, %v2081_v54 }
 0x8c7   :  { %3901 = vmatmul.mubr.msk.bf16.vlgmr.msra.gmra.mxu0 %vm5309_vm5, %v2084_v60 }
 0x8c8   :  { %3905 = vmatpush3.bf16.msra.mxu0 %v4848_v42  ;;  %3908 = vmatprep.mubr.msk.bf16.mxu0 %vm5310_vm7, %v2180_v61  ;;  %v4025_v42 = vld [vmem:[%s5287_s1 + $0xd0] sm:$0xff]  }
 0x8c9   :  { %3906 = vmatprep.subr.bf16.mxu0 %v4023_v57  ;;  %3918 = vmatprep.subr.bf16.mxu1 %v4025_v42 }
 0x8ca   :  { %3919 = vmatpush3.bf16.msra.mxu1 %v4025_v42 }
 0x8cb   :  { %3920 = vmatprep.subr.bf16.mxu1 %v4026_v37 }
 0x8cc   :  { %3907 = vmatpush3.bf16.msra.mxu0 %v4023_v57 }
 0x8cd   :  { %3932 = vmatprep.subr.bf16.mxu0 %v4064_v24 }
 0x8ce   :  { %3921 = vmatpush3.bf16.msra.mxu1 %v4026_v37 }
 0x8cf   :  { %3909 = vmatmul.mubr.msk.bf16.vlgmr.msra.gmra.mxu0 %vm5311_vm8, %v2181_v41  ;;  %3922 = vmatprep.subr.bf16.mxu1 %v4027_v38 }
 0x8d0   :  { %3912 = vmatprep.mubr.msk.bf16.mxu0 %vm5312_vm4, %v2182_v13  ;;  %3933 = vmatpush3.bf16.msra.mxu0 %v4030_v4 }
 0x8d1   :  { %3934 = vmatprep.subr.bf16.mxu0 %v4064_v24 }
 0x8d2   :  { %3923 = vmatpush3.bf16.msra.mxu1 %v4027_v38 }
 0x8d3   :  { %3944 = vmatprep.subr.bf16.mxu1 %v4028_v5 }
 0x8d4   :  { %3935 = vmatpush3.bf16.msra.mxu0 %v4031_v20 }
 0x8d5   :  { %3936 = vmatprep.subr.bf16.mxu0 %v4064_v24 }
 0x8d7   :  { %3913 = vmatmul.mubr.msk.bf16.gmra.mxu0 %vm5313_vm6, %v2183_v21 }
 0x8d8   :  { %3940 = vmatprep.mubr.msk.bf16.mxu0 %vm5314_vm9, %v4064_v24  ;;  %3937 = vmatpush3.bf16.msra.mxu0 %v4032_v55 }
 0x8d9   :  { %3938 = vmatprep.subr.bf16.mxu0 %v4064_v24 }
 0x8dc   :  { %3939 = vmatpush3.bf16.msra.mxu0 %v4033_v33 }
 0x987   :  { %v4931_v3 = vpop.f32.mrf.mxu0 }
 0x988   :  { %v2155_v58 = vadd.f32 %v2154_v40, %v4931_v3  ;;  %v2536_v57 = vrot.slane %v4931_v3, %v4445_v28 }
 0x989   :  { %v3902_v46 = vpop.f32.mrf.mxu0 }
 0x98a   :  { %v2274_v47 = vcombine.high %v2155_v58, %v2155_v58  ;;  %v2281_v19 = vrot.slane %v2155_v58, %v4445_v28 }
 0x98b   :  { %v2148_v59 = vpop.f32.mrf.mxu0 }
 0x98c   :  { %v2288_v15 = vrot.slane %v2274_v47, %v4445_v28  ;;  %v2289_v51 = vcombine.high %v2281_v19, %v2281_v19  ;;  %v2297_v56 = vrot.slane %v2281_v19, %v4445_v28 }
 0x98d   :  { %v3903_v7 = vpop.f32.mrf.mxu0 }
 0x98e   :  { %v2319_v31 = vcombine.high %v2297_v56, %v2297_v56  ;;  %v2311_v27 = vrot.slane %v2289_v51, %v4445_v28  ;;  %v2304_v41 = vrot.slane %v2288_v15, %v4445_v28  ;;  %v2290_v17 = vcombine.high %v2288_v15, %v2288_v15 }
 0x98f   :  { %v3910_v52 = vpop.f32.mrf.mxu0  ;;  %v2326_v39 = vrot.slane %v2297_v56, %v4226_v2  ;;  %v2529_v51 = vcombine.high %v4931_v3, %v4931_v3  ;;  %v2544_v56 = vcombine.high %v2536_v57, %v2536_v57 }
 0x990   :  { %v2334_v29 = vrot.slane %v2319_v31, %v4226_v2  ;;  %v2321_v18 = vcombine.high %v2311_v27, %v2311_v27  ;;  %v2320_v26 = vcombine.high %v2304_v41, %v2304_v41  ;;  %v2318_v9 = vrot.slane %v2290_v17, %v4445_v28 }
 0x991   :  { %v2242_v61 = vpop.f32.mrf.mxu0  ;;  %v2330_v22 = vrot.slane %v2311_v27, %v4226_v2  ;;  %v2342_v10 = vrot.slane %v2304_v41, %v4226_v2 }
 0x992   :  { %v2365_v0 = vadd.f32 %v3910_v52, %v2334_v29  ;;  %v2338_v23 = vrot.slane %v2321_v18, %v4226_v2  ;;  %v2363_v13 = vadd.f32 %v2326_v39, %v2242_v61  ;;  %v2350_v25 = vrot.slane %v2320_v26, %v4226_v2 }
 0x993   :  { %v3911_v62 = vpop.f32.mrf.mxu0  ;;  %v2322_v44 = vcombine.high %v2318_v9, %v2318_v9  ;;  %v2346_v15 = vrot.slane %v2318_v9, %v4226_v2  ;;  %v2543_v18 = vrot.slane %v2529_v51, %v4445_v28  ;;  %v2566_v39 = vrot.slane %v2544_v56, %v4445_v28 }
 0x994   :  { %v2381_v16 = vmul.f32 0.01, %v2365_v0  ;;  %v2366_v43 = vadd.f32 %v3911_v62, %v2338_v23  ;;  %vm2373_vm13 = vcmp.gt.f32.partialorder %v2365_v0, 0.0  ;;  %v2379_v49 = vmul.f32 0.01, %v2363_v13 }
 0x995   :  { %v2245_v21 = vpop.f32.mrf.mxu0  ;;  %vm2371_vm3 = vcmp.gt.f32.partialorder %v2363_v13, 0.0  ;;  %v2354_v11 = vrot.slane %v2322_v44, %v4226_v2  ;;  %v2552_v23 = vrot.slane %v2536_v57, %v4445_v28  ;;  %v2545_v9 = vcombine.high %v2543_v18, %v2543_v18 }
 0x996   :  { %v2364_v48 = vadd.f32 %v2330_v22, %v2245_v21  ;;  %vm2374_vm2 = vcmp.gt.f32.partialorder %v2366_v43, 0.0  ;;  %v2382_v14 = vmul.f32 0.01, %v2366_v43  ;;  %v2389_v34 = vsel %vm2373_vm13, %v2365_v0, %v2381_v16 }
 0x997   :  { %v3914_v8 = vpop.f32.mrf.mxu0  ;;  %v2387_v58 = vsel %vm2371_vm3, %v2363_v13, %v2379_v49  ;;  %v2585_v13 = vrot.slane %v2566_v39, %v4226_v2  ;;  %v2576_v62 = vcombine.high %v2566_v39, %v2566_v39  ;;  %v2581_v22 = vrot.slane %v2552_v23, %v4226_v2 }
 0x998   :  { %vm2372_vm5 = vcmp.gt.f32.partialorder %v2364_v48, 0.0  ;;  %v2380_v32 = vmul.f32 0.01, %v2364_v48  ;;  %v2369_v54 = vadd.f32 %v3914_v8, %v2350_v25  ;;  %v2390_v42 = vsel %vm2374_vm2, %v2366_v43, %v2382_v14 }
 0x999   :  { %v2258_v60 = vpop.f32.mrf.mxu0  ;;  %v2400_v38 = vpack.c.bf16 %v2390_v42, %v2389_v34  ;;  %v2574_v16 = vcombine.high %v2552_v23, %v2552_v23  ;;  %v2593_v43 = vrot.slane %v2576_v62, %v4226_v2  ;;  %v2573_v21 = vrot.slane %v2545_v9, %v4445_v28 }
 0x99a   :  { %v2367_v37 = vadd.f32 %v2342_v10, %v2258_v60  ;;  %v2388_v46 = vsel %vm2372_vm5, %v2364_v48, %v2380_v32  ;;  %v2385_v47 = vmul.f32 0.01, %v2369_v54  ;;  %vm2377_vm7 = vcmp.gt.f32.partialorder %v2369_v54, 0.0 }
 0x99b   :  { %v3915_v40 = vpop.f32.mrf.mxu0  ;;  %2409 = vrot.lane.b32.xlu0 %v2400_v38, %s4066_s4  ;;  %v2399_v59 = vpack.c.bf16 %v2388_v46, %v2387_v58  ;;  %v2589_v48 = vrot.slane %v2574_v16, %v4226_v2  ;;  %v2559_v25 = vrot.slane %v2543_v18, %v4445_v28  ;;  %v2601_v44 = vrot.slane %v2573_v21, %v4226_v2 }
 0x99c   :  { %v2370_v19 = vadd.f32 %v3915_v40, %v2354_v11  ;;  %v2383_v31 = vmul.f32 0.01, %v2367_v37  ;;  %vm2375_vm4 = vcmp.gt.f32.partialorder %v2367_v37, 0.0  ;;  %v2393_v17 = vsel %vm2377_vm7, %v2369_v54, %v2385_v47 }
 0x99d   :  { %v2261_v7 = vpop.f32.mrf.mxu0  ;;  %2407 = vrot.lane.b32.xlu1 %v2399_v59, %s4066_s4  ;;  %v2577_v49 = vcombine.high %v2573_v21, %v2573_v21  ;;  %v2597_v14 = vrot.slane %v2559_v25, %v4226_v2  ;;  %v2575_v8 = vcombine.high %v2559_v25, %v2559_v25  ;;  %vm5315_vm13 = vcmask 261120  }
 0x99e   :  { %vm2378_vm8 = vcmp.gt.f32.partialorder %v2370_v19, 0.0  ;;  %v2386_v27 = vmul.f32 0.01, %v2370_v19  ;;  %v2368_v41 = vadd.f32 %v2346_v15, %v2261_v7  ;;  %v2391_v3 = vsel %vm2375_vm4, %v2367_v37, %v2383_v31  ;;  %vm5316_vm2 = vmmov %vm5315_vm13 }
 0x99f   :  { %v2609_v10 = vrot.slane %v2577_v49, %v4226_v2  ;;  %v2605_v32 = vrot.slane %v2575_v8, %v4226_v2  ;;  %vm5317_vm3 = vcmask 523264   ;;  %vm5319_vm7 = vmmov %vm5316_vm2 }
 0x9a0   :  { %vm2376_vm6 = vcmp.gt.f32.partialorder %v2368_v41, 0.0  ;;  %v2384_v52 = vmul.f32 0.01, %v2368_v41  ;;  %v2394_v29 = vsel %vm2378_vm8, %v2370_v19, %v2386_v27  ;;  %vm5318_vm5 = vmmov %vm5317_vm3 }
 0x9a1   :  { %v2402_v61 = vpack.c.bf16 %v2394_v29, %v2393_v17  ;;  %vm5320_vm8 = vmmov %vm5317_vm3 }
 0x9a2   :  { %v2392_v0 = vsel %vm2376_vm6, %v2368_v41, %v2384_v52  ;;  %vm5321_vm4 = vmmov %vm5316_vm2 }
 0x9a3   :  { %2413 = vrot.lane.b32.xlu0 %v2402_v61, %s4066_s4  ;;  %v2401_v26 = vpack.c.bf16 %v2392_v0, %v2391_v3  ;;  %vm5322_vm6 = vmmov %vm5317_vm3 }
 0x9a5   :  { %2411 = vrot.lane.b32.xlu1 %v2401_v26, %s4066_s4 }
 0x9a7   :  { %2612 = vrot.lane.b32.xlu0 %v2585_v13, %s4068_s15 }
 0x9a9   :  { %2610 = vrot.lane.b32.xlu1 %v2581_v22, %s4068_s15 }
 0x9ab   :  { %2616 = vrot.lane.b32.xlu0 %v2593_v43, %s4068_s15 }
 0x9ad   :  { %2614 = vrot.lane.b32.xlu1 %v2589_v48, %s4068_s15 }
 0x9af   :  { %2620 = vrot.lane.b32.xlu0 %v2601_v44, %s4068_s15 }
 0x9b1   :  { %2618 = vrot.lane.b32.xlu1 %v2597_v14, %s4068_s15 }
 0x9b3   :  { %2624 = vrot.lane.b32.xlu0 %v2609_v10, %s4068_s15 }
 0x9b5   :  { %2622 = vrot.lane.b32.xlu1 %v2605_v32, %s4068_s15 }
 0xa0d   :  { %v2410_v54 = vpop.permute.xlu0 %2409 }
 0xa0e   :  { %v2420_v34 = vsel %vm5316_vm2, %v2396_v35, %v2410_v54  ;;  %v2429_v35 = vsub.s32 7, %v4223_v1 }
 0xa0f   :  { %v2408_v57 = vpop.permute.xlu1 %2407 }
 0xa10   :  { %v2417_v60 = vsel %vm5315_vm13, %v2395_v45, %v2408_v57  ;;  %vm5323_vm13 = vmmov %vm5316_vm2 }
 0xa11   :  { %3924 = vmatprep.mubr.msk.bf16.mxu1 %vm5317_vm3, %v2417_v60  ;;  %vm5324_vm3 = vmmov %vm5321_vm4 }
 0xa12   :  { %3925 = vmatmul.mubr.msk.bf16.vlgmr.msra.gmra.mxu1 %vm5318_vm5, %v2420_v34  ;;  %vm5325_vm5 = vmmov %vm5324_vm3 }
 0xa13   :  { %3945 = vmatpush3.bf16.msra.mxu1 %v4028_v5 }
 0xa14   :  { %3946 = vmatprep.subr.bf16.mxu1 %v4029_v63 }
 0xa15   :  { %v2414_v42 = vpop.permute.xlu0 %2413 }
 0xa16   :  { %v2426_v6 = vsel %vm5321_vm4, %v2398_v53, %v2414_v42  ;;  %v2430_v53 = vrot.slane %v4697_v12, %v2429_v35 }
 0xa17   :  { %v2412_v37 = vpop.permute.xlu1 %2411  ;;  %3947 = vmatpush3.bf16.msra.mxu1 %v4029_v63 }
 0xa18   :  { %v2423_v38 = vsel %vm5319_vm7, %v2397_v30, %v2412_v37  ;;  %3972 = vmatprep.subr.bf16.mxu1 %v4064_v24 }
 0xa19   :  { %3928 = vmatprep.mubr.msk.bf16.mxu1 %vm5320_vm8, %v2423_v38  ;;  %v2613_v45 = vpop.permute.xlu0 %2612  ;;  %vm5326_vm8 = vmmov %vm5324_vm3 }
 0xa1a   :  { %3929 = vmatmul.mubr.msk.bf16.gmra.mxu1 %vm5322_vm6, %v2426_v6  ;;  %vm5327_vm6 = vmmov %vm5324_vm3 }
 0xa1b   :  { %v2611_v50 = vpop.permute.xlu1 %2610 }
 0xa1d   :  { %v2617_v58 = vpop.permute.xlu0 %2616 }
 0xa1f   :  { %v2615_v30 = vpop.permute.xlu1 %2614 }
 0xa21   :  { %v2621_v17 = vpop.permute.xlu0 %2620 }
 0xa23   :  { %v2619_v59 = vpop.permute.xlu1 %2618 }
 0xa25   :  { %v2625_v34 = vpop.permute.xlu0 %2624 }
 0xa27   :  { %v2623_v9 = vpop.permute.xlu1 %2622 }
 0xad2   :  { %v3926_v11 = vpop.f32.mrf.mxu1 }
 0xad3   :  { %v2506_v40 = vadd.f32 %v3926_v11, %v2430_v53 }
 0xad4   :  { %v2497_v46 = vpop.f32.mrf.mxu1 }
 0xad5   :  { %v5021_v47 = vadd.f32 %v2615_v30, %v2506_v40  ;;  %v2498_v19 = vadd.f32 %v2497_v46, %v2430_v53 }
 0xad6   :  { %v3927_v15 = vpop.f32.mrf.mxu1 }
 0xad7   :  { %v2676_v51 = vsel %vm5323_vm13, %v5021_v47, -inf  ;;  %v2892_v56 = vmul.f32 0.01, %v5021_v47  ;;  %v5026_v7 = vadd.f32 %v2611_v50, %v2498_v19  ;;  %vm2884_vm2 = vcmp.gt.f32.partialorder %v5021_v47, 0.0  ;;  %vm5328_vm13 = vmmov %vm5324_vm3 }
 0xad8   :  { %v2677_v31 = vrot.slane %v2676_v51, 4  ;;  %v2509_v12 = vadd.f32 %v3927_v15, %v2430_v53  ;;  %v2500_v27 = vpop.f32.mrf.mxu1 }
 0xad9   :  { %v2662_v41 = vsel %vm5324_vm3, %v5026_v7, -inf  ;;  %v2501_v52 = vadd.f32 %v2500_v27, %v2430_v53  ;;  %v5034_v3 = vsel %vm2884_vm2, %v5021_v47, %v2892_v56  ;;  %v2890_v26 = vmul.f32 0.01, %v5026_v7  ;;  %vm5329_vm2 = vmmov %vm5324_vm3 }
 0xada   :  { %v2678_v29 = vmax.f32 %v2676_v51, %v2677_v31  ;;  %v2663_v18 = vrot.slane %v2662_v41, 4  ;;  %v5031_v61 = vadd.f32 %v2617_v58, %v2509_v12  ;;  %v3930_v39 = vpop.f32.mrf.mxu1  ;;  %vm2882_vm4 = vcmp.gt.f32.partialorder %v5026_v7, 0.0 }
 0xadb   :  { %v5036_v0 = vadd.f32 %v2613_v45, %v2501_v52  ;;  %v2522_v23 = vadd.f32 %v3930_v39, %v2430_v53 }
 0xadc   :  { %v2679_v13 = vrot.slane %v2678_v29, 2  ;;  %v2664_v62 = vmax.f32 %v2662_v41, %v2663_v18  ;;  %v2683_v22 = vsel %vm5325_vm5, %v5031_v61, -inf  ;;  %vm2885_vm7 = vcmp.gt.f32.partialorder %v5031_v61, 0.0  ;;  %v2513_v16 = vpop.f32.mrf.mxu1  ;;  %vm5330_vm5 = vmmov %vm5329_vm2 }
 0xadd   :  { %v2684_v43 = vrot.slane %v2683_v22, 4  ;;  %v2893_v21 = vmul.f32 0.01, %v5031_v61  ;;  %v2669_v48 = vsel %vm5326_vm8, %v5036_v0, -inf  ;;  %v5045_v25 = vadd.f32 %v2623_v9, %v2522_v23 }
 0xade   :  { %v2680_v44 = vmax.f32 %v2678_v29, %v2679_v13  ;;  %v2665_v49 = vrot.slane %v2664_v62, 2  ;;  %v2670_v14 = vrot.slane %v2669_v48, 4  ;;  %v2514_v8 = vadd.f32 %v2513_v16, %v2430_v53  ;;  %v3931_v10 = vpop.f32.mrf.mxu1 }
 0xadf   :  { %v2685_v32 = vmax.f32 %v2683_v22, %v2684_v43  ;;  %v5049_v54 = vsel %vm2885_vm7, %v5031_v61, %v2893_v21  ;;  %v2704_v57 = vsel %vm5327_vm6, %v5045_v25, -inf  ;;  %v2525_v60 = vadd.f32 %v3931_v10, %v2430_v53 }
 0xae0   :  { %v2681_v42 = vrot.slane %v2680_v44, 1  ;;  %v2666_v37 = vmax.f32 %v2664_v62, %v2665_v49  ;;  %v2907_v38 = vpack.c.bf16 %v5049_v54, %v5034_v3  ;;  %v2671_v6 = vmax.f32 %v2669_v48, %v2670_v14  ;;  %v2516_v5 = vpop.f32.mrf.mxu1 }
 0xae1   :  { %v2686_v63 = vrot.slane %v2685_v32, 2  ;;  %v2705_v4 = vrot.slane %v2704_v57, 4  ;;  %v5055_v20 = vadd.f32 %v2619_v59, %v2514_v8  ;;  %v5057_v55 = vadd.f32 %v2625_v34, %v2525_v60 }
 0xae2   :  { %v5059_v33 = vmax.f32 %v2680_v44, %v2681_v42  ;;  %v2667_v50 = vrot.slane %v2666_v37, 1  ;;  %v2672_v35 = vrot.slane %v2671_v6, 2  ;;  %v2517_v45 = vadd.f32 %v2516_v5, %v2430_v53 }
 0xae3   :  { %v2687_v30 = vmax.f32 %v2685_v32, %v2686_v63  ;;  %v2706_v11 = vmax.f32 %v2704_v57, %v2705_v4  ;;  %v2690_v40 = vsel %vm5328_vm13, %v5055_v20, -inf  ;;  %v2711_v58 = vsel %vm5329_vm2, %v5057_v55, -inf  ;;  %vm5331_vm13 = vmmov %vm5329_vm2 }
 0xae4   :  { %v5065_v46 = vmax.f32 %v2666_v37, %v2667_v50  ;;  %v2673_v19 = vmax.f32 %v2671_v6, %v2672_v35  ;;  %v2691_v59 = vrot.slane %v2690_v40, 4  ;;  %v2712_v15 = vrot.slane %v2711_v58, 4 }
 0xae5   :  { %v2688_v51 = vrot.slane %v2687_v30, 1  ;;  %v2707_v56 = vrot.slane %v2706_v11, 2  ;;  %v5067_v31 = vadd.f32 %v2621_v17, %v2517_v45  ;;  %vm2883_vm3 = vcmp.gt.f32.partialorder %v5036_v0, 0.0 }
 0xae6   :  { %v5071_v53 = vmul.f32 0.01, %v5065_v46  ;;  %v2674_v12 = vrot.slane %v2673_v19, 1  ;;  %v2692_v27 = vmax.f32 %v2690_v40, %v2691_v59  ;;  %v2713_v41 = vmax.f32 %v2711_v58, %v2712_v15 }
 0xae7   :  { %v5073_v52 = vmax.f32 %v2687_v30, %v2688_v51  ;;  %v2708_v29 = vmax.f32 %v2706_v11, %v2707_v56  ;;  %v2697_v18 = vsel %vm5330_vm5, %v5067_v31, -inf  ;;  %v2891_v39 = vmul.f32 0.01, %v5036_v0 }
 0xae8   :  { %v5078_v3 = vmax.f32 %v2673_v19, %v2674_v12  ;;  %v2693_v17 = vrot.slane %v2692_v27, 2  ;;  %v2714_v23 = vrot.slane %v2713_v41, 2  ;;  %v2698_v9 = vrot.slane %v2697_v18, 4 }
 0xae9   :  { %v2709_v13 = vrot.slane %v2708_v29, 1  ;;  %v2898_v62 = vsel %vm2882_vm4, %v5026_v7, %v2890_v26  ;;  %v2899_v22 = vsel %vm2883_vm3, %v5036_v0, %v2891_v39  ;;  %vm2886_vm7 = vcmp.gt.f32.partialorder %v5055_v20, 0.0  ;;  %vm5332_vm3 = vmmov %vm5329_vm2 }
 0xaea   :  { %v5086_v16 = vmul.f32 0.01, %v5078_v3  ;;  %v2694_v43 = vmax.f32 %v2692_v27, %v2693_v17  ;;  %v2715_v21 = vmax.f32 %v2713_v41, %v2714_v23  ;;  %v2699_v48 = vmax.f32 %v2697_v18, %v2698_v9 }
 0xaeb   :  { %v2906_v44 = vpack.c.bf16 %v2899_v22, %v2898_v62  ;;  %vm2887_vm8 = vcmp.gt.f32.partialorder %v5067_v31, 0.0  ;;  %v2894_v49 = vmul.f32 0.01, %v5055_v20  ;;  %v2895_v14 = vmul.f32 0.01, %v5067_v31 }
 0xaec   :  { %v2695_v8 = vrot.slane %v2694_v43, 1  ;;  %v2700_v10 = vrot.slane %v2699_v48, 2  ;;  %vm2888_vm4 = vcmp.gt.f32.partialorder %v5045_v25, 0.0  ;;  %vm2889_vm6 = vcmp.gt.f32.partialorder %v5057_v55, 0.0 }
 0xaed   :  { %3948 = vmatprep.mubr.msk.bf16.mxu1 %vm5331_vm13, %v2906_v44  ;;  %v2902_v26 = vsel %vm2886_vm7, %v5055_v20, %v2894_v49  ;;  %v2903_v32 = vsel %vm2887_vm8, %v5067_v31, %v2895_v14  ;;  %v2896_v54 = vmul.f32 0.01, %v5045_v25  ;;  %v2897_v57 = vmul.f32 0.01, %v5057_v55 }
 0xaee   :  { %v2696_v60 = vmax.f32 %v2694_v43, %v2695_v8  ;;  %v2701_v34 = vmax.f32 %v2699_v48, %v2700_v10  ;;  %3949 = vmatmul.mubr.msk.bf16.vlgmr.msra.gmra.mxu1 %vm5329_vm2, %v2907_v38  ;;  %v2908_v42 = vpack.c.bf16 %v2903_v32, %v2902_v26  ;;  %v5099_v37 = vmax.f32 %v2708_v29, %v2709_v13 }
 0xaef   :  { %v2904_v6 = vsel %vm2888_vm4, %v5045_v25, %v2896_v54  ;;  %v2905_v5 = vsel %vm2889_vm6, %v5057_v55, %v2897_v57  ;;  %v2716_v63 = vrot.slane %v2715_v21, 1  ;;  %v2750_v4 = vpack.c.bf16 %v5065_v46, %v5065_v46  ;;  %vm5333_vm6 = vmmov %vm5329_vm2 }
 0xaf0   :  { %v2702_v50 = vrot.slane %v2701_v34, 1  ;;  %3952 = vmatprep.mubr.msk.bf16.mxu1 %vm5332_vm3, %v2908_v42  ;;  %v2909_v35 = vpack.c.bf16 %v2905_v5, %v2904_v6  ;;  %v2751_v45 = vpack.c.bf16 %v5078_v3, %v5078_v3  ;;  %v2752_v38 = vpack.c.bf16 %v5059_v33, %v5059_v33 }
 0xaf1   :  { %v2717_v30 = vmax.f32 %v2715_v21, %v2716_v63  ;;  %v2753_v11 = vpack.c.bf16 %v5073_v52, %v5073_v52  ;;  %v2754_v40 = vpack.c.bf16 %v2696_v60, %v2696_v60  ;;  %v2756_v58 = vpack.c.bf16 %v5099_v37, %v5099_v37 }
 0xaf2   :  { %v2703_v19 = vmax.f32 %v2701_v34, %v2702_v50  ;;  %v2790_v59 = vunpack.c.l.b16 %v2750_v4  ;;  %v2791_v15 = vunpack.c.l.b16 %v2751_v45  ;;  %v2792_v51 = vunpack.c.l.b16 %v2752_v38 }
 0xaf3   :  { %v2757_v56 = vpack.c.bf16 %v2717_v30, %v2717_v30  ;;  %v2793_v12 = vunpack.c.l.b16 %v2753_v11  ;;  %v2794_v27 = vunpack.c.l.b16 %v2754_v40  ;;  %v2796_v41 = vunpack.c.l.b16 %v2756_v58 }
 0xaf4   :  { %v2755_v29 = vpack.c.bf16 %v2703_v19, %v2703_v19  ;;  %v2798_v18 = vsel %vm589_vm10, %v2791_v15, %v2790_v59  ;;  %vm2718_vm5 = vcmp.gt.f32.partialorder %v5065_v46, 0.0  ;;  %vm2719_vm7 = vcmp.gt.f32.partialorder %v5078_v3, 0.0 }
 0xaf5   :  { %v2797_v39 = vunpack.c.l.b16 %v2757_v56  ;;  %v2799_v17 = vsel %vm591_vm11, %v2792_v51, %v2798_v18  ;;  %vm2720_vm8 = vcmp.gt.f32.partialorder %v5059_v33, 0.0  ;;  %vm2721_vm4 = vcmp.gt.f32.partialorder %v5073_v52, 0.0 }
 0xaf6   :  { %3953 = vmatmul.mubr.msk.bf16.gmra.mxu1 %vm5333_vm6, %v2909_v35  ;;  %v2795_v23 = vunpack.c.l.b16 %v2755_v29  ;;  %v2800_v9 = vsel %vm593_vm12, %v2793_v12, %v2799_v17  ;;  %vm2722_vm13 = vcmp.gt.f32.partialorder %v2696_v60, 0.0  ;;  %vm2723_vm2 = vcmp.gt.f32.partialorder %v2703_v19, 0.0 }
 0xaf7   :  { %v2801_v13 = vsel %vm595_vm14, %v2794_v27, %v2800_v9  ;;  %vm2725_vm3 = vcmp.gt.f32.partialorder %v2717_v30, 0.0  ;;  %v2728_v62 = vmul.f32 0.01, %v5059_v33  ;;  %v2729_v22 = vmul.f32 0.01, %v5073_v52  ;;  %3976 = vmatprep.mubr.msk.bf16.mxu1 %vm5314_vm9, %v4064_v24  ;;  %v4035_v9 = vld [vmem:[%s5287_s1 + $0x100] sm:$0xff]  }
 0xaf8   :  { %v2802_v43 = vsel %vm597_vm15, %v2795_v23, %v2801_v13  ;;  %v2730_v21 = vmul.f32 0.01, %v2696_v60  ;;  %v2731_v48 = vmul.f32 0.01, %v2703_v19  ;;  %v2733_v44 = vmul.f32 0.01, %v2717_v30 }
 0xaf9   :  { %v2803_v49 = vsel %vm599_vm0, %v2796_v41, %v2802_v43  ;;  %v2734_v14 = vsel %vm2718_vm5, %v5065_v46, %v5071_v53  ;;  %v2735_v8 = vsel %vm2719_vm7, %v5078_v3, %v5086_v16  ;;  %v2736_v10 = vsel %vm2720_vm8, %v5059_v33, %v2728_v62  ;;  %vm5334_vm5 = vmmov %vm5333_vm6  ;;  %v4036_v13 = vld [vmem:[%s5287_s1 + $0xf8] sm:$0xff]   ;;  %v4037_v62 = vld [vmem:[%s5287_s1 + $0xf0] sm:$0xff]  }
 0xafa   :  { %v2804_v26 = vsel %vm601_vm1, %v2797_v39, %v2803_v49  ;;  %v2737_v32 = vsel %vm2721_vm4, %v5073_v52, %v2729_v22  ;;  %v2738_v54 = vsel %vm2722_vm13, %v2696_v60, %v2730_v21  ;;  %v2739_v57 = vsel %vm2723_vm2, %v2703_v19, %v2731_v48  ;;  %v5183_v48 = vld [vmem:[%s5289_s3 + $0x8] sm:$0x3] }
 0xafb   :  { %v2805_v46 = vpack.c.b16 %v2804_v26, %v2804_v26  ;;  %v2742_v53 = vpack.c.bf16 %v2734_v14, %v2734_v14  ;;  %v2743_v34 = vpack.c.bf16 %v2735_v8, %v2735_v8  ;;  %v2744_v42 = vpack.c.bf16 %v2736_v10, %v2736_v10 }
 0xafc   :  { %v2745_v6 = vpack.c.bf16 %v2737_v32, %v2737_v32  ;;  %v2746_v3 = vpack.c.bf16 %v2738_v54, %v2738_v54  ;;  %v2747_v16 = vpack.c.bf16 %v2739_v57, %v2739_v57  ;;  %v2741_v33 = vsel %vm2725_vm3, %v2717_v30, %v2733_v44 }
 0xafd   :  { %2806 = vrot.lane.b32.xlu1 %v2805_v46, %s4066_s4  ;;  %v2766_v5 = vunpack.c.l.b16 %v2742_v53  ;;  %v2767_v63 = vunpack.c.l.b16 %v2743_v34  ;;  %v2768_v4 = vunpack.c.l.b16 %v2744_v42  ;;  %vm2724_vm9 = vcmp.gt.f32.partialorder %v5099_v37, 0.0 }
 0xafe   :  { %v2769_v50 = vunpack.c.l.b16 %v2745_v6  ;;  %v2770_v52 = vunpack.c.l.b16 %v2746_v3  ;;  %v2771_v60 = vunpack.c.l.b16 %v2747_v16  ;;  %v2732_v45 = vmul.f32 0.01, %v5099_v37 }
 0xaff   :  { %v2774_v35 = vsel %vm589_vm10, %v2767_v63, %v2766_v5  ;;  %v3121_v38 = vpack.c.bf16 %v5036_v0, %v5026_v7  ;;  %v3122_v30 = vpack.c.bf16 %v5031_v61, %v5021_v47  ;;  %v3123_v40 = vpack.c.bf16 %v5067_v31, %v5055_v20  ;;  %v4038_v47 = vld [vmem:[%s5291_s5 + $0x8] sm:$0xff]   ;;  %v4039_v61 = vld [vmem:[%s5291_s5] sm:$0xff]  }
 0xb00   :  { %v2775_v11 = vsel %vm591_vm11, %v2768_v4, %v2774_v35  ;;  %v3124_v58 = vpack.c.bf16 %v5057_v55, %v5045_v25  ;;  %v2749_v19 = vpack.c.bf16 %v2741_v33, %v2741_v33  ;;  %v2740_v15 = vsel %vm2724_vm9, %v5099_v37, %v2732_v45  ;;  %v4034_v37 = vld [vmem:[%s5287_s1 + $0x108] sm:$0xff]   ;;  %3973 = vmatpush3.bf16.msra.mxu1 %v4038_v47 }
 0xb01   :  { %v2776_v59 = vsel %vm593_vm12, %v2769_v50, %v2775_v11  ;;  %v2748_v56 = vpack.c.bf16 %v2740_v15, %v2740_v15  ;;  %vm5335_vm7 = vcmask 523264   ;;  %3956 = vmatprep.subr.bf16.mxu0 %v4034_v37  ;;  %v2880_v49 = vrot.slane %v5183_v48, %v4226_v2  ;;  %3974 = vmatprep.subr.bf16.mxu1 %v4064_v24 }
 0xb02   :  { %v2777_v51 = vsel %vm595_vm14, %v2770_v52, %v2776_v59  ;;  %v2773_v41 = vunpack.c.l.b16 %v2749_v19  ;;  %v3156_v25 = vrot.slane %v5183_v48, %v344_v36 }
 0xb03   :  { %v2778_v12 = vsel %vm597_vm15, %v2771_v60, %v2777_v51  ;;  %v2772_v27 = vunpack.c.l.b16 %v2748_v56 }
 0xb04   :  { %3975 = vmatpush3.bf16.msra.mxu1 %v4039_v61 }
 0xb05   :  { %v2779_v29 = vsel %vm599_vm0, %v2772_v27, %v2778_v12 }
 0xb06   :  { %v2780_v18 = vsel %vm601_vm1, %v2773_v41, %v2779_v29 }
 0xb07   :  { %v2781_v39 = vpack.c.b16 %v2780_v18, %v2780_v18 }
 0xb6f   :  { %v2807_v17 = vpop.permute.xlu1 %2806 }
 0xb70   :  { %v2810_v23 = vsel %vm5334_vm5, %v2781_v39, %v2807_v17 }
 0xb71   :  { %3941 = vmatmul.mubr.msk.bf16.vlgmr.msra.gmra.mxu0 %vm5335_vm7, %v2810_v23  ;;  %vm5336_vm7 = vcmask 261120  }
 0xb72   :  { %3957 = vmatpush3.bf16.msra.mxu0 %v4034_v37 }
 0xb73   :  { %3958 = vmatprep.subr.bf16.mxu0 %v4035_v9 }
 0xb76   :  { %3959 = vmatpush3.bf16.msra.mxu0 %v4035_v9 }
 0xb77   :  { %3960 = vmatprep.subr.bf16.mxu0 %v4036_v13 }
 0xb7a   :  { %3961 = vmatpush3.bf16.msra.mxu0 %v4036_v13 }
 0xb7b   :  { %3962 = vmatprep.subr.bf16.mxu0 %v4037_v62 }
 0xb7e   :  { %3963 = vmatpush3.bf16.msra.mxu0 %v4037_v62 }
 0xbae   :  { %v3950_v22 = vpop.f32.mrf.mxu1 }
 0xbb0   :  { %v2968_v43 = vpop.f32.mrf.mxu1 }
 0xbb2   :  { %v3951_v21 = vpop.f32.mrf.mxu1 }
 0xbb4   :  { %v2971_v44 = vpop.f32.mrf.mxu1 }
 0xbb6   :  { %v3954_v14 = vpop.f32.mrf.mxu1 }
 0xbb8   :  { %v2984_v57 = vpop.f32.mrf.mxu1 }
 0xbba   :  { %v3955_v63 = vpop.f32.mrf.mxu1 }
 0xbbc   :  { %v2987_v12 = vpop.f32.mrf.mxu1 }
 0xc31   :  { %v5187_v8 = vpop.f32.mrf.mxu0 }
 0xc32   :  { %v2881_v10 = vadd.f32 %v2880_v49, %v5187_v8  ;;  %v3262_v23 = vrot.slane %v5187_v8, %v4445_v28 }
 0xc33   :  { %v3942_v26 = vpop.f32.mrf.mxu0 }
 0xc34   :  { %v3000_v32 = vcombine.high %v2881_v10, %v2881_v10  ;;  %v3007_v54 = vrot.slane %v2881_v10, %v4445_v28 }
 0xc35   :  { %v2874_v46 = vpop.f32.mrf.mxu0 }
 0xc36   :  { %v3014_v53 = vrot.slane %v3000_v32, %v4445_v28  ;;  %v3015_v34 = vcombine.high %v3007_v54, %v3007_v54  ;;  %v3023_v42 = vrot.slane %v3007_v54, %v4445_v28 }
 0xc37   :  { %v3943_v6 = vpop.f32.mrf.mxu0 }
 0xc38   :  { %v3016_v3 = vcombine.high %v3014_v53, %v3014_v53  ;;  %v3030_v16 = vrot.slane %v3014_v53, %v4445_v28  ;;  %v3037_v33 = vrot.slane %v3015_v34, %v4445_v28  ;;  %v3045_v5 = vcombine.high %v3023_v42, %v3023_v42 }
 0xc39   :  { %v3052_v4 = vrot.slane %v3023_v42, %v4226_v2  ;;  %v3270_v42 = vcombine.high %v3262_v23, %v3262_v23  ;;  %v3278_v6 = vrot.slane %v3262_v23, %v4445_v28 }
 0xc3a   :  { %v3044_v50 = vrot.slane %v3016_v3, %v4445_v28  ;;  %v3047_v52 = vcombine.high %v3037_v33, %v3037_v33  ;;  %v3056_v60 = vrot.slane %v3037_v33, %v4226_v2  ;;  %v3046_v35 = vcombine.high %v3030_v16, %v3030_v16 }
 0xc3b   :  { %v3089_v45 = vadd.f32 %v3052_v4, %v2968_v43  ;;  %v3060_v11 = vrot.slane %v3045_v5, %v4226_v2  ;;  %v3068_v19 = vrot.slane %v3030_v16, %v4226_v2 }
 0xc3c   :  { %v3090_v59 = vadd.f32 %v3056_v60, %v2971_v44  ;;  %v3064_v15 = vrot.slane %v3047_v52, %v4226_v2  ;;  %v3072_v51 = vrot.slane %v3044_v50, %v4226_v2  ;;  %v3048_v56 = vcombine.high %v3044_v50, %v3044_v50 }
 0xc3d   :  { %vm3097_vm8 = vcmp.gt.f32.partialorder %v3089_v45, 0.0  ;;  %v3105_v27 = vmul.f32 0.01, %v3089_v45  ;;  %v3091_v41 = vadd.f32 %v3950_v22, %v3060_v11  ;;  %v3093_v29 = vadd.f32 %v3068_v19, %v2984_v57 }
 0xc3e   :  { %vm3098_vm4 = vcmp.gt.f32.partialorder %v3090_v59, 0.0  ;;  %v3106_v18 = vmul.f32 0.01, %v3090_v59  ;;  %v3092_v39 = vadd.f32 %v3951_v21, %v3064_v15  ;;  %v3094_v17 = vadd.f32 %v3072_v51, %v2987_v12 }
 0xc3f   :  { %v3113_v37 = vsel %vm3097_vm8, %v3089_v45, %v3105_v27  ;;  %vm3099_vm6 = vcmp.gt.f32.partialorder %v3091_v41, 0.0  ;;  %v3107_v9 = vmul.f32 0.01, %v3091_v41  ;;  %vm3101_vm3 = vcmp.gt.f32.partialorder %v3093_v29, 0.0 }
 0xc40   :  { %v3114_v13 = vsel %vm3098_vm4, %v3090_v59, %v3106_v18  ;;  %vm3100_vm13 = vcmp.gt.f32.partialorder %v3092_v39, 0.0  ;;  %v3108_v62 = vmul.f32 0.01, %v3092_v39  ;;  %vm3102_vm2 = vcmp.gt.f32.partialorder %v3094_v17, 0.0  ;;  %vm5338_vm4 = vmmov %vm5336_vm7 }
 0xc41   :  { %v3125_v43 = vpack.c.bf16 %v3114_v13, %v3113_v37  ;;  %v3109_v44 = vmul.f32 0.01, %v3093_v29  ;;  %v3110_v49 = vmul.f32 0.01, %v3094_v17  ;;  %v3115_v22 = vsel %vm3099_vm6, %v3091_v41, %v3107_v9 }
 0xc42   :  { %v3116_v10 = vsel %vm3100_vm13, %v3092_v39, %v3108_v62  ;;  %v3076_v26 = vrot.slane %v3046_v35, %v4226_v2  ;;  %v3080_v21 = vrot.slane %v3048_v56, %v4226_v2  ;;  %v3255_v57 = vcombine.high %v5187_v8, %v5187_v8  ;;  %vm5340_vm13 = vmmov %vm5338_vm4 }
 0xc43   :  { %3133 = vrot.lane.b32.xlu0 %v3125_v43, %s4066_s4  ;;  %v3126_v32 = vpack.c.bf16 %v3116_v10, %v3115_v22  ;;  %v3118_v54 = vsel %vm3102_vm2, %v3094_v17, %v3110_v49  ;;  %v3117_v46 = vsel %vm3101_vm3, %v3093_v29, %v3109_v44  ;;  %v3300_v52 = vcombine.high %v3278_v6, %v3278_v6  ;;  %vm5342_vm3 = vmmov %vm5338_vm4 }
 0xc44   :  { %v3095_v53 = vadd.f32 %v3954_v14, %v3076_v26  ;;  %v3096_v34 = vadd.f32 %v3955_v63, %v3080_v21  ;;  %v3127_v3 = vpack.c.bf16 %v3118_v54, %v3117_v46  ;;  %v3269_v5 = vrot.slane %v3255_v57, %v4445_v28 }
 0xc45   :  { %3135 = vrot.lane.b32.xlu1 %v3126_v32, %s4066_s4  ;;  %v3307_v14 = vrot.slane %v3278_v6, %v4226_v2  ;;  %v3292_v63 = vrot.slane %v3270_v42, %v4445_v28  ;;  %v3315_v45 = vrot.slane %v3300_v52, %v4226_v2  ;;  %vm5337_vm8 = vcmask 523264  }
 0xc46   :  { %vm3103_vm9 = vcmp.gt.f32.partialorder %v3095_v53, 0.0  ;;  %vm3104_vm5 = vcmp.gt.f32.partialorder %v3096_v34, 0.0  ;;  %v3111_v16 = vmul.f32 0.01, %v3095_v53  ;;  %v3112_v33 = vmul.f32 0.01, %v3096_v34  ;;  %vm5339_vm6 = vmmov %vm5337_vm8 }
 0xc47   :  { %3137 = vrot.lane.b32.xlu0 %v3127_v3, %s4066_s4  ;;  %v3271_v60 = vcombine.high %v3269_v5, %v3269_v5  ;;  %v3311_v35 = vrot.slane %v3292_v63, %v4226_v2  ;;  %v3302_v11 = vcombine.high %v3292_v63, %v3292_v63  ;;  %v3285_v19 = vrot.slane %v3269_v5, %v4445_v28  ;;  %vm5341_vm2 = vmmov %vm5339_vm6 }
 0xc48   :  { %v3119_v4 = vsel %vm3103_vm9, %v3095_v53, %v3111_v16  ;;  %v3120_v50 = vsel %vm3104_vm5, %v3096_v34, %v3112_v33  ;;  %vm5343_vm9 = vmmov %vm5341_vm2 }
 0xc49   :  { %v3128_v8 = vpack.c.bf16 %v3120_v50, %v3119_v4  ;;  %v3319_v59 = vrot.slane %v3302_v11, %v4226_v2  ;;  %v3323_v15 = vrot.slane %v3285_v19, %v4226_v2  ;;  %v3299_v51 = vrot.slane %v3271_v60, %v4445_v28  ;;  %vm5344_vm5 = vmmov %vm5342_vm3 }
 0xc4a   :  { %v3301_v56 = vcombine.high %v3285_v19, %v3285_v19 }
 0xc4b   :  { %3139 = vrot.lane.b32.xlu1 %v3128_v8, %s4066_s4  ;;  %3336 = vrot.lane.b32.xlu0 %v3307_v14, %s4068_s15  ;;  %v3327_v12 = vrot.slane %v3299_v51, %v4226_v2  ;;  %v3303_v41 = vcombine.high %v3299_v51, %v3299_v51 }
 0xc4c   :  { %v3331_v27 = vrot.slane %v3301_v56, %v4226_v2 }
 0xc4d   :  { %v3335_v29 = vrot.slane %v3303_v41, %v4226_v2 }
 0xc4f   :  { %3338 = vrot.lane.b32.xlu1 %v3311_v35, %s4068_s15  ;;  %3340 = vrot.lane.b32.xlu0 %v3315_v45, %s4068_s15 }
 0xc53   :  { %3342 = vrot.lane.b32.xlu1 %v3319_v59, %s4068_s15  ;;  %3344 = vrot.lane.b32.xlu0 %v3323_v15, %s4068_s15 }
 0xc57   :  { %3346 = vrot.lane.b32.xlu1 %v3327_v12, %s4068_s15  ;;  %3348 = vrot.lane.b32.xlu0 %v3331_v27, %s4068_s15 }
 0xc5b   :  { %3350 = vrot.lane.b32.xlu1 %v3335_v29, %s4068_s15 }
 0xcb5   :  { %v3134_v18 = vpop.permute.xlu0 %3133 }
 0xcb6   :  { %v3143_v28 = vsel %vm5336_vm7, %v3121_v38, %v3134_v18  ;;  %vm5345_vm7 = vmmov %vm5342_vm3 }
 0xcb7   :  { %3964 = vmatprep.mubr.msk.bf16.mxu0 %vm5337_vm8, %v3143_v28  ;;  %v3136_v39 = vpop.permute.xlu1 %3135  ;;  %vm5346_vm8 = vmmov %vm5342_vm3 }
 0xcb8   :  { %v3146_v17 = vsel %vm5338_vm4, %v3122_v30, %v3136_v39  ;;  %vm5347_vm4 = vmmov %vm5342_vm3 }
 0xcb9   :  { %3965 = vmatmul.mubr.msk.bf16.vlgmr.msra.gmra.mxu0 %vm5339_vm6, %v3146_v17  ;;  %v3138_v23 = vpop.permute.xlu0 %3137  ;;  %vm5348_vm6 = vmmov %vm5342_vm3 }
 0xcba   :  { %v3149_v2 = vsel %vm5340_vm13, %v3123_v40, %v3138_v23  ;;  %vm5349_vm13 = vmmov %vm5342_vm3 }
 0xcbb   :  { %3968 = vmatprep.mubr.msk.bf16.mxu0 %vm5341_vm2, %v3149_v2  ;;  %vm5350_vm2 = vmmov %vm5342_vm3 }
 0xcbd   :  { %v3140_v7 = vpop.permute.xlu1 %3139  ;;  %v3337_v20 = vpop.permute.xlu0 %3336 }
 0xcbe   :  { %v3152_v0 = vsel %vm5342_vm3, %v3124_v58, %v3140_v7  ;;  %vm5351_vm3 = vmmov %vm5350_vm2 }
 0xcc1   :  { %3969 = vmatmul.mubr.msk.bf16.gmra.mxu0 %vm5343_vm9, %v3152_v0  ;;  %v3339_v31 = vpop.permute.xlu1 %3338  ;;  %v3341_v55 = vpop.permute.xlu0 %3340 }
 0xcc5   :  { %v3343_v40 = vpop.permute.xlu1 %3342  ;;  %v3345_v13 = vpop.permute.xlu0 %3344 }
 0xcc9   :  { %v3347_v36 = vpop.permute.xlu1 %3346  ;;  %v3349_v53 = vpop.permute.xlu0 %3348 }
 0xccd   :  { %v3351_v45 = vpop.permute.xlu1 %3350 }
 0xd79   :  { %v3966_v38 = vpop.f32.mrf.mxu0 }
 0xd7a   :  { %v3232_v30 = vadd.f32 %v3966_v38, %v3156_v25 }
 0xd7b   :  { %v3223_v58 = vpop.f32.mrf.mxu0 }
 0xd7c   :  { %v3362_v37 = vadd.f32 %v3341_v55, %v3232_v30  ;;  %v3224_v9 = vadd.f32 %v3223_v58, %v3156_v25 }
 0xd7d   :  { %v3967_v62 = vpop.f32.mrf.mxu0 }
 0xd7e   :  { %v3382_v43 = vsel %vm5344_vm5, %v3362_v37, -inf  ;;  %v3360_v44 = vadd.f32 %v3337_v20, %v3224_v9  ;;  %v3235_v24 = vadd.f32 %v3967_v62, %v3156_v25 }
 0xd7f   :  { %v3383_v49 = vrot.slane %v3382_v43, 4  ;;  %v3226_v22 = vpop.f32.mrf.mxu0 }
 0xd80   :  { %v3368_v10 = vsel %vm5345_vm7, %v3360_v44, -inf  ;;  %v3363_v1 = vadd.f32 %v3343_v40, %v3235_v24  ;;  %v3227_v26 = vadd.f32 %v3226_v22, %v3156_v25 }
 0xd81   :  { %v3384_v48 = vmax.f32 %v3382_v43, %v3383_v49  ;;  %v3369_v21 = vrot.slane %v3368_v10, 4  ;;  %v3970_v32 = vpop.f32.mrf.mxu0 }
 0xd82   :  { %v3389_v54 = vsel %vm5346_vm8, %v3363_v1, -inf  ;;  %v3361_v57 = vadd.f32 %v3339_v31, %v3227_v26  ;;  %v3248_v46 = vadd.f32 %v3970_v32, %v3156_v25 }
 0xd83   :  { %v3385_v34 = vrot.slane %v3384_v48, 2  ;;  %v3370_v42 = vmax.f32 %v3368_v10, %v3369_v21  ;;  %v3390_v6 = vrot.slane %v3389_v54, 4  ;;  %v3239_v3 = vpop.f32.mrf.mxu0 }
 0xd84   :  { %v3375_v16 = vsel %vm5347_vm4, %v3361_v57, -inf  ;;  %v3366_v33 = vadd.f32 %v3349_v53, %v3248_v46  ;;  %v3240_v5 = vadd.f32 %v3239_v3, %v3156_v25 }
 0xd85   :  { %v3371_v4 = vrot.slane %v3370_v42, 2  ;;  %v3391_v50 = vmax.f32 %v3389_v54, %v3390_v6  ;;  %v3376_v8 = vrot.slane %v3375_v16, 4  ;;  %v3971_v14 = vpop.f32.mrf.mxu0  ;;  %v3386_v63 = vmax.f32 %v3384_v48, %v3385_v34 }
 0xd86   :  { %v3410_v52 = vsel %vm5348_vm6, %v3366_v33, -inf  ;;  %v3364_v60 = vadd.f32 %v3345_v13, %v3240_v5  ;;  %v3251_v35 = vadd.f32 %v3971_v14, %v3156_v25 }
 0xd87   :  { %v3372_v11 = vmax.f32 %v3370_v42, %v3371_v4  ;;  %v3392_v19 = vrot.slane %v3391_v50, 2  ;;  %v3377_v59 = vmax.f32 %v3375_v16, %v3376_v8  ;;  %v3242_v15 = vpop.f32.mrf.mxu0  ;;  %v3411_v51 = vrot.slane %v3410_v52, 4 }
 0xd88   :  { %v3396_v56 = vsel %vm5349_vm13, %v3364_v60, -inf  ;;  %v3367_v12 = vadd.f32 %v3351_v45, %v3251_v35  ;;  %v3243_v29 = vadd.f32 %v3242_v15, %v3156_v25  ;;  %v3387_v18 = vrot.slane %v3386_v63, 1 }
 0xd89   :  { %v3373_v27 = vrot.slane %v3372_v11, 1  ;;  %v3378_v41 = vrot.slane %v3377_v59, 2  ;;  %v3412_v28 = vmax.f32 %v3410_v52, %v3411_v51  ;;  %v3397_v39 = vrot.slane %v3396_v56, 4 }
 0xd8a   :  { %v3417_v17 = vsel %vm5350_vm2, %v3367_v12, -inf  ;;  %v3393_v23 = vmax.f32 %v3391_v50, %v3392_v19  ;;  %v3365_v20 = vadd.f32 %v3347_v36, %v3243_v29  ;;  %v3388_v31 = vmax.f32 %v3386_v63, %v3387_v18 }
 0xd8b   :  { %v3379_v2 = vmax.f32 %v3377_v59, %v3378_v41  ;;  %v3413_v7 = vrot.slane %v3412_v28, 2  ;;  %v3398_v0 = vmax.f32 %v3396_v56, %v3397_v39  ;;  %v3418_v47 = vrot.slane %v3417_v17, 4 }
 0xd8c   :  { %v3374_v61 = vmax.f32 %v3372_v11, %v3373_v27  ;;  %v3394_v30 = vrot.slane %v3393_v23, 1  ;;  %v3403_v62 = vsel %vm5351_vm3, %v3365_v20, -inf  ;;  %v3434_v43 = vmul.f32 0.01, %v3388_v31 }
 0xd8d   :  { %v3380_v55 = vrot.slane %v3379_v2, 1  ;;  %v3399_v38 = vrot.slane %v3398_v0, 2  ;;  %v3419_v40 = vmax.f32 %v3417_v17, %v3418_v47  ;;  %v3414_v37 = vmax.f32 %v3412_v28, %v3413_v7 }
 0xd8e   :  { %v3432_v25 = vmul.f32 0.01, %v3374_v61  ;;  %vm3424_vm9 = vcmp.gt.f32.partialorder %v3374_v61, 0.0  ;;  %v3395_v24 = vmax.f32 %v3393_v23, %v3394_v30  ;;  %v3404_v10 = vrot.slane %v3403_v62, 4 }
 0xd8f   :  { %v3381_v58 = vmax.f32 %v3379_v2, %v3380_v55  ;;  %v3400_v9 = vmax.f32 %v3398_v0, %v3399_v38  ;;  %v3420_v13 = vrot.slane %v3419_v40, 2  ;;  %vm3426_vm7 = vcmp.gt.f32.partialorder %v3388_v31, 0.0 }
 0xd90   :  { %v3415_v26 = vrot.slane %v3414_v37, 1  ;;  %v3440_v36 = vsel %vm3424_vm9, %v3374_v61, %v3432_v25  ;;  %v3405_v54 = vmax.f32 %v3403_v62, %v3404_v10  ;;  %v3442_v57 = vsel %vm3426_vm7, %v3388_v31, %v3434_v43  ;;  %v3660_v31 = vld [vmem:[%s5292_s6] ss:$0 sm:$0xff] }
 0xd91   :  { %vm3425_vm5 = vcmp.gt.f32.partialorder %v3381_v58, 0.0  ;;  %v3433_v44 = vmul.f32 0.01, %v3381_v58  ;;  %v3401_v49 = vrot.slane %v3400_v9, 1  ;;  %v3421_v22 = vmax.f32 %v3419_v40, %v3420_v13 }
 0xd92   :  { %vm3427_vm8 = vcmp.gt.f32.partialorder %v3395_v24, 0.0  ;;  %v3435_v46 = vmul.f32 0.01, %v3395_v24  ;;  %v3452_v53 = vpack.c.bf16 %v3440_v36, %v3440_v36  ;;  %v3416_v34 = vmax.f32 %v3414_v37, %v3415_v26 }
 0xd93   :  { %v3441_v1 = vsel %vm3425_vm5, %v3381_v58, %v3433_v44  ;;  %v3402_v48 = vmax.f32 %v3400_v9, %v3401_v49  ;;  %v3422_v32 = vrot.slane %v3421_v22, 1  ;;  %v3406_v6 = vrot.slane %v3405_v54, 2 }
 0xd94   :  { %v3453_v21 = vpack.c.bf16 %v3441_v1, %v3441_v1  ;;  %v3454_v33 = vpack.c.bf16 %v3442_v57, %v3442_v57  ;;  %v3443_v5 = vsel %vm3427_vm8, %v3395_v24, %v3435_v46  ;;  %v3475_v50 = vunpack.c.l.b16 %v3452_v53 }
 0xd95   :  { %v3436_v42 = vmul.f32 0.01, %v3402_v48  ;;  %vm3428_vm4 = vcmp.gt.f32.partialorder %v3402_v48, 0.0  ;;  %v3423_v3 = vmax.f32 %v3421_v22, %v3422_v32  ;;  %v3407_v4 = vmax.f32 %v3405_v54, %v3406_v6 }
 0xd96   :  { %v3476_v16 = vunpack.c.l.b16 %v3453_v21  ;;  %v3438_v8 = vmul.f32 0.01, %v3416_v34  ;;  %vm3430_vm6 = vcmp.gt.f32.partialorder %v3416_v34, 0.0  ;;  %v3455_v60 = vpack.c.bf16 %v3443_v5, %v3443_v5 }
 0xd97   :  { %v3444_v14 = vsel %vm3428_vm4, %v3402_v48, %v3436_v42  ;;  %v3439_v63 = vmul.f32 0.01, %v3423_v3  ;;  %v3408_v52 = vrot.slane %v3407_v4, 1  ;;  %vm3431_vm13 = vcmp.gt.f32.partialorder %v3423_v3, 0.0 }
 0xd98   :  { %v3483_v35 = vsel %vm589_vm10, %v3476_v16, %v3475_v50  ;;  %v3477_v45 = vunpack.c.l.b16 %v3454_v33  ;;  %v3456_v11 = vpack.c.bf16 %v3444_v14, %v3444_v14  ;;  %v3446_v59 = vsel %vm3430_vm6, %v3416_v34, %v3438_v8  ;;  %vm5352_vm10 = vmmov %vm5351_vm3 }
 0xd99   :  { %v3409_v19 = vmax.f32 %v3407_v4, %v3408_v52  ;;  %v3447_v51 = vsel %vm3431_vm13, %v3423_v3, %v3439_v63  ;;  %v3478_v12 = vunpack.c.l.b16 %v3455_v60  ;;  %v3458_v27 = vpack.c.bf16 %v3446_v59, %v3446_v59 }
 0xd9a   :  { %v3484_v15 = vsel %vm591_vm11, %v3477_v45, %v3483_v35  ;;  %v3479_v41 = vunpack.c.l.b16 %v3456_v11  ;;  %v3459_v28 = vpack.c.bf16 %v3447_v51, %v3447_v51  ;;  %vm5353_vm11 = vmmov %vm5351_vm3 }
 0xd9b   :  { %vm3429_vm2 = vcmp.gt.f32.partialorder %v3409_v19, 0.0  ;;  %v3437_v56 = vmul.f32 0.01, %v3409_v19  ;;  %v3485_v18 = vsel %vm593_vm12, %v3478_v12, %v3484_v15  ;;  %v3481_v23 = vunpack.c.l.b16 %v3458_v27 }
 0xd9c   :  { %v3486_v2 = vsel %vm595_vm14, %v3479_v41, %v3485_v18  ;;  %v3482_v7 = vunpack.c.l.b16 %v3459_v28 }
 0xd9d   :  { %v3445_v29 = vsel %vm3429_vm2, %v3409_v19, %v3437_v56 }
 0xd9e   :  { %v3457_v39 = vpack.c.bf16 %v3445_v29, %v3445_v29 }
 0xda0   :  { %v3480_v17 = vunpack.c.l.b16 %v3457_v39 }
 0xda2   :  { %v3487_v0 = vsel %vm597_vm15, %v3480_v17, %v3486_v2 }
 0xda3   :  { %v3488_v47 = vsel %vm599_vm0, %v3481_v23, %v3487_v0 }
 0xda4   :  { %v3489_v61 = vsel %vm601_vm1, %v3482_v7, %v3488_v47 }
 0xda5   :  { %v3490_v20 = vpack.c.b16 %v3489_v61, %v3489_v61 }
 0xda7   :  { %3977 = vmatmul.mubr.msk.bf16.vlgmr.msra.gmra.mxu1 %vm5352_vm10, %v3490_v20 }
 0xe67   :  { %v3540_v55 = vpop.f32.mrf.mxu1 }
 0xe68   :  { %v3541_v38 = vadd.f32 %v3660_v31, %v3540_v55 }
 0xe69   :  { %v3978_v30 = vpop.f32.mrf.mxu1 }
 0xe6a   :  { %3546 = vst.msk [vmem:[#allocation2] sm:$0xff] %vm5353_vm11, %v3541_v38 }
 0xe6b   :  { %v3543_v40 = vpop.f32.mrf.mxu1 }
 0xe6c   :  { %4052 = shalt.err (!%p4049_p4)
}
 0xe6d   :  { %3556 = dma.vmem_to_hbm [thread:$0]  %s3554_s11, 128, %s5293_s7, [#allocation3]   ;;  %v3979_v58 = vpop.f32.mrf.mxu1 }
 0xe6e   :  { %4061 = dma.done.wait [#allocation3], 128  }
 0xe6f   :  { %4062 = vsyncadd [#allocation3], 4294967168 }
 0xe70   :  { %3560 = vsyncpa [#allocation3], 1 }

</bundles_post_ra>
